<compile_context>
chip_gen: v6e
topology: v6e:2x2x1
jax: 0.10.0
libtpu: 0.0.40
codegen_flags: <defaults>
</compile_context>

<pallas_src>
import jax
import jax.numpy as jnp
from jax.experimental import pallas as pl
from jax.experimental.pallas import tpu as pltpu

HIDDEN_SIZE = 16               # VEncoder hidden_size (enc_mean / enc_logvar out)
HEADS_N = 128                  # 2*HIDDEN_SIZE zero-padded to one full lane tile
BN_EPS = 1e-5

STEM = dict(cin=3, cout=128, k=7, s=2, p=3)
BLOCKS = [
    dict(cin=128, cout=128, stride=1),    # stage-1 basic block (identity skip)
    dict(cin=128, cout=256, stride=2),    # stage-2 basic block (1x1 s2 skip)
]
END_CH = BLOCKS[-1]["cout"]    # stands in for bkbn.fc.in_features


def _round_up(x, m):
    return (x + m - 1) // m * m


def _pick_bm(M, block_m):
    """Block size along M: >=2 grid steps when possible (v7x megacore), 8-aligned."""
    return min(block_m, _round_up(max(-(-M // 2), 8), 8))


def bn_affine(gamma, beta, rmean, rvar, eps=BN_EPS):
    scale = gamma / jnp.sqrt(rvar + eps)
    shift = beta - rmean * scale
    return scale, shift


def conv_w_to_gemm(w_oihw):
    """PyTorch (Cout, Cin, kh, kw) -> (k*k*Cin, Cout) bf16 GEMM weight.

    Row index ((kh*k + kw)*Cin + ci) matches the im2col tap ordering below."""
    cout, cin, k, _ = w_oihw.shape
    return jnp.transpose(w_oihw, (2, 3, 1, 0)).reshape(k * k * cin, cout).astype(jnp.bfloat16)


# ---------------- fused GEMM kernel: conv/linear + BN affine + residual + ReLU -----
def fused_matmul(x, w, scale, shift, *, res=None, relu=False,
                 out_dtype=jnp.bfloat16, block_m=4096):
    """y = act( (x @ w) * scale + shift (+ res) ), bf16 operands / f32 accumulate.

    x: (M, K) bf16, w: (K, N) bf16 with N a multiple of 128 (lane-dense stores),
    scale/shift: (N,) f32, res: optional (M, N) bf16 added before the ReLU.
    K is never tiled (<= 2304 here) so each tile is a single MXU dot."""
    M, K = x.shape
    N = w.shape[1]
    assert N % 128 == 0, "keep GEMM outputs lane-dense"

    bm = _pick_bm(M, block_m)
    Mp = _round_up(M, bm)
    if Mp != M:
        x = jnp.pad(x, ((0, Mp - M), (0, 0)))
        if res is not None:
            res = jnp.pad(res, ((0, Mp - M), (0, 0)))
    grid_m = Mp // bm
    has_res = res is not None

    sc2 = scale.reshape(1, N).astype(jnp.float32)
    sh2 = shift.reshape(1, N).astype(jnp.float32)

    def kernel(*refs):
        if has_res:
            x_ref, w_ref, sc_ref, sh_ref, r_ref, o_ref = refs
        else:
            x_ref, w_ref, sc_ref, sh_ref, o_ref = refs
            r_ref = None
        acc = jnp.dot(x_ref[...], w_ref[...], preferred_element_type=jnp.float32)
        y = acc * sc_ref[...] + sh_ref[...]          # BN affine (f32 epilogue)
        if r_ref is not None:
            y = y + r_ref[...].astype(jnp.float32)   # fused residual add
        if relu:
            y = jnp.maximum(y, 0.0)
        o_ref[...] = y.astype(o_ref.dtype)

    in_specs = [
        pl.BlockSpec((bm, K), lambda i: (i, 0)),
        pl.BlockSpec((K, N), lambda i: (0, 0)),
        pl.BlockSpec((1, N), lambda i: (0, 0)),
        pl.BlockSpec((1, N), lambda i: (0, 0)),
    ]
    args = [x, w, sc2, sh2]
    if has_res:
        in_specs.append(pl.BlockSpec((bm, N), lambda i: (i, 0)))
        args.append(res)

    out = pl.pallas_call(
        kernel,
        out_shape=jax.ShapeDtypeStruct((Mp, N), out_dtype),
        grid_spec=pltpu.PrefetchScalarGridSpec(
            num_scalar_prefetch=0,
            grid=(grid_m,),
            in_specs=in_specs,
            out_specs=pl.BlockSpec((bm, N), lambda i: (i, 0)),
        ),
        compiler_params=pltpu.CompilerParams(
            dimension_semantics=("parallel",),
            vmem_limit_bytes=32 * 1024 * 1024,
        ),
    )(*args)
    return out[:M]


# ------------------------------ conv = im2col + fused GEMM -------------------------
def im2col(x, k, s, p):
    """NHWC (B,H,W,C) -> (B*Ho*Wo, k*k*C) patch matrix (taps folded into K).

    Pure data-movement glue on small bf16 tensors; the GEMM itself runs in Pallas."""
    B, H, W, C = x.shape
    Ho = (H + 2 * p - k) // s + 1
    Wo = (W + 2 * p - k) // s + 1
    xp = jnp.pad(x, ((0, 0), (p, p), (p, p), (0, 0))) if p else x
    cols = []
    for kh in range(k):
        for kw in range(k):
            cols.append(xp[:, kh:kh + (Ho - 1) * s + 1:s,
                           kw:kw + (Wo - 1) * s + 1:s, :])
    patches = jnp.concatenate(cols, axis=-1)              # (B, Ho, Wo, k*k*C)
    return patches.reshape(B * Ho * Wo, k * k * C), (B, Ho, Wo)


def conv_bn(x, w_gemm, scale, shift, *, k, s, p, relu, res=None):
    lhs, (B, Ho, Wo) = im2col(x, k, s, p)
    res_flat = None if res is None else res.reshape(B * Ho * Wo, -1)
    y = fused_matmul(lhs, w_gemm, scale, shift, res=res_flat, relu=relu)
    return y.reshape(B, Ho, Wo, w_gemm.shape[1])


# ------------------------------ MaxPool2d(3, stride=2, pad=1) ----------------------
def maxpool_3x3_s2(x):
    """x: (B,H,W,C) bf16, post-ReLU (>=0) so zero padding is equivalent to -inf."""
    B, H, W, C = x.shape
    Ho = (H + 2 - 3) // 2 + 1
    Wo = (W + 2 - 3) // 2 + 1
    xp = jnp.pad(x, ((0, 0), (1, 1), (1, 1), (0, 0)))
    taps = jnp.stack([xp[:, kh:kh + (Ho - 1) * 2 + 1:2,
                         kw:kw + (Wo - 1) * 2 + 1:2, :]
                      for kh in range(3) for kw in range(3)], axis=0)
    M = B * Ho * Wo
    taps = taps.reshape(9, M, C)
    bm = _pick_bm(M, 2048)
    Mp = _round_up(M, bm)
    if Mp != M:
        taps = jnp.pad(taps, ((0, 0), (0, Mp - M), (0, 0)))

    def kernel(t_ref, o_ref):
        m = t_ref[0]
        for i in range(1, 9):
            m = jnp.maximum(m, t_ref[i])
        o_ref[...] = m

    out = pl.pallas_call(
        kernel,
        out_shape=jax.ShapeDtypeStruct((Mp, C), x.dtype),
        grid_spec=pltpu.PrefetchScalarGridSpec(
            num_scalar_prefetch=0,
            grid=(Mp // bm,),
            in_specs=[pl.BlockSpec((9, bm, C), lambda i: (0, i, 0))],
            out_specs=pl.BlockSpec((bm, C), lambda i: (i, 0)),
        ),
        compiler_params=pltpu.CompilerParams(
            dimension_semantics=("parallel",),
            vmem_limit_bytes=32 * 1024 * 1024,
        ),
    )(taps)
    return out[:M].reshape(B, Ho, Wo, C)


# --------------- fused global-avgpool + enc_mean + enc_logvar (one call) -----------
def avgpool_heads(x_flat, pool_mat, w_heads, b_heads):
    """x_flat: (B*S, C) bf16; pool_mat: (B, B*S) bf16 block-averaging matrix.

    feat = pool_mat @ x_flat  (global average pool as a tiny MXU dot),
    out  = feat @ w_heads + b_heads  with both heads concatenated and padded to
    128 lanes so the store is lane-dense."""
    B = pool_mat.shape[0]
    Np = w_heads.shape[1]

    def kernel(p_ref, x_ref, w_ref, b_ref, o_ref):
        feat = jnp.dot(p_ref[...], x_ref[...], preferred_element_type=jnp.float32)
        y = jnp.dot(feat.astype(jnp.bfloat16), w_ref[...],
                    preferred_element_type=jnp.float32)
        o_ref[...] = y + b_ref[...]

    return pl.pallas_call(
        kernel,
        out_shape=jax.ShapeDtypeStruct((B, Np), jnp.float32),
        grid_spec=pltpu.PrefetchScalarGridSpec(
            num_scalar_prefetch=0,
            grid=(1,),
            in_specs=[
                pl.BlockSpec(pool_mat.shape, lambda i: (0, 0)),
                pl.BlockSpec(x_flat.shape, lambda i: (0, 0)),
                pl.BlockSpec(w_heads.shape, lambda i: (0, 0)),
                pl.BlockSpec(b_heads.shape, lambda i: (0, 0)),
            ],
            out_specs=pl.BlockSpec((B, Np), lambda i: (0, 0)),
        ),
        compiler_params=pltpu.CompilerParams(
            dimension_semantics=("arbitrary",),
            vmem_limit_bytes=32 * 1024 * 1024,
        ),
    )(pool_mat, x_flat, w_heads, b_heads)


# ------------------------------------- parameters ----------------------------------
def init_params(key):
    keys = iter(jax.random.split(key, 64))
    P = {}

    def normal(shape, std):
        return std * jax.random.normal(next(keys), shape, dtype=jnp.float32)

    def add_bn(prefix, c):
        P[prefix + "_g"] = 1.0 + normal((c,), 0.1)
        P[prefix + "_b"] = normal((c,), 0.1)
        P[prefix + "_m"] = normal((c,), 0.1)
        P[prefix + "_v"] = 1.0 + jnp.abs(normal((c,), 0.1))

    # stem: Conv2d(3, 128, 7, stride=2, padding=3, bias=False) + BN + ReLU
    cin, cout, k = STEM["cin"], STEM["cout"], STEM["k"]
    w = normal((cout, cin, k, k), (cin * k * k) ** -0.5)
    P["stem_w_oihw"] = w
    P["stem_w"] = conv_w_to_gemm(w)
    add_bn("stem_bn", cout)

    # residual basic blocks
    for bi, cfg in enumerate(BLOCKS):
        ci, co, s = cfg["cin"], cfg["cout"], cfg["stride"]
        pre = f"blk{bi}_"
        w1 = normal((co, ci, 3, 3), (ci * 9) ** -0.5)
        w2 = normal((co, co, 3, 3), (co * 9) ** -0.5)
        P[pre + "w1_oihw"] = w1
        P[pre + "w1"] = conv_w_to_gemm(w1)
        P[pre + "w2_oihw"] = w2
        P[pre + "w2"] = conv_w_to_gemm(w2)
        add_bn(pre + "bn1", co)
        add_bn(pre + "bn2", co)
        if s != 1 or ci != co:
            wd = normal((co, ci, 1, 1), ci ** -0.5)
            P[pre + "wd_oihw"] = wd
            P[pre + "wd"] = conv_w_to_gemm(wd)
            add_bn(pre + "bnd", co)

    # VAE heads: nn.Linear(end_bkbn_ch, hidden_size) x2, PyTorch (out, in) layout
    wm = normal((HIDDEN_SIZE, END_CH), END_CH ** -0.5)
    wv = normal((HIDDEN_SIZE, END_CH), END_CH ** -0.5)
    bm_ = normal((HIDDEN_SIZE,), 0.02)
    bv_ = normal((HIDDEN_SIZE,), 0.02)
    P["head_mean_w"], P["head_mean_b"] = wm, bm_
    P["head_logvar_w"], P["head_logvar_b"] = wv, bv_
    # fused + lane-padded kernel form: (END_CH, 128) bf16 weight, (1, 128) f32 bias
    w_cat = jnp.concatenate([wm.T, wv.T], axis=1)            # (END_CH, 2*hidden)
    b_cat = jnp.concatenate([bm_, bv_], axis=0)              # (2*hidden,)
    P["heads_w"] = jnp.pad(w_cat, ((0, 0), (0, HEADS_N - 2 * HIDDEN_SIZE))).astype(jnp.bfloat16)
    P["heads_b"] = jnp.pad(b_cat, (0, HEADS_N - 2 * HIDDEN_SIZE)).reshape(1, HEADS_N).astype(jnp.float32)
    return P


# ------------------------------------ forward pass ---------------------------------
def vencoder_forward(x_nchw, P):
    # single layout change: NCHW -> NHWC, cast to bf16 (dot-operand dtype)
    x = jnp.transpose(x_nchw, (0, 2, 3, 1)).astype(jnp.bfloat16)

    # stem conv + BN + ReLU, then maxpool
    sc, sh = bn_affine(P["stem_bn_g"], P["stem_bn_b"], P["stem_bn_m"], P["stem_bn_v"])
    x = conv_bn(x, P["stem_w"], sc, sh, k=STEM["k"], s=STEM["s"], p=STEM["p"], relu=True)
    x = maxpool_3x3_s2(x)

    # residual basic blocks (skip + BN + ReLU fused into the second conv's epilogue)
    for bi, cfg in enumerate(BLOCKS):
        pre = f"blk{bi}_"
        s, ci, co = cfg["stride"], cfg["cin"], cfg["cout"]
        if s != 1 or ci != co:
            scd, shd = bn_affine(P[pre + "bnd_g"], P[pre + "bnd_b"],
                                 P[pre + "bnd_m"], P[pre + "bnd_v"])
            skip = conv_bn(x, P[pre + "wd"], scd, shd, k=1, s=s, p=0, relu=False)
        else:
            skip = x
        sc1, sh1 = bn_affine(P[pre + "bn1_g"], P[pre + "bn1_b"],
                             P[pre + "bn1_m"], P[pre + "bn1_v"])
        h = conv_bn(x, P[pre + "w1"], sc1, sh1, k=3, s=s, p=1, relu=True)
        sc2, sh2 = bn_affine(P[pre + "bn2_g"], P[pre + "bn2_b"],
                             P[pre + "bn2_m"], P[pre + "bn2_v"])
        x = conv_bn(h, P[pre + "w2"], sc2, sh2, k=3, s=1, p=1, relu=True, res=skip)

    # global avgpool + view(-1, end_bkbn_ch) + enc_mean / enc_logvar (one fused call)
    B, Hf, Wf, C = x.shape
    S = Hf * Wf
    pool_mat = (jnp.kron(jnp.eye(B, dtype=jnp.float32), jnp.ones((1, S), jnp.float32)) / S
                ).astype(jnp.bfloat16)                       # (B, B*S)
    out = avgpool_heads(x.reshape(B * S, C), pool_mat, P["heads_w"], P["heads_b"])
    mean = out[:, :HIDDEN_SIZE]
    log_var = out[:, HIDDEN_SIZE:2 * HIDDEN_SIZE]
    return mean, log_var


# ---------------------------- pure-JAX f32 reference (checker) ---------------------
def reference_forward(x_nchw, P):
    def conv(x, w, s, p):
        return jax.lax.conv_general_dilated(
            x, w, window_strides=(s, s), padding=[(p, p), (p, p)],
            dimension_numbers=("NCHW", "OIHW", "NCHW"))

    def bnorm(x, pre):
        sc, sh = bn_affine(P[pre + "_g"], P[pre + "_b"], P[pre + "_m"], P[pre + "_v"])
        return x * sc[None, :, None, None] + sh[None, :, None, None]

    x = x_nchw.astype(jnp.float32)
    x = jax.nn.relu(bnorm(conv(x, P["stem_w_oihw"], STEM["s"], STEM["p"]), "stem_bn"))
    x = jax.lax.reduce_window(x, -jnp.inf, jax.lax.max,
                              window_dimensions=(1, 1, 3, 3),
                              window_strides=(1, 1, 2, 2),
                              padding=((0, 0), (0, 0), (1, 1), (1, 1)))
    for bi, cfg in enumerate(BLOCKS):
        pre = f"blk{bi}_"
        s, ci, co = cfg["stride"], cfg["cin"], cfg["cout"]
        if s != 1 or ci != co:
            skip = bnorm(conv(x, P[pre + "wd_oihw"], s, 0), pre + "bnd")
        else:
            skip = x
        h = jax.nn.relu(bnorm(conv(x, P[pre + "w1_oihw"], s, 1), pre + "bn1"))
        y = bnorm(conv(h, P[pre + "w2_oihw"], 1, 1), pre + "bn2")
        x = jax.nn.relu(y + skip)
    feat = jnp.mean(x, axis=(2, 3))                          # (B, END_CH)
    mean = feat @ P["head_mean_w"].T + P["head_mean_b"]
    log_var = feat @ P["head_logvar_w"].T + P["head_logvar_b"]
    return mean, log_var


if __name__ == "__main__":
    key = jax.random.PRNGKey(0)
    pkey, xkey = jax.random.split(key)
    params = init_params(pkey)

    B = 2
    x = jax.random.normal(xkey, (B, 3, 32, 32), dtype=jnp.float32)

    mean, log_var = jax.block_until_ready(jax.jit(vencoder_forward)(x, params))
    assert mean.shape == (B, HIDDEN_SIZE), mean.shape
    assert log_var.shape == (B, HIDDEN_SIZE), log_var.shape

    mean_r, logvar_r = jax.block_until_ready(jax.jit(reference_forward)(x, params))
    err = float(jnp.maximum(jnp.max(jnp.abs(mean - mean_r)),
                            jnp.max(jnp.abs(log_var - logvar_r))))
    scale = float(jnp.maximum(jnp.max(jnp.abs(mean_r)),
                              jnp.max(jnp.abs(logvar_r)))) + 1e-6
    # bf16 operands / bf16 inter-layer activations with f32 accumulation & epilogue
    assert err <= 3e-2 * scale + 5e-3, (err, scale)

    print("KERNEL_OK")
</pallas_src>

<mosaic_0001>
module attributes {stable_mosaic.version = 11 : i64} {
  func.func @kernel(%arg0: i32, %arg1: memref<256x147xbf16, #tpu.memory_space<vmem>>, %arg2: memref<147x128xbf16, #tpu.memory_space<vmem>>, %arg3: memref<1x128xf32, #tpu.memory_space<vmem>>, %arg4: memref<1x128xf32, #tpu.memory_space<vmem>>, %arg5: memref<256x128xbf16, #tpu.memory_space<vmem>>) attributes {dimension_semantics = [#tpu.dimension_semantics<parallel>], iteration_bounds = array<i64: 2>, scalar_prefetch = 0 : i64, scratch_operands = 0 : i64, tpu.core_type = #tpu.core_type<tc>, window_params = [{transform_indices = @transform_0, window_bounds = array<i64: 256, 147>}, {pipeline_mode = #tpu.pipeline_mode<synchronous>, transform_indices = @transform_1, window_bounds = array<i64: 147, 128>}, {pipeline_mode = #tpu.pipeline_mode<synchronous>, transform_indices = @transform_2, window_bounds = array<i64: 1, 128>}, {pipeline_mode = #tpu.pipeline_mode<synchronous>, transform_indices = @transform_3, window_bounds = array<i64: 1, 128>}, {transform_indices = @transform_4, window_bounds = array<i64: 256, 128>}]} {
    %c0 = arith.constant 0 : index
    %c0_0 = arith.constant 0 : index
    %0 = vector.load %arg1[%c0, %c0_0] : memref<256x147xbf16, #tpu.memory_space<vmem>>, vector<256x147xbf16>
    %c0_1 = arith.constant 0 : index
    %c0_2 = arith.constant 0 : index
    %1 = vector.load %arg2[%c0_1, %c0_2] : memref<147x128xbf16, #tpu.memory_space<vmem>>, vector<147x128xbf16>
    %cst = arith.constant dense<0.000000e+00> : vector<256x128xf32>
    %2 = tpu.matmul %0, %1, %cst {dimension_numbers = #tpu.dot_dimension_numbers<[1], [0], [0], [1], [0, 0, 1, 1], [], []>} : vector<256x147xbf16>, vector<147x128xbf16>, vector<256x128xf32> -> vector<256x128xf32>
    %c0_3 = arith.constant 0 : index
    %c0_4 = arith.constant 0 : index
    %3 = vector.load %arg3[%c0_3, %c0_4] : memref<1x128xf32, #tpu.memory_space<vmem>>, vector<1x128xf32>
    %4 = vector.broadcast %3 : vector<1x128xf32> to vector<256x128xf32>
    %5 = arith.mulf %2, %4 : vector<256x128xf32>
    %c0_5 = arith.constant 0 : index
    %c0_6 = arith.constant 0 : index
    %6 = vector.load %arg4[%c0_5, %c0_6] : memref<1x128xf32, #tpu.memory_space<vmem>>, vector<1x128xf32>
    %7 = vector.broadcast %6 : vector<1x128xf32> to vector<256x128xf32>
    %8 = arith.addf %5, %7 : vector<256x128xf32>
    %cst_7 = arith.constant 0.000000e+00 : f32
    %9 = vector.broadcast %cst_7 : f32 to vector<256x128xf32>
    %10 = arith.maximumf %8, %9 : vector<256x128xf32>
    %11 = arith.truncf %10 : vector<256x128xf32> to vector<256x128xbf16>
    %c0_8 = arith.constant 0 : index
    %c0_9 = arith.constant 0 : index
    %12 = vector.load %arg5[%c0_8, %c0_9] : memref<256x128xbf16, #tpu.memory_space<vmem>>, vector<256x128xbf16>
    tpu.vector_store %arg5[%c0_8, %c0_9], %11 {strides = array<i32>} : memref<256x128xbf16, #tpu.memory_space<vmem>>, vector<256x128xbf16>,
    return
  }
  func.func @transform_0(%arg0: i32) -> (i32, i32) {
    %c0_i32 = arith.constant 0 : i32
    %c0_i32_0 = arith.constant 0 : i32
    return %arg0, %c0_i32 : i32, i32
  }
  func.func @transform_1(%arg0: i32) -> (i32, i32) {
    %c0_i32 = arith.constant 0 : i32
    %c0_i32_0 = arith.constant 0 : i32
    %c0_i32_1 = arith.constant 0 : i32
    return %c0_i32, %c0_i32_0 : i32, i32
  }
  func.func @transform_2(%arg0: i32) -> (i32, i32) {
    %c0_i32 = arith.constant 0 : i32
    %c0_i32_0 = arith.constant 0 : i32
    %c0_i32_1 = arith.constant 0 : i32
    return %c0_i32, %c0_i32_0 : i32, i32
  }
  func.func @transform_3(%arg0: i32) -> (i32, i32) {
    %c0_i32 = arith.constant 0 : i32
    %c0_i32_0 = arith.constant 0 : i32
    %c0_i32_1 = arith.constant 0 : i32
    return %c0_i32, %c0_i32_0 : i32, i32
  }
  func.func @transform_4(%arg0: i32) -> (i32, i32) {
    %c0_i32 = arith.constant 0 : i32
    %c0_i32_0 = arith.constant 0 : i32
    return %arg0, %c0_i32 : i32, i32
  }
}

module attributes {stable_mosaic.version = 11 : i64} {
  func.func @kernel(%arg0: i32, %arg1: memref<9x64x128xbf16, #tpu.memory_space<vmem>>, %arg2: memref<64x128xbf16, #tpu.memory_space<vmem>>) attributes {dimension_semantics = [#tpu.dimension_semantics<parallel>], iteration_bounds = array<i64: 2>, scalar_prefetch = 0 : i64, scratch_operands = 0 : i64, tpu.core_type = #tpu.core_type<tc>, window_params = [{transform_indices = @transform_0, window_bounds = array<i64: 9, 64, 128>}, {transform_indices = @transform_1, window_bounds = array<i64: 64, 128>}]} {
    %c0 = arith.constant 0 : index
    %c0_0 = arith.constant 0 : index
    %c0_1 = arith.constant 0 : index
    %0 = vector.load %arg1[%c0, %c0_0, %c0_1] : memref<9x64x128xbf16, #tpu.memory_space<vmem>>, vector<1x64x128xbf16>
    %1 = vector.shape_cast %0 : vector<1x64x128xbf16> to vector<64x128xbf16>
    %c1 = arith.constant 1 : index
    %c0_2 = arith.constant 0 : index
    %c0_3 = arith.constant 0 : index
    %2 = vector.load %arg1[%c1, %c0_2, %c0_3] : memref<9x64x128xbf16, #tpu.memory_space<vmem>>, vector<1x64x128xbf16>
    %3 = vector.shape_cast %2 : vector<1x64x128xbf16> to vector<64x128xbf16>
    %4 = arith.maximumf %1, %3 : vector<64x128xbf16>
    %c2 = arith.constant 2 : index
    %c0_4 = arith.constant 0 : index
    %c0_5 = arith.constant 0 : index
    %5 = vector.load %arg1[%c2, %c0_4, %c0_5] : memref<9x64x128xbf16, #tpu.memory_space<vmem>>, vector<1x64x128xbf16>
    %6 = vector.shape_cast %5 : vector<1x64x128xbf16> to vector<64x128xbf16>
    %7 = arith.maximumf %4, %6 : vector<64x128xbf16>
    %c3 = arith.constant 3 : index
    %c0_6 = arith.constant 0 : index
    %c0_7 = arith.constant 0 : index
    %8 = vector.load %arg1[%c3, %c0_6, %c0_7] : memref<9x64x128xbf16, #tpu.memory_space<vmem>>, vector<1x64x128xbf16>
    %9 = vector.shape_cast %8 : vector<1x64x128xbf16> to vector<64x128xbf16>
    %10 = arith.maximumf %7, %9 : vector<64x128xbf16>
    %c4 = arith.constant 4 : index
    %c0_8 = arith.constant 0 : index
    %c0_9 = arith.constant 0 : index
    %11 = vector.load %arg1[%c4, %c0_8, %c0_9] : memref<9x64x128xbf16, #tpu.memory_space<vmem>>, vector<1x64x128xbf16>
    %12 = vector.shape_cast %11 : vector<1x64x128xbf16> to vector<64x128xbf16>
    %13 = arith.maximumf %10, %12 : vector<64x128xbf16>
    %c5 = arith.constant 5 : index
    %c0_10 = arith.constant 0 : index
    %c0_11 = arith.constant 0 : index
    %14 = vector.load %arg1[%c5, %c0_10, %c0_11] : memref<9x64x128xbf16, #tpu.memory_space<vmem>>, vector<1x64x128xbf16>
    %15 = vector.shape_cast %14 : vector<1x64x128xbf16> to vector<64x128xbf16>
    %16 = arith.maximumf %13, %15 : vector<64x128xbf16>
    %c6 = arith.constant 6 : index
    %c0_12 = arith.constant 0 : index
    %c0_13 = arith.constant 0 : index
    %17 = vector.load %arg1[%c6, %c0_12, %c0_13] : memref<9x64x128xbf16, #tpu.memory_space<vmem>>, vector<1x64x128xbf16>
    %18 = vector.shape_cast %17 : vector<1x64x128xbf16> to vector<64x128xbf16>
    %19 = arith.maximumf %16, %18 : vector<64x128xbf16>
    %c7 = arith.constant 7 : index
    %c0_14 = arith.constant 0 : index
    %c0_15 = arith.constant 0 : index
    %20 = vector.load %arg1[%c7, %c0_14, %c0_15] : memref<9x64x128xbf16, #tpu.memory_space<vmem>>, vector<1x64x128xbf16>
    %21 = vector.shape_cast %20 : vector<1x64x128xbf16> to vector<64x128xbf16>
    %22 = arith.maximumf %19, %21 : vector<64x128xbf16>
    %c8 = arith.constant 8 : index
    %c0_16 = arith.constant 0 : index
    %c0_17 = arith.constant 0 : index
    %23 = vector.load %arg1[%c8, %c0_16, %c0_17] : memref<9x64x128xbf16, #tpu.memory_space<vmem>>, vector<1x64x128xbf16>
    %24 = vector.shape_cast %23 : vector<1x64x128xbf16> to vector<64x128xbf16>
    %25 = arith.maximumf %22, %24 : vector<64x128xbf16>
    %c0_18 = arith.constant 0 : index
    %c0_19 = arith.constant 0 : index
    %26 = vector.load %arg2[%c0_18, %c0_19] : memref<64x128xbf16, #tpu.memory_space<vmem>>, vector<64x128xbf16>
    tpu.vector_store %arg2[%c0_18, %c0_19], %25 {strides = array<i32>} : memref<64x128xbf16, #tpu.memory_space<vmem>>, vector<64x128xbf16>,
    return
  }
  func.func @transform_0(%arg0: i32) -> (i32, i32, i32) {
    %c0_i32 = arith.constant 0 : i32
    %c0_i32_0 = arith.constant 0 : i32
    %c0_i32_1 = arith.constant 0 : i32
    return %c0_i32, %arg0, %c0_i32_0 : i32, i32, i32
  }
  func.func @transform_1(%arg0: i32) -> (i32, i32) {
    %c0_i32 = arith.constant 0 : i32
    %c0_i32_0 = arith.constant 0 : i32
    return %arg0, %c0_i32 : i32, i32
  }
}

module attributes {stable_mosaic.version = 11 : i64} {
  func.func @kernel(%arg0: i32, %arg1: memref<64x1152xbf16, #tpu.memory_space<vmem>>, %arg2: memref<1152x128xbf16, #tpu.memory_space<vmem>>, %arg3: memref<1x128xf32, #tpu.memory_space<vmem>>, %arg4: memref<1x128xf32, #tpu.memory_space<vmem>>, %arg5: memref<64x128xbf16, #tpu.memory_space<vmem>>) attributes {dimension_semantics = [#tpu.dimension_semantics<parallel>], iteration_bounds = array<i64: 2>, scalar_prefetch = 0 : i64, scratch_operands = 0 : i64, tpu.core_type = #tpu.core_type<tc>, window_params = [{transform_indices = @transform_0, window_bounds = array<i64: 64, 1152>}, {pipeline_mode = #tpu.pipeline_mode<synchronous>, transform_indices = @transform_1, window_bounds = array<i64: 1152, 128>}, {pipeline_mode = #tpu.pipeline_mode<synchronous>, transform_indices = @transform_2, window_bounds = array<i64: 1, 128>}, {pipeline_mode = #tpu.pipeline_mode<synchronous>, transform_indices = @transform_3, window_bounds = array<i64: 1, 128>}, {transform_indices = @transform_4, window_bounds = array<i64: 64, 128>}]} {
    %c0 = arith.constant 0 : index
    %c0_0 = arith.constant 0 : index
    %0 = vector.load %arg1[%c0, %c0_0] : memref<64x1152xbf16, #tpu.memory_space<vmem>>, vector<64x1152xbf16>
    %c0_1 = arith.constant 0 : index
    %c0_2 = arith.constant 0 : index
    %1 = vector.load %arg2[%c0_1, %c0_2] : memref<1152x128xbf16, #tpu.memory_space<vmem>>, vector<1152x128xbf16>
    %cst = arith.constant dense<0.000000e+00> : vector<64x128xf32>
    %2 = tpu.matmul %0, %1, %cst {dimension_numbers = #tpu.dot_dimension_numbers<[1], [0], [0], [1], [0, 0, 1, 1], [], []>} : vector<64x1152xbf16>, vector<1152x128xbf16>, vector<64x128xf32> -> vector<64x128xf32>
    %c0_3 = arith.constant 0 : index
    %c0_4 = arith.constant 0 : index
    %3 = vector.load %arg3[%c0_3, %c0_4] : memref<1x128xf32, #tpu.memory_space<vmem>>, vector<1x128xf32>
    %4 = vector.broadcast %3 : vector<1x128xf32> to vector<64x128xf32>
    %5 = arith.mulf %2, %4 : vector<64x128xf32>
    %c0_5 = arith.constant 0 : index
    %c0_6 = arith.constant 0 : index
    %6 = vector.load %arg4[%c0_5, %c0_6] : memref<1x128xf32, #tpu.memory_space<vmem>>, vector<1x128xf32>
    %7 = vector.broadcast %6 : vector<1x128xf32> to vector<64x128xf32>
    %8 = arith.addf %5, %7 : vector<64x128xf32>
    %cst_7 = arith.constant 0.000000e+00 : f32
    %9 = vector.broadcast %cst_7 : f32 to vector<64x128xf32>
    %10 = arith.maximumf %8, %9 : vector<64x128xf32>
    %11 = arith.truncf %10 : vector<64x128xf32> to vector<64x128xbf16>
    %c0_8 = arith.constant 0 : index
    %c0_9 = arith.constant 0 : index
    %12 = vector.load %arg5[%c0_8, %c0_9] : memref<64x128xbf16, #tpu.memory_space<vmem>>, vector<64x128xbf16>
    tpu.vector_store %arg5[%c0_8, %c0_9], %11 {strides = array<i32>} : memref<64x128xbf16, #tpu.memory_space<vmem>>, vector<64x128xbf16>,
    return
  }
  func.func @transform_0(%arg0: i32) -> (i32, i32) {
    %c0_i32 = arith.constant 0 : i32
    %c0_i32_0 = arith.constant 0 : i32
    return %arg0, %c0_i32 : i32, i32
  }
  func.func @transform_1(%arg0: i32) -> (i32, i32) {
    %c0_i32 = arith.constant 0 : i32
    %c0_i32_0 = arith.constant 0 : i32
    %c0_i32_1 = arith.constant 0 : i32
    return %c0_i32, %c0_i32_0 : i32, i32
  }
  func.func @transform_2(%arg0: i32) -> (i32, i32) {
    %c0_i32 = arith.constant 0 : i32
    %c0_i32_0 = arith.constant 0 : i32
    %c0_i32_1 = arith.constant 0 : i32
    return %c0_i32, %c0_i32_0 : i32, i32
  }
  func.func @transform_3(%arg0: i32) -> (i32, i32) {
    %c0_i32 = arith.constant 0 : i32
    %c0_i32_0 = arith.constant 0 : i32
    %c0_i32_1 = arith.constant 0 : i32
    return %c0_i32, %c0_i32_0 : i32, i32
  }
  func.func @transform_4(%arg0: i32) -> (i32, i32) {
    %c0_i32 = arith.constant 0 : i32
    %c0_i32_0 = arith.constant 0 : i32
    return %arg0, %c0_i32 : i32, i32
  }
}

module attributes {stable_mosaic.version = 11 : i64} {
  func.func @kernel(%arg0: i32, %arg1: memref<64x1152xbf16, #tpu.memory_space<vmem>>, %arg2: memref<1152x128xbf16, #tpu.memory_space<vmem>>, %arg3: memref<1x128xf32, #tpu.memory_space<vmem>>, %arg4: memref<1x128xf32, #tpu.memory_space<vmem>>, %arg5: memref<64x128xbf16, #tpu.memory_space<vmem>>, %arg6: memref<64x128xbf16, #tpu.memory_space<vmem>>) attributes {dimension_semantics = [#tpu.dimension_semantics<parallel>], iteration_bounds = array<i64: 2>, scalar_prefetch = 0 : i64, scratch_operands = 0 : i64, tpu.core_type = #tpu.core_type<tc>, window_params = [{transform_indices = @transform_0, window_bounds = array<i64: 64, 1152>}, {pipeline_mode = #tpu.pipeline_mode<synchronous>, transform_indices = @transform_1, window_bounds = array<i64: 1152, 128>}, {pipeline_mode = #tpu.pipeline_mode<synchronous>, transform_indices = @transform_2, window_bounds = array<i64: 1, 128>}, {pipeline_mode = #tpu.pipeline_mode<synchronous>, transform_indices = @transform_3, window_bounds = array<i64: 1, 128>}, {transform_indices = @transform_4, window_bounds = array<i64: 64, 128>}, {transform_indices = @transform_5, window_bounds = array<i64: 64, 128>}]} {
    %c0 = arith.constant 0 : index
    %c0_0 = arith.constant 0 : index
    %0 = vector.load %arg1[%c0, %c0_0] : memref<64x1152xbf16, #tpu.memory_space<vmem>>, vector<64x1152xbf16>
    %c0_1 = arith.constant 0 : index
    %c0_2 = arith.constant 0 : index
    %1 = vector.load %arg2[%c0_1, %c0_2] : memref<1152x128xbf16, #tpu.memory_space<vmem>>, vector<1152x128xbf16>
    %cst = arith.constant dense<0.000000e+00> : vector<64x128xf32>
    %2 = tpu.matmul %0, %1, %cst {dimension_numbers = #tpu.dot_dimension_numbers<[1], [0], [0], [1], [0, 0, 1, 1], [], []>} : vector<64x1152xbf16>, vector<1152x128xbf16>, vector<64x128xf32> -> vector<64x128xf32>
    %c0_3 = arith.constant 0 : index
    %c0_4 = arith.constant 0 : index
    %3 = vector.load %arg3[%c0_3, %c0_4] : memref<1x128xf32, #tpu.memory_space<vmem>>, vector<1x128xf32>
    %4 = vector.broadcast %3 : vector<1x128xf32> to vector<64x128xf32>
    %5 = arith.mulf %2, %4 : vector<64x128xf32>
    %c0_5 = arith.constant 0 : index
    %c0_6 = arith.constant 0 : index
    %6 = vector.load %arg4[%c0_5, %c0_6] : memref<1x128xf32, #tpu.memory_space<vmem>>, vector<1x128xf32>
    %7 = vector.broadcast %6 : vector<1x128xf32> to vector<64x128xf32>
    %8 = arith.addf %5, %7 : vector<64x128xf32>
    %c0_7 = arith.constant 0 : index
    %c0_8 = arith.constant 0 : index
    %9 = vector.load %arg5[%c0_7, %c0_8] : memref<64x128xbf16, #tpu.memory_space<vmem>>, vector<64x128xbf16>
    %10 = arith.extf %9 : vector<64x128xbf16> to vector<64x128xf32>
    %11 = arith.addf %8, %10 : vector<64x128xf32>
    %cst_9 = arith.constant 0.000000e+00 : f32
    %12 = vector.broadcast %cst_9 : f32 to vector<64x128xf32>
    %13 = arith.maximumf %11, %12 : vector<64x128xf32>
    %14 = arith.truncf %13 : vector<64x128xf32> to vector<64x128xbf16>
    %c0_10 = arith.constant 0 : index
    %c0_11 = arith.constant 0 : index
    %15 = vector.load %arg6[%c0_10, %c0_11] : memref<64x128xbf16, #tpu.memory_space<vmem>>, vector<64x128xbf16>
    tpu.vector_store %arg6[%c0_10, %c0_11], %14 {strides = array<i32>} : memref<64x128xbf16, #tpu.memory_space<vmem>>, vector<64x128xbf16>,
    return
  }
  func.func @transform_0(%arg0: i32) -> (i32, i32) {
    %c0_i32 = arith.constant 0 : i32
    %c0_i32_0 = arith.constant 0 : i32
    return %arg0, %c0_i32 : i32, i32
  }
  func.func @transform_1(%arg0: i32) -> (i32, i32) {
    %c0_i32 = arith.constant 0 : i32
    %c0_i32_0 = arith.constant 0 : i32
    %c0_i32_1 = arith.constant 0 : i32
    return %c0_i32, %c0_i32_0 : i32, i32
  }
  func.func @transform_2(%arg0: i32) -> (i32, i32) {
    %c0_i32 = arith.constant 0 : i32
    %c0_i32_0 = arith.constant 0 : i32
    %c0_i32_1 = arith.constant 0 : i32
    return %c0_i32, %c0_i32_0 : i32, i32
  }
  func.func @transform_3(%arg0: i32) -> (i32, i32) {
    %c0_i32 = arith.constant 0 : i32
    %c0_i32_0 = arith.constant 0 : i32
    %c0_i32_1 = arith.constant 0 : i32
    return %c0_i32, %c0_i32_0 : i32, i32
  }
  func.func @transform_4(%arg0: i32) -> (i32, i32) {
    %c0_i32 = arith.constant 0 : i32
    %c0_i32_0 = arith.constant 0 : i32
    return %arg0, %c0_i32 : i32, i32
  }
  func.func @transform_5(%arg0: i32) -> (i32, i32) {
    %c0_i32 = arith.constant 0 : i32
    %c0_i32_0 = arith.constant 0 : i32
    return %arg0, %c0_i32 : i32, i32
  }
}

module attributes {stable_mosaic.version = 11 : i64} {
  func.func @kernel(%arg0: i32, %arg1: memref<16x1152xbf16, #tpu.memory_space<vmem>>, %arg2: memref<1152x256xbf16, #tpu.memory_space<vmem>>, %arg3: memref<1x256xf32, #tpu.memory_space<vmem>>, %arg4: memref<1x256xf32, #tpu.memory_space<vmem>>, %arg5: memref<16x256xbf16, #tpu.memory_space<vmem>>) attributes {dimension_semantics = [#tpu.dimension_semantics<parallel>], iteration_bounds = array<i64: 2>, scalar_prefetch = 0 : i64, scratch_operands = 0 : i64, tpu.core_type = #tpu.core_type<tc>, window_params = [{transform_indices = @transform_0, window_bounds = array<i64: 16, 1152>}, {pipeline_mode = #tpu.pipeline_mode<synchronous>, transform_indices = @transform_1, window_bounds = array<i64: 1152, 256>}, {pipeline_mode = #tpu.pipeline_mode<synchronous>, transform_indices = @transform_2, window_bounds = array<i64: 1, 256>}, {pipeline_mode = #tpu.pipeline_mode<synchronous>, transform_indices = @transform_3, window_bounds = array<i64: 1, 256>}, {transform_indices = @transform_4, window_bounds = array<i64: 16, 256>}]} {
    %c0 = arith.constant 0 : index
    %c0_0 = arith.constant 0 : index
    %0 = vector.load %arg1[%c0, %c0_0] : memref<16x1152xbf16, #tpu.memory_space<vmem>>, vector<16x1152xbf16>
    %c0_1 = arith.constant 0 : index
    %c0_2 = arith.constant 0 : index
    %1 = vector.load %arg2[%c0_1, %c0_2] : memref<1152x256xbf16, #tpu.memory_space<vmem>>, vector<1152x256xbf16>
    %cst = arith.constant dense<0.000000e+00> : vector<16x256xf32>
    %2 = tpu.matmul %0, %1, %cst {dimension_numbers = #tpu.dot_dimension_numbers<[1], [0], [0], [1], [0, 0, 1, 1], [], []>} : vector<16x1152xbf16>, vector<1152x256xbf16>, vector<16x256xf32> -> vector<16x256xf32>
    %c0_3 = arith.constant 0 : index
    %c0_4 = arith.constant 0 : index
    %3 = vector.load %arg3[%c0_3, %c0_4] : memref<1x256xf32, #tpu.memory_space<vmem>>, vector<1x256xf32>
    %4 = vector.broadcast %3 : vector<1x256xf32> to vector<16x256xf32>
    %5 = arith.mulf %2, %4 : vector<16x256xf32>
    %c0_5 = arith.constant 0 : index
    %c0_6 = arith.constant 0 : index
    %6 = vector.load %arg4[%c0_5, %c0_6] : memref<1x256xf32, #tpu.memory_space<vmem>>, vector<1x256xf32>
    %7 = vector.broadcast %6 : vector<1x256xf32> to vector<16x256xf32>
    %8 = arith.addf %5, %7 : vector<16x256xf32>
    %cst_7 = arith.constant 0.000000e+00 : f32
    %9 = vector.broadcast %cst_7 : f32 to vector<16x256xf32>
    %10 = arith.maximumf %8, %9 : vector<16x256xf32>
    %11 = arith.truncf %10 : vector<16x256xf32> to vector<16x256xbf16>
    %c0_8 = arith.constant 0 : index
    %c0_9 = arith.constant 0 : index
    %12 = vector.load %arg5[%c0_8, %c0_9] : memref<16x256xbf16, #tpu.memory_space<vmem>>, vector<16x256xbf16>
    tpu.vector_store %arg5[%c0_8, %c0_9], %11 {strides = array<i32>} : memref<16x256xbf16, #tpu.memory_space<vmem>>, vector<16x256xbf16>,
    return
  }
  func.func @transform_0(%arg0: i32) -> (i32, i32) {
    %c0_i32 = arith.constant 0 : i32
    %c0_i32_0 = arith.constant 0 : i32
    return %arg0, %c0_i32 : i32, i32
  }
  func.func @transform_1(%arg0: i32) -> (i32, i32) {
    %c0_i32 = arith.constant 0 : i32
    %c0_i32_0 = arith.constant 0 : i32
    %c0_i32_1 = arith.constant 0 : i32
    return %c0_i32, %c0_i32_0 : i32, i32
  }
  func.func @transform_2(%arg0: i32) -> (i32, i32) {
    %c0_i32 = arith.constant 0 : i32
    %c0_i32_0 = arith.constant 0 : i32
    %c0_i32_1 = arith.constant 0 : i32
    return %c0_i32, %c0_i32_0 : i32, i32
  }
  func.func @transform_3(%arg0: i32) -> (i32, i32) {
    %c0_i32 = arith.constant 0 : i32
    %c0_i32_0 = arith.constant 0 : i32
    %c0_i32_1 = arith.constant 0 : i32
    return %c0_i32, %c0_i32_0 : i32, i32
  }
  func.func @transform_4(%arg0: i32) -> (i32, i32) {
    %c0_i32 = arith.constant 0 : i32
    %c0_i32_0 = arith.constant 0 : i32
    return %arg0, %c0_i32 : i32, i32
  }
}

module attributes {stable_mosaic.version = 11 : i64} {
  func.func @kernel(%arg0: i32, %arg1: memref<16x128xbf16, #tpu.memory_space<vmem>>, %arg2: memref<128x256xbf16, #tpu.memory_space<vmem>>, %arg3: memref<1x256xf32, #tpu.memory_space<vmem>>, %arg4: memref<1x256xf32, #tpu.memory_space<vmem>>, %arg5: memref<16x256xbf16, #tpu.memory_space<vmem>>) attributes {dimension_semantics = [#tpu.dimension_semantics<parallel>], iteration_bounds = array<i64: 2>, scalar_prefetch = 0 : i64, scratch_operands = 0 : i64, tpu.core_type = #tpu.core_type<tc>, window_params = [{transform_indices = @transform_0, window_bounds = array<i64: 16, 128>}, {pipeline_mode = #tpu.pipeline_mode<synchronous>, transform_indices = @transform_1, window_bounds = array<i64: 128, 256>}, {pipeline_mode = #tpu.pipeline_mode<synchronous>, transform_indices = @transform_2, window_bounds = array<i64: 1, 256>}, {pipeline_mode = #tpu.pipeline_mode<synchronous>, transform_indices = @transform_3, window_bounds = array<i64: 1, 256>}, {transform_indices = @transform_4, window_bounds = array<i64: 16, 256>}]} {
    %c0 = arith.constant 0 : index
    %c0_0 = arith.constant 0 : index
    %0 = vector.load %arg1[%c0, %c0_0] : memref<16x128xbf16, #tpu.memory_space<vmem>>, vector<16x128xbf16>
    %c0_1 = arith.constant 0 : index
    %c0_2 = arith.constant 0 : index
    %1 = vector.load %arg2[%c0_1, %c0_2] : memref<128x256xbf16, #tpu.memory_space<vmem>>, vector<128x256xbf16>
    %cst = arith.constant dense<0.000000e+00> : vector<16x256xf32>
    %2 = tpu.matmul %0, %1, %cst {dimension_numbers = #tpu.dot_dimension_numbers<[1], [0], [0], [1], [0, 0, 1, 1], [], []>} : vector<16x128xbf16>, vector<128x256xbf16>, vector<16x256xf32> -> vector<16x256xf32>
    %c0_3 = arith.constant 0 : index
    %c0_4 = arith.constant 0 : index
    %3 = vector.load %arg3[%c0_3, %c0_4] : memref<1x256xf32, #tpu.memory_space<vmem>>, vector<1x256xf32>
    %4 = vector.broadcast %3 : vector<1x256xf32> to vector<16x256xf32>
    %5 = arith.mulf %2, %4 : vector<16x256xf32>
    %c0_5 = arith.constant 0 : index
    %c0_6 = arith.constant 0 : index
    %6 = vector.load %arg4[%c0_5, %c0_6] : memref<1x256xf32, #tpu.memory_space<vmem>>, vector<1x256xf32>
    %7 = vector.broadcast %6 : vector<1x256xf32> to vector<16x256xf32>
    %8 = arith.addf %5, %7 : vector<16x256xf32>
    %9 = arith.truncf %8 : vector<16x256xf32> to vector<16x256xbf16>
    %c0_7 = arith.constant 0 : index
    %c0_8 = arith.constant 0 : index
    %10 = vector.load %arg5[%c0_7, %c0_8] : memref<16x256xbf16, #tpu.memory_space<vmem>>, vector<16x256xbf16>
    tpu.vector_store %arg5[%c0_7, %c0_8], %9 {strides = array<i32>} : memref<16x256xbf16, #tpu.memory_space<vmem>>, vector<16x256xbf16>,
    return
  }
  func.func @transform_0(%arg0: i32) -> (i32, i32) {
    %c0_i32 = arith.constant 0 : i32
    %c0_i32_0 = arith.constant 0 : i32
    return %arg0, %c0_i32 : i32, i32
  }
  func.func @transform_1(%arg0: i32) -> (i32, i32) {
    %c0_i32 = arith.constant 0 : i32
    %c0_i32_0 = arith.constant 0 : i32
    %c0_i32_1 = arith.constant 0 : i32
    return %c0_i32, %c0_i32_0 : i32, i32
  }
  func.func @transform_2(%arg0: i32) -> (i32, i32) {
    %c0_i32 = arith.constant 0 : i32
    %c0_i32_0 = arith.constant 0 : i32
    %c0_i32_1 = arith.constant 0 : i32
    return %c0_i32, %c0_i32_0 : i32, i32
  }
  func.func @transform_3(%arg0: i32) -> (i32, i32) {
    %c0_i32 = arith.constant 0 : i32
    %c0_i32_0 = arith.constant 0 : i32
    %c0_i32_1 = arith.constant 0 : i32
    return %c0_i32, %c0_i32_0 : i32, i32
  }
  func.func @transform_4(%arg0: i32) -> (i32, i32) {
    %c0_i32 = arith.constant 0 : i32
    %c0_i32_0 = arith.constant 0 : i32
    return %arg0, %c0_i32 : i32, i32
  }
}

module attributes {stable_mosaic.version = 11 : i64} {
  func.func @kernel(%arg0: i32, %arg1: memref<2x32xbf16, #tpu.memory_space<vmem>>, %arg2: memref<32x256xbf16, #tpu.memory_space<vmem>>, %arg3: memref<256x128xbf16, #tpu.memory_space<vmem>>, %arg4: memref<1x128xf32, #tpu.memory_space<vmem>>, %arg5: memref<2x128xf32, #tpu.memory_space<vmem>>) attributes {dimension_semantics = [#tpu.dimension_semantics<arbitrary>], iteration_bounds = array<i64: 1>, scalar_prefetch = 0 : i64, scratch_operands = 0 : i64, tpu.core_type = #tpu.core_type<tc>, window_params = [{pipeline_mode = #tpu.pipeline_mode<synchronous>, transform_indices = @transform_0, window_bounds = array<i64: 2, 32>}, {pipeline_mode = #tpu.pipeline_mode<synchronous>, transform_indices = @transform_1, window_bounds = array<i64: 32, 256>}, {pipeline_mode = #tpu.pipeline_mode<synchronous>, transform_indices = @transform_2, window_bounds = array<i64: 256, 128>}, {pipeline_mode = #tpu.pipeline_mode<synchronous>, transform_indices = @transform_3, window_bounds = array<i64: 1, 128>}, {pipeline_mode = #tpu.pipeline_mode<synchronous>, transform_indices = @transform_4, window_bounds = array<i64: 2, 128>}]} {
    %c0 = arith.constant 0 : index
    %c0_0 = arith.constant 0 : index
    %0 = vector.load %arg1[%c0, %c0_0] : memref<2x32xbf16, #tpu.memory_space<vmem>>, vector<2x32xbf16>
    %c0_1 = arith.constant 0 : index
    %c0_2 = arith.constant 0 : index
    %1 = vector.load %arg2[%c0_1, %c0_2] : memref<32x256xbf16, #tpu.memory_space<vmem>>, vector<32x256xbf16>
    %cst = arith.constant dense<0.000000e+00> : vector<2x256xf32>
    %2 = tpu.matmul %0, %1, %cst {dimension_numbers = #tpu.dot_dimension_numbers<[1], [0], [0], [1], [0, 0, 1, 1], [], []>} : vector<2x32xbf16>, vector<32x256xbf16>, vector<2x256xf32> -> vector<2x256xf32>
    %3 = arith.truncf %2 : vector<2x256xf32> to vector<2x256xbf16>
    %c0_3 = arith.constant 0 : index
    %c0_4 = arith.constant 0 : index
    %4 = vector.load %arg3[%c0_3, %c0_4] : memref<256x128xbf16, #tpu.memory_space<vmem>>, vector<256x128xbf16>
    %cst_5 = arith.constant dense<0.000000e+00> : vector<2x128xf32>
    %5 = tpu.matmul %3, %4, %cst_5 {dimension_numbers = #tpu.dot_dimension_numbers<[1], [0], [0], [1], [0, 0, 1, 1], [], []>} : vector<2x256xbf16>, vector<256x128xbf16>, vector<2x128xf32> -> vector<2x128xf32>
    %c0_6 = arith.constant 0 : index
    %c0_7 = arith.constant 0 : index
    %6 = vector.load %arg4[%c0_6, %c0_7] : memref<1x128xf32, #tpu.memory_space<vmem>>, vector<1x128xf32>
    %7 = vector.broadcast %6 : vector<1x128xf32> to vector<2x128xf32>
    %8 = arith.addf %5, %7 : vector<2x128xf32>
    %c0_8 = arith.constant 0 : index
    %c0_9 = arith.constant 0 : index
    %9 = vector.load %arg5[%c0_8, %c0_9] : memref<2x128xf32, #tpu.memory_space<vmem>>, vector<2x128xf32>
    tpu.vector_store %arg5[%c0_8, %c0_9], %8 {strides = array<i32>} : memref<2x128xf32, #tpu.memory_space<vmem>>, vector<2x128xf32>,
    return
  }
  func.func @transform_0(%arg0: i32) -> (i32, i32) {
    %c0_i32 = arith.constant 0 : i32
    %c0_i32_0 = arith.constant 0 : i32
    %c0_i32_1 = arith.constant 0 : i32
    return %c0_i32, %c0_i32_0 : i32, i32
  }
  func.func @transform_1(%arg0: i32) -> (i32, i32) {
    %c0_i32 = arith.constant 0 : i32
    %c0_i32_0 = arith.constant 0 : i32
    %c0_i32_1 = arith.constant 0 : i32
    return %c0_i32, %c0_i32_0 : i32, i32
  }
  func.func @transform_2(%arg0: i32) -> (i32, i32) {
    %c0_i32 = arith.constant 0 : i32
    %c0_i32_0 = arith.constant 0 : i32
    %c0_i32_1 = arith.constant 0 : i32
    return %c0_i32, %c0_i32_0 : i32, i32
  }
  func.func @transform_3(%arg0: i32) -> (i32, i32) {
    %c0_i32 = arith.constant 0 : i32
    %c0_i32_0 = arith.constant 0 : i32
    %c0_i32_1 = arith.constant 0 : i32
    return %c0_i32, %c0_i32_0 : i32, i32
  }
  func.func @transform_4(%arg0: i32) -> (i32, i32) {
    %c0_i32 = arith.constant 0 : i32
    %c0_i32_0 = arith.constant 0 : i32
    %c0_i32_1 = arith.constant 0 : i32
    return %c0_i32, %c0_i32_0 : i32, i32
  }
}

module attributes {stable_mosaic.version = 11 : i64} {
  func.func @kernel(%arg0: i32, %arg1: memref<16x2304xbf16, #tpu.memory_space<vmem>>, %arg2: memref<2304x256xbf16, #tpu.memory_space<vmem>>, %arg3: memref<1x256xf32, #tpu.memory_space<vmem>>, %arg4: memref<1x256xf32, #tpu.memory_space<vmem>>, %arg5: memref<16x256xbf16, #tpu.memory_space<vmem>>, %arg6: memref<16x256xbf16, #tpu.memory_space<vmem>>) attributes {dimension_semantics = [#tpu.dimension_semantics<parallel>], iteration_bounds = array<i64: 2>, scalar_prefetch = 0 : i64, scratch_operands = 0 : i64, tpu.core_type = #tpu.core_type<tc>, window_params = [{transform_indices = @transform_0, window_bounds = array<i64: 16, 2304>}, {pipeline_mode = #tpu.pipeline_mode<synchronous>, transform_indices = @transform_1, window_bounds = array<i64: 2304, 256>}, {pipeline_mode = #tpu.pipeline_mode<synchronous>, transform_indices = @transform_2, window_bounds = array<i64: 1, 256>}, {pipeline_mode = #tpu.pipeline_mode<synchronous>, transform_indices = @transform_3, window_bounds = array<i64: 1, 256>}, {transform_indices = @transform_4, window_bounds = array<i64: 16, 256>}, {transform_indices = @transform_5, window_bounds = array<i64: 16, 256>}]} {
    %c0 = arith.constant 0 : index
    %c0_0 = arith.constant 0 : index
    %0 = vector.load %arg1[%c0, %c0_0] : memref<16x2304xbf16, #tpu.memory_space<vmem>>, vector<16x2304xbf16>
    %c0_1 = arith.constant 0 : index
    %c0_2 = arith.constant 0 : index
    %1 = vector.load %arg2[%c0_1, %c0_2] : memref<2304x256xbf16, #tpu.memory_space<vmem>>, vector<2304x256xbf16>
    %cst = arith.constant dense<0.000000e+00> : vector<16x256xf32>
    %2 = tpu.matmul %0, %1, %cst {dimension_numbers = #tpu.dot_dimension_numbers<[1], [0], [0], [1], [0, 0, 1, 1], [], []>} : vector<16x2304xbf16>, vector<2304x256xbf16>, vector<16x256xf32> -> vector<16x256xf32>
    %c0_3 = arith.constant 0 : index
    %c0_4 = arith.constant 0 : index
    %3 = vector.load %arg3[%c0_3, %c0_4] : memref<1x256xf32, #tpu.memory_space<vmem>>, vector<1x256xf32>
    %4 = vector.broadcast %3 : vector<1x256xf32> to vector<16x256xf32>
    %5 = arith.mulf %2, %4 : vector<16x256xf32>
    %c0_5 = arith.constant 0 : index
    %c0_6 = arith.constant 0 : index
    %6 = vector.load %arg4[%c0_5, %c0_6] : memref<1x256xf32, #tpu.memory_space<vmem>>, vector<1x256xf32>
    %7 = vector.broadcast %6 : vector<1x256xf32> to vector<16x256xf32>
    %8 = arith.addf %5, %7 : vector<16x256xf32>
    %c0_7 = arith.constant 0 : index
    %c0_8 = arith.constant 0 : index
    %9 = vector.load %arg5[%c0_7, %c0_8] : memref<16x256xbf16, #tpu.memory_space<vmem>>, vector<16x256xbf16>
    %10 = arith.extf %9 : vector<16x256xbf16> to vector<16x256xf32>
    %11 = arith.addf %8, %10 : vector<16x256xf32>
    %cst_9 = arith.constant 0.000000e+00 : f32
    %12 = vector.broadcast %cst_9 : f32 to vector<16x256xf32>
    %13 = arith.maximumf %11, %12 : vector<16x256xf32>
    %14 = arith.truncf %13 : vector<16x256xf32> to vector<16x256xbf16>
    %c0_10 = arith.constant 0 : index
    %c0_11 = arith.constant 0 : index
    %15 = vector.load %arg6[%c0_10, %c0_11] : memref<16x256xbf16, #tpu.memory_space<vmem>>, vector<16x256xbf16>
    tpu.vector_store %arg6[%c0_10, %c0_11], %14 {strides = array<i32>} : memref<16x256xbf16, #tpu.memory_space<vmem>>, vector<16x256xbf16>,
    return
  }
  func.func @transform_0(%arg0: i32) -> (i32, i32) {
    %c0_i32 = arith.constant 0 : i32
    %c0_i32_0 = arith.constant 0 : i32
    return %arg0, %c0_i32 : i32, i32
  }
  func.func @transform_1(%arg0: i32) -> (i32, i32) {
    %c0_i32 = arith.constant 0 : i32
    %c0_i32_0 = arith.constant 0 : i32
    %c0_i32_1 = arith.constant 0 : i32
    return %c0_i32, %c0_i32_0 : i32, i32
  }
  func.func @transform_2(%arg0: i32) -> (i32, i32) {
    %c0_i32 = arith.constant 0 : i32
    %c0_i32_0 = arith.constant 0 : i32
    %c0_i32_1 = arith.constant 0 : i32
    return %c0_i32, %c0_i32_0 : i32, i32
  }
  func.func @transform_3(%arg0: i32) -> (i32, i32) {
    %c0_i32 = arith.constant 0 : i32
    %c0_i32_0 = arith.constant 0 : i32
    %c0_i32_1 = arith.constant 0 : i32
    return %c0_i32, %c0_i32_0 : i32, i32
  }
  func.func @transform_4(%arg0: i32) -> (i32, i32) {
    %c0_i32 = arith.constant 0 : i32
    %c0_i32_0 = arith.constant 0 : i32
    return %arg0, %c0_i32 : i32, i32
  }
  func.func @transform_5(%arg0: i32) -> (i32, i32) {
    %c0_i32 = arith.constant 0 : i32
    %c0_i32_0 = arith.constant 0 : i32
    return %arg0, %c0_i32 : i32, i32
  }
}

</mosaic_0001>

<bundles_post_ra>
// kernel: vencoder_forward.8
= control target key start
LH: loop header
LB: loop body
LE: loop exit
PB: predicated region body
PF: predicated region fallthrough
CT: control target
= control target key end

     0   :  { %s1355_s15 = smov 0   ;;  %s1548_s0 = inlined_call_operand.vmem [shape: bf16[512,147], index: 0, kind: input, shape index: {}]   ;;  %s1549_s1 = inlined_call_operand.vmem [shape: bf16[147,128], index: 1, kind: input, shape index: {}]   ;;  %s1550_s2 = inlined_call_operand.vmem [shape: f32[1,128], index: 2, kind: input, shape index: {}]   ;;  %s1551_s3 = inlined_call_operand.vmem [shape: f32[1,128], index: 3, kind: input, shape index: {}]   ;;  %s1552_s4 = inlined_call_operand.vmem [shape: bf16[512,128], index: 4, kind: output, shape index: {}]  }
   0x1 LB: > { %s1000_s16 = sadd.s32 4294967295, %s1326_s15   ;;  %p1004_p0 = scmp.ge.s32.totalorder %s1326_s15, 1  ;;  %s1326_s15 = sphi %s1355_s15, %s14_s15  }
   0x2   : > { %p164_p1 = scmp.lt.s32.totalorder %s1326_s15, 3 }
   0x4   : > { %p165_p2 = pnand %p1004_p0, %p164_p1 }
   0x5   : > { %s1005_s23 = sshll.u32 (!%p165_p2), %s1000_s16, 5 }
   0x6   : > { %168 = sbr.rel (%p165_p2) target bundleno = 314 (0x13a), region = 36  ;;  %p192_p3 = scmp.lt.s32.totalorder (!%p165_p2), %s1005_s23, 63 }
   0xb   : > { %v1262_v0 = vld [vmem:[%s1549_s1 + $0x38] sm:$0xff]   ;;  %v1328_v1 = vmov 0   ;;  %v1263_v2 = vld [vmem:[%s1549_s1 + $0x30] sm:$0xff]   ;;  %v1264_v3 = vld [vmem:[%s1549_s1 + $0x28] sm:$0xff]   ;;  %s1554_s23 = smov (!%p192_p3, %s1005_s23), 63  ;;  %vm457_vm0 = vcmask 154624  }
   0xc   : > { %513 = vmatprep.subr.bf16.mxu0 %v1328_v1  ;;  %1232 = vmatprep.subr.bf16.mxu1 %v1328_v1  ;;  %v1265_v4 = vld [vmem:[%s1549_s1 + $0x20] sm:$0xff]   ;;  %s1104_s26 = sshll.u32 %s1554_s23, 3  ;;  %v1266_v5 = vld [vmem:[%s1549_s1 + $0x18] sm:$0xff]   ;;  %v1267_v8 = vld [vmem:[%s1549_s1 + $0x10] sm:$0xff]   ;;  %vm506_vm1 = vcmask 1040384   ;;  %vm507_vm2 = vcmask 1041408  }
   0xd   : > { %514 = vmatpush1.bf16.msra.mxu0 %v1262_v0  ;;  %1242 = vmatpush1.bf16.msra.mxu1 %v1262_v0  ;;  %s1381_s29 = scalar_lea.vmem %s1548_s0, %s1104_s26  ;;  %v1268_v9 = vld [vmem:[%s1549_s1 + $0x8] sm:$0xff]   ;;  %v1329_v10 = vmov 65535   ;;  %v1269_v12 = vld [vmem:[%s1549_s1] sm:$0xff]   ;;  %s1009_s21 = sshll.u32 %s1554_s23, 2 }
   0xe   : > { %515 = vmatprep.subr.bf16.mxu0 %v1328_v1  ;;  %1233 = vmatprep.subr.bf16.mxu1 %v1328_v1  ;;  %v1274_v6 = vld [vmem:[%s1381_s29 + $0x4] ss:$8 sps:$4 sm:$0xff]   ;;  %v508_v11 = vsel %vm506_vm1, 4294967295, %v1329_v10  ;;  %v1270_v13 = vld [vmem:[%s1549_s1 + $0x48] ss:$0 sps:$4 sm:$0x33]   ;;  %s1473_s25 = scalar_lea.vmem %s1552_s4, %s1009_s21 }
   0xf   : > { %v1277_v7 = vld [vmem:[%s1381_s29 + $0x84] ss:$8 sps:$4 sm:$0xff]   ;;  %1052 = vmatprep.mubr.msk.bf16.mxu0 %vm457_vm0, %v1274_v6  ;;  %v509_v14 = vsel %vm507_vm2, %v508_v11, 0  ;;  %v1272_v17 = vld [vmem:[%s1381_s29] ss:$8 sps:$4 sm:$0xff]  }
  0x10   : > { %1060 = vmatprep.mubr.msk.bf16.mxu1 %vm457_vm0, %v1277_v7  ;;  %v511_v15 = vand.u32 %v1270_v13, %v509_v14  ;;  %v1271_v16 = vld [vmem:[%s1549_s1 + $0x40] sm:$0xff]   ;;  %v1278_v19 = vld [vmem:[%s1381_s29 + $0x14] ss:$8 sps:$4 sm:$0xff]   ;;  %v1282_v21 = vld [vmem:[%s1381_s29 + $0x10] ss:$8 sps:$4 sm:$0xff]  }
  0x11   : > { %516 = vmatpush1.bf16.msra.mxu0 %v1263_v2  ;;  %1243 = vmatpush1.bf16.msra.mxu1 %v1263_v2  ;;  %v1275_v18 = vld [vmem:[%s1381_s29 + $0x80] ss:$8 sps:$4 sm:$0xff]   ;;  %v1280_v20 = vld [vmem:[%s1381_s29 + $0x94] ss:$8 sps:$4 sm:$0xff]   ;;  %v1283_v22 = vld [vmem:[%s1381_s29 + $0x90] ss:$8 sps:$4 sm:$0xff]  }
  0x12   : > { %517 = vmatprep.subr.bf16.mxu0 %v1328_v1  ;;  %1234 = vmatprep.subr.bf16.mxu1 %v1328_v1  ;;  %v1284_v23 = vld [vmem:[%s1381_s29 + $0x24] ss:$8 sps:$4 sm:$0xff]   ;;  %v1288_v25 = vld [vmem:[%s1381_s29 + $0x20] ss:$8 sps:$4 sm:$0xff]   ;;  %v1290_v27 = vld [vmem:[%s1381_s29 + $0x34] ss:$8 sps:$4 sm:$0xff]  }
  0x13   : > { %v1286_v24 = vld [vmem:[%s1381_s29 + $0xa4] ss:$8 sps:$4 sm:$0xff]   ;;  %v1289_v26 = vld [vmem:[%s1381_s29 + $0xa0] ss:$8 sps:$4 sm:$0xff]   ;;  %v1292_v28 = vld [vmem:[%s1381_s29 + $0xb4] ss:$8 sps:$4 sm:$0xff]  }
  0x14   : > { %v1294_v29 = vld [vmem:[%s1381_s29 + $0x30] ss:$8 sps:$4 sm:$0xff]   ;;  %v1296_v31 = vld [vmem:[%s1381_s29 + $0x44] ss:$8 sps:$4 sm:$0xff]   ;;  %v1300_v33 = vld [vmem:[%s1381_s29 + $0x40] ss:$8 sps:$4 sm:$0xff]  }
  0x15   : > { %518 = vmatpush1.bf16.msra.mxu0 %v1264_v3  ;;  %1244 = vmatpush1.bf16.msra.mxu1 %v1264_v3  ;;  %v1295_v30 = vld [vmem:[%s1381_s29 + $0xb0] ss:$8 sps:$4 sm:$0xff]   ;;  %v1298_v32 = vld [vmem:[%s1381_s29 + $0xc4] ss:$8 sps:$4 sm:$0xff]   ;;  %v1301_v34 = vld [vmem:[%s1381_s29 + $0xc0] ss:$8 sps:$4 sm:$0xff]  }
  0x16   : > { %519 = vmatprep.subr.bf16.mxu0 %v1328_v1  ;;  %1235 = vmatprep.subr.bf16.mxu1 %v1328_v1  ;;  %v1302_v35 = vld [vmem:[%s1381_s29 + $0x54] ss:$8 sps:$4 sm:$0xff]   ;;  %v1306_v37 = vld [vmem:[%s1381_s29 + $0x50] ss:$8 sps:$4 sm:$0xff]   ;;  %v1308_v39 = vld [vmem:[%s1381_s29 + $0x64] ss:$8 sps:$4 sm:$0xff]  }
  0x17   : > { %v1304_v36 = vld [vmem:[%s1381_s29 + $0xd4] ss:$8 sps:$4 sm:$0xff]   ;;  %v1307_v38 = vld [vmem:[%s1381_s29 + $0xd0] ss:$8 sps:$4 sm:$0xff]   ;;  %v1310_v40 = vld [vmem:[%s1381_s29 + $0xe4] ss:$8 sps:$4 sm:$0xff]  }
  0x18   : > { %v1312_v41 = vld [vmem:[%s1381_s29 + $0x60] ss:$8 sps:$4 sm:$0xff]   ;;  %v1314_v43 = vld [vmem:[%s1381_s29 + $0x74] ss:$8 sps:$4 sm:$0xff]   ;;  %v1318_v45 = vld [vmem:[%s1381_s29 + $0x70] ss:$8 sps:$4 sm:$0xff]  }
  0x19   : > { %520 = vmatpush1.bf16.msra.mxu0 %v1265_v4  ;;  %1245 = vmatpush1.bf16.msra.mxu1 %v1265_v4  ;;  %v1313_v42 = vld [vmem:[%s1381_s29 + $0xe0] ss:$8 sps:$4 sm:$0xff]   ;;  %v1316_v44 = vld [vmem:[%s1381_s29 + $0xf4] ss:$8 sps:$4 sm:$0xff]   ;;  %v1319_v46 = vld [vmem:[%s1381_s29 + $0xf0] ss:$8 sps:$4 sm:$0xff]  }
  0x1a   : > { %521 = vmatprep.subr.bf16.mxu0 %v1328_v1  ;;  %1236 = vmatprep.subr.bf16.mxu1 %v1328_v1  ;;  %v1452_v47 = vld [vmem:[%s1550_s2] ss:$0 sm:$0xff] }
  0x1b   : > { %v1458_v51 = vld [vmem:[%s1551_s3] ss:$0 sm:$0xff] }
  0x1d   : > { %522 = vmatpush1.bf16.msra.mxu0 %v1266_v5  ;;  %1246 = vmatpush1.bf16.msra.mxu1 %v1266_v5 }
  0x1e   : > { %523 = vmatprep.subr.bf16.mxu0 %v1328_v1  ;;  %1237 = vmatprep.subr.bf16.mxu1 %v1328_v1 }
  0x21   : > { %524 = vmatpush1.bf16.msra.mxu0 %v1267_v8  ;;  %1247 = vmatpush1.bf16.msra.mxu1 %v1267_v8 }
  0x22   : > { %525 = vmatprep.subr.bf16.mxu0 %v1328_v1  ;;  %1238 = vmatprep.subr.bf16.mxu1 %v1328_v1 }
  0x25   : > { %526 = vmatpush1.bf16.msra.mxu0 %v1268_v9  ;;  %1248 = vmatpush1.bf16.msra.mxu1 %v1268_v9 }
  0x26   : > { %527 = vmatprep.subr.bf16.mxu0 %v1328_v1  ;;  %1239 = vmatprep.subr.bf16.mxu1 %v1328_v1 }
  0x29   : > { %528 = vmatpush1.bf16.msra.mxu0 %v1269_v12  ;;  %1249 = vmatpush1.bf16.msra.mxu1 %v1269_v12 }
  0x2a   : > { %541 = vmatprep.subr.bf16.mxu0 %v1328_v1  ;;  %1240 = vmatprep.subr.bf16.mxu1 %v1328_v1 }
  0x2d   : > { %542 = vmatpush2.bf16.msra.mxu0 %v511_v15  ;;  %1250 = vmatpush2.bf16.msra.mxu1 %v511_v15 }
  0x2e   : > { %543 = vmatprep.subr.bf16.mxu0 %v1328_v1  ;;  %1241 = vmatprep.subr.bf16.mxu1 %v1328_v1 }
  0x31   : > { %544 = vmatpush2.bf16.msra.mxu0 %v1271_v16  ;;  %1251 = vmatpush2.bf16.msra.mxu1 %v1271_v16 }
  0x34   : > { %546 = vmatmul.mubr.bf16.vlgmr.msra.gmra.mxu0 %v1272_v17  ;;  %610 = vmatmul.mubr.bf16.vlgmr.msra.gmra.mxu1 %v1275_v18 }
  0x35   : > { %1053 = vmatprep.mubr.msk.bf16.mxu0 %vm457_vm0, %v1278_v19  ;;  %1061 = vmatprep.mubr.msk.bf16.mxu1 %vm457_vm0, %v1280_v20 }
  0x3c   : > { %554 = vmatmul.mubr.bf16.gmra.mxu0 %v1282_v21  ;;  %618 = vmatmul.mubr.bf16.gmra.mxu1 %v1283_v22 }
  0x3d   : > { %1054 = vmatprep.mubr.msk.bf16.mxu0 %vm457_vm0, %v1284_v23  ;;  %1062 = vmatprep.mubr.msk.bf16.mxu1 %vm457_vm0, %v1286_v24 }
  0x44   : > { %562 = vmatmul.mubr.bf16.gmra.mxu0 %v1288_v25  ;;  %626 = vmatmul.mubr.bf16.gmra.mxu1 %v1289_v26 }
  0x45   : > { %1055 = vmatprep.mubr.msk.bf16.mxu0 %vm457_vm0, %v1290_v27  ;;  %1063 = vmatprep.mubr.msk.bf16.mxu1 %vm457_vm0, %v1292_v28 }
  0x4c   : > { %570 = vmatmul.mubr.bf16.gmra.mxu0 %v1294_v29  ;;  %634 = vmatmul.mubr.bf16.gmra.mxu1 %v1295_v30 }
  0x4d   : > { %1056 = vmatprep.mubr.msk.bf16.mxu0 %vm457_vm0, %v1296_v31  ;;  %1064 = vmatprep.mubr.msk.bf16.mxu1 %vm457_vm0, %v1298_v32 }
  0x54   : > { %578 = vmatmul.mubr.bf16.gmra.mxu0 %v1300_v33  ;;  %642 = vmatmul.mubr.bf16.gmra.mxu1 %v1301_v34 }
  0x55   : > { %1057 = vmatprep.mubr.msk.bf16.mxu0 %vm457_vm0, %v1302_v35  ;;  %1065 = vmatprep.mubr.msk.bf16.mxu1 %vm457_vm0, %v1304_v36 }
  0x5c   : > { %586 = vmatmul.mubr.bf16.gmra.mxu0 %v1306_v37  ;;  %650 = vmatmul.mubr.bf16.gmra.mxu1 %v1307_v38 }
  0x5d   : > { %1058 = vmatprep.mubr.msk.bf16.mxu0 %vm457_vm0, %v1308_v39  ;;  %1066 = vmatprep.mubr.msk.bf16.mxu1 %vm457_vm0, %v1310_v40 }
  0x64   : > { %594 = vmatmul.mubr.bf16.gmra.mxu0 %v1312_v41  ;;  %658 = vmatmul.mubr.bf16.gmra.mxu1 %v1313_v42 }
  0x65   : > { %1059 = vmatprep.mubr.msk.bf16.mxu0 %vm457_vm0, %v1314_v43  ;;  %1067 = vmatprep.mubr.msk.bf16.mxu1 %vm457_vm0, %v1316_v44 }
  0x6c   : > { %602 = vmatmul.mubr.bf16.gmra.mxu0 %v1318_v45  ;;  %666 = vmatmul.mubr.bf16.gmra.mxu1 %v1319_v46 }
  0xf4   : > { %v547_v48 = vpop.f32.mrf.mxu0  ;;  %v611_v49 = vpop.f32.mrf.mxu1 }
  0xf5   : > { %v681_v50 = vmul.f32 %v1452_v47, %v547_v48  ;;  %v697_v52 = vmul.f32 %v1452_v47, %v611_v49 }
  0xf6   : > { %v549_v53 = vpop.f32.mrf.mxu0  ;;  %v613_v54 = vpop.f32.mrf.mxu1 }
  0xf7   : > { %v720_v55 = vadd.f32 %v1458_v51, %v681_v50  ;;  %v736_v56 = vadd.f32 %v1458_v51, %v697_v52 }
  0xf8   : > { %v550_v57 = vpop.f32.mrf.mxu0  ;;  %v614_v58 = vpop.f32.mrf.mxu1 }
  0xf9   : > { %v682_v59 = vmul.f32 %v1452_v47, %v550_v57  ;;  %v698_v60 = vmul.f32 %v1452_v47, %v614_v58  ;;  %v752_v1 = vmax.f32 %v720_v55, 0.0  ;;  %v768_v2 = vmax.f32 %v736_v56, 0.0 }
  0xfa   : > { %v552_v61 = vpop.f32.mrf.mxu0  ;;  %v616_v62 = vpop.f32.mrf.mxu1 }
  0xfb   : > { %v721_v63 = vadd.f32 %v1458_v51, %v682_v59  ;;  %v737_v0 = vadd.f32 %v1458_v51, %v698_v60 }
  0xfc   : > { %v555_v3 = vpop.f32.mrf.mxu0  ;;  %v619_v4 = vpop.f32.mrf.mxu1 }
  0xfd   : > { %v753_v5 = vmax.f32 %v721_v63, 0.0  ;;  %v769_v6 = vmax.f32 %v737_v0, 0.0  ;;  %v683_v7 = vmul.f32 %v1452_v47, %v555_v3  ;;  %v699_v8 = vmul.f32 %v1452_v47, %v619_v4 }
  0xfe   : > { %v557_v9 = vpop.f32.mrf.mxu0  ;;  %v621_v10 = vpop.f32.mrf.mxu1 }
  0xff   : > { %v1140_v11 = vpack.c.bf16 %v753_v5, %v752_v1  ;;  %v1180_v12 = vpack.c.bf16 %v769_v6, %v768_v2  ;;  %v722_v13 = vadd.f32 %v1458_v51, %v683_v7  ;;  %v738_v14 = vadd.f32 %v1458_v51, %v699_v8 }
 0x100   : > { %v558_v15 = vpop.f32.mrf.mxu0  ;;  %v622_v16 = vpop.f32.mrf.mxu1 }
 0x101   : > { %1141 = vst [vmem:[%s1473_s25] sm:$0xff] %v1140_v11   ;;  %1224 = vst [vmem:[%s1473_s25 + $0x40] sm:$0xff] %v1180_v12   ;;  %v684_v17 = vmul.f32 %v1452_v47, %v558_v15  ;;  %v700_v18 = vmul.f32 %v1452_v47, %v622_v16  ;;  %v754_v23 = vmax.f32 %v722_v13, 0.0  ;;  %v770_v24 = vmax.f32 %v738_v14, 0.0 }
 0x102   : > { %v560_v19 = vpop.f32.mrf.mxu0  ;;  %v624_v20 = vpop.f32.mrf.mxu1 }
 0x103   : > { %v723_v21 = vadd.f32 %v1458_v51, %v684_v17  ;;  %v739_v22 = vadd.f32 %v1458_v51, %v700_v18 }
 0x104   : > { %v563_v25 = vpop.f32.mrf.mxu0  ;;  %v627_v26 = vpop.f32.mrf.mxu1 }
 0x105   : > { %v755_v27 = vmax.f32 %v723_v21, 0.0  ;;  %v771_v28 = vmax.f32 %v739_v22, 0.0  ;;  %v685_v29 = vmul.f32 %v1452_v47, %v563_v25  ;;  %v701_v30 = vmul.f32 %v1452_v47, %v627_v26 }
 0x106   : > { %v565_v31 = vpop.f32.mrf.mxu0  ;;  %v629_v32 = vpop.f32.mrf.mxu1 }
 0x107   : > { %v1145_v33 = vpack.c.bf16 %v755_v27, %v754_v23  ;;  %v1185_v34 = vpack.c.bf16 %v771_v28, %v770_v24  ;;  %v724_v35 = vadd.f32 %v1458_v51, %v685_v29  ;;  %v740_v36 = vadd.f32 %v1458_v51, %v701_v30 }
 0x108   : > { %v566_v37 = vpop.f32.mrf.mxu0  ;;  %v630_v38 = vpop.f32.mrf.mxu1 }
 0x109   : > { %1217 = vst [vmem:[%s1473_s25 + $0x8] sm:$0xff] %v1145_v33   ;;  %1225 = vst [vmem:[%s1473_s25 + $0x48] sm:$0xff] %v1185_v34   ;;  %v686_v39 = vmul.f32 %v1452_v47, %v566_v37  ;;  %v702_v40 = vmul.f32 %v1452_v47, %v630_v38  ;;  %v756_v45 = vmax.f32 %v724_v35, 0.0  ;;  %v772_v46 = vmax.f32 %v740_v36, 0.0 }
 0x10a   : > { %v568_v41 = vpop.f32.mrf.mxu0  ;;  %v632_v42 = vpop.f32.mrf.mxu1 }
 0x10b   : > { %v725_v43 = vadd.f32 %v1458_v51, %v686_v39  ;;  %v741_v44 = vadd.f32 %v1458_v51, %v702_v40 }
 0x10c   : > { %v571_v48 = vpop.f32.mrf.mxu0  ;;  %v635_v49 = vpop.f32.mrf.mxu1 }
 0x10d   : > { %v757_v50 = vmax.f32 %v725_v43, 0.0  ;;  %v773_v52 = vmax.f32 %v741_v44, 0.0  ;;  %v687_v53 = vmul.f32 %v1452_v47, %v571_v48  ;;  %v703_v54 = vmul.f32 %v1452_v47, %v635_v49 }
 0x10e   : > { %v573_v55 = vpop.f32.mrf.mxu0  ;;  %v637_v56 = vpop.f32.mrf.mxu1 }
 0x10f   : > { %v1150_v57 = vpack.c.bf16 %v757_v50, %v756_v45  ;;  %v1190_v58 = vpack.c.bf16 %v773_v52, %v772_v46  ;;  %v726_v59 = vadd.f32 %v1458_v51, %v687_v53  ;;  %v742_v60 = vadd.f32 %v1458_v51, %v703_v54 }
 0x110   : > { %v574_v61 = vpop.f32.mrf.mxu0  ;;  %v638_v62 = vpop.f32.mrf.mxu1 }
 0x111   : > { %1218 = vst [vmem:[%s1473_s25 + $0x10] sm:$0xff] %v1150_v57   ;;  %1226 = vst [vmem:[%s1473_s25 + $0x50] sm:$0xff] %v1190_v58   ;;  %v688_v63 = vmul.f32 %v1452_v47, %v574_v61  ;;  %v704_v0 = vmul.f32 %v1452_v47, %v638_v62  ;;  %v758_v5 = vmax.f32 %v726_v59, 0.0  ;;  %v774_v6 = vmax.f32 %v742_v60, 0.0 }
 0x112   : > { %v576_v1 = vpop.f32.mrf.mxu0  ;;  %v640_v2 = vpop.f32.mrf.mxu1 }
 0x113   : > { %v727_v3 = vadd.f32 %v1458_v51, %v688_v63  ;;  %v743_v4 = vadd.f32 %v1458_v51, %v704_v0 }
 0x114   : > { %v579_v7 = vpop.f32.mrf.mxu0  ;;  %v643_v8 = vpop.f32.mrf.mxu1 }
 0x115   : > { %v759_v9 = vmax.f32 %v727_v3, 0.0  ;;  %v775_v10 = vmax.f32 %v743_v4, 0.0  ;;  %v689_v11 = vmul.f32 %v1452_v47, %v579_v7  ;;  %v705_v12 = vmul.f32 %v1452_v47, %v643_v8 }
 0x116   : > { %v581_v13 = vpop.f32.mrf.mxu0  ;;  %v645_v14 = vpop.f32.mrf.mxu1 }
 0x117   : > { %v1155_v15 = vpack.c.bf16 %v759_v9, %v758_v5  ;;  %v1195_v16 = vpack.c.bf16 %v775_v10, %v774_v6  ;;  %v728_v17 = vadd.f32 %v1458_v51, %v689_v11  ;;  %v744_v18 = vadd.f32 %v1458_v51, %v705_v12 }
 0x118   : > { %v582_v19 = vpop.f32.mrf.mxu0  ;;  %v646_v20 = vpop.f32.mrf.mxu1 }
 0x119   : > { %1219 = vst [vmem:[%s1473_s25 + $0x18] sm:$0xff] %v1155_v15   ;;  %1227 = vst [vmem:[%s1473_s25 + $0x58] sm:$0xff] %v1195_v16   ;;  %v690_v21 = vmul.f32 %v1452_v47, %v582_v19  ;;  %v706_v22 = vmul.f32 %v1452_v47, %v646_v20  ;;  %v760_v27 = vmax.f32 %v728_v17, 0.0  ;;  %v776_v28 = vmax.f32 %v744_v18, 0.0 }
 0x11a   : > { %v584_v23 = vpop.f32.mrf.mxu0  ;;  %v648_v24 = vpop.f32.mrf.mxu1 }
 0x11b   : > { %v729_v25 = vadd.f32 %v1458_v51, %v690_v21  ;;  %v745_v26 = vadd.f32 %v1458_v51, %v706_v22 }
 0x11c   : > { %v587_v29 = vpop.f32.mrf.mxu0  ;;  %v651_v30 = vpop.f32.mrf.mxu1 }
 0x11d   : > { %v761_v31 = vmax.f32 %v729_v25, 0.0  ;;  %v777_v32 = vmax.f32 %v745_v26, 0.0  ;;  %v691_v33 = vmul.f32 %v1452_v47, %v587_v29  ;;  %v707_v34 = vmul.f32 %v1452_v47, %v651_v30 }
 0x11e   : > { %v589_v35 = vpop.f32.mrf.mxu0  ;;  %v653_v36 = vpop.f32.mrf.mxu1 }
 0x11f   : > { %v1160_v37 = vpack.c.bf16 %v761_v31, %v760_v27  ;;  %v1200_v38 = vpack.c.bf16 %v777_v32, %v776_v28  ;;  %v730_v39 = vadd.f32 %v1458_v51, %v691_v33  ;;  %v746_v40 = vadd.f32 %v1458_v51, %v707_v34 }
 0x120   : > { %v590_v41 = vpop.f32.mrf.mxu0  ;;  %v654_v42 = vpop.f32.mrf.mxu1 }
 0x121   : > { %1220 = vst [vmem:[%s1473_s25 + $0x20] sm:$0xff] %v1160_v37   ;;  %1228 = vst [vmem:[%s1473_s25 + $0x60] sm:$0xff] %v1200_v38   ;;  %v692_v43 = vmul.f32 %v1452_v47, %v590_v41  ;;  %v708_v44 = vmul.f32 %v1452_v47, %v654_v42  ;;  %v762_v50 = vmax.f32 %v730_v39, 0.0  ;;  %v778_v52 = vmax.f32 %v746_v40, 0.0 }
 0x122   : > { %v592_v45 = vpop.f32.mrf.mxu0  ;;  %v656_v46 = vpop.f32.mrf.mxu1 }
 0x123   : > { %v731_v48 = vadd.f32 %v1458_v51, %v692_v43  ;;  %v747_v49 = vadd.f32 %v1458_v51, %v708_v44 }
 0x124   : > { %v595_v53 = vpop.f32.mrf.mxu0  ;;  %v659_v54 = vpop.f32.mrf.mxu1 }
 0x125   : > { %v763_v55 = vmax.f32 %v731_v48, 0.0  ;;  %v779_v56 = vmax.f32 %v747_v49, 0.0  ;;  %v693_v57 = vmul.f32 %v1452_v47, %v595_v53  ;;  %v709_v58 = vmul.f32 %v1452_v47, %v659_v54 }
 0x126   : > { %v597_v59 = vpop.f32.mrf.mxu0  ;;  %v661_v60 = vpop.f32.mrf.mxu1 }
 0x127   : > { %v1165_v61 = vpack.c.bf16 %v763_v55, %v762_v50  ;;  %v1205_v62 = vpack.c.bf16 %v779_v56, %v778_v52  ;;  %v732_v63 = vadd.f32 %v1458_v51, %v693_v57  ;;  %v748_v0 = vadd.f32 %v1458_v51, %v709_v58 }
 0x128   : > { %v598_v1 = vpop.f32.mrf.mxu0  ;;  %v662_v2 = vpop.f32.mrf.mxu1 }
 0x129   : > { %1221 = vst [vmem:[%s1473_s25 + $0x28] sm:$0xff] %v1165_v61   ;;  %1229 = vst [vmem:[%s1473_s25 + $0x68] sm:$0xff] %v1205_v62   ;;  %v694_v3 = vmul.f32 %v1452_v47, %v598_v1  ;;  %v710_v4 = vmul.f32 %v1452_v47, %v662_v2  ;;  %v764_v9 = vmax.f32 %v732_v63, 0.0  ;;  %v780_v10 = vmax.f32 %v748_v0, 0.0 }
 0x12a   : > { %v600_v5 = vpop.f32.mrf.mxu0  ;;  %v664_v6 = vpop.f32.mrf.mxu1 }
 0x12b   : > { %v733_v7 = vadd.f32 %v1458_v51, %v694_v3  ;;  %v749_v8 = vadd.f32 %v1458_v51, %v710_v4 }
 0x12c   : > { %v603_v11 = vpop.f32.mrf.mxu0  ;;  %v667_v12 = vpop.f32.mrf.mxu1 }
 0x12d   : > { %v765_v13 = vmax.f32 %v733_v7, 0.0  ;;  %v781_v14 = vmax.f32 %v749_v8, 0.0  ;;  %v695_v15 = vmul.f32 %v1452_v47, %v603_v11  ;;  %v711_v16 = vmul.f32 %v1452_v47, %v667_v12 }
 0x12e   : > { %v605_v17 = vpop.f32.mrf.mxu0  ;;  %v669_v18 = vpop.f32.mrf.mxu1 }
 0x12f   : > { %v1170_v19 = vpack.c.bf16 %v765_v13, %v764_v9  ;;  %v1210_v20 = vpack.c.bf16 %v781_v14, %v780_v10  ;;  %v734_v23 = vadd.f32 %v1458_v51, %v695_v15  ;;  %v750_v24 = vadd.f32 %v1458_v51, %v711_v16 }
 0x130   : > { %v606_v21 = vpop.f32.mrf.mxu0  ;;  %v670_v22 = vpop.f32.mrf.mxu1 }
 0x131   : > { %1222 = vst [vmem:[%s1473_s25 + $0x30] sm:$0xff] %v1170_v19   ;;  %1230 = vst [vmem:[%s1473_s25 + $0x70] sm:$0xff] %v1210_v20   ;;  %v696_v25 = vmul.f32 %v1452_v47, %v606_v21  ;;  %v712_v26 = vmul.f32 %v1452_v47, %v670_v22  ;;  %v766_v31 = vmax.f32 %v734_v23, 0.0  ;;  %v782_v32 = vmax.f32 %v750_v24, 0.0 }
 0x132   : > { %v608_v27 = vpop.f32.mrf.mxu0  ;;  %v672_v28 = vpop.f32.mrf.mxu1 }
 0x133   : > { %v735_v29 = vadd.f32 %v1458_v51, %v696_v25  ;;  %v751_v30 = vadd.f32 %v1458_v51, %v712_v26 }
 0x135   : > { %v767_v33 = vmax.f32 %v735_v29, 0.0  ;;  %v783_v34 = vmax.f32 %v751_v30, 0.0 }
 0x137   : > { %v1175_v35 = vpack.c.bf16 %v767_v33, %v766_v31  ;;  %v1215_v36 = vpack.c.bf16 %v783_v34, %v782_v32 }
 0x139   : > { %1223 = vst [vmem:[%s1473_s25 + $0x38] sm:$0xff] %v1175_v35   ;;  %1231 = vst [vmem:[%s1473_s25 + $0x78] sm:$0xff] %v1215_v36  }
 0x13a PF: > { %s14_s15 = sadd.s32 1, %s1326_s15  }
 0x13b   : > { %p11_p4 = scmp.ge.s32.totalorder %s14_s15, 4  }
 0x13d   :  { %13 = sbr.rel (!%p11_p4) target bundleno = 1 (0x1), region = 66 }

// kernel: vencoder_forward.9
= control target key start
LH: loop header
LB: loop body
LE: loop exit
PB: predicated region body
PF: predicated region fallthrough
CT: control target
= control target key end

     0   :  { %s824_s6 = smov 0   ;;  %s826_s7 = smov 0   ;;  %s1036_s0 = inlined_call_operand.vmem [shape: bf16[9,128,128], index: 0, kind: input, shape index: {}]   ;;  %s1037_s1 = inlined_call_operand.vmem [shape: bf16[128,128], index: 1, kind: output, shape index: {}]  }
   0x1   :  { %s828_s8 = smov 0  }
   0x2 LB: > { %s661_s9 = sadd.s32 4294967295, %s812_s8   ;;  %s841_s10 = sadd.s32 1, %s812_s8   ;;  %s812_s8 = sphi %s828_s8, %s1040_s8   ;;  %s808_s7 = sphi %s826_s7, %s1039_s7   ;;  %s804_s6 = sphi %s824_s6, %s1038_s6  }
   0x3   : > { %s15_s11 = ssub.s32 %s812_s8, %s841_s10  ;;  %s18_s12 = sadd.s32 1, %s808_s7 }
   0x4   : > { %p16_p0 = scmp.eq.s32.totalorder %s15_s11, 0  ;;  %p25_p1 = scmp.ne.s32.totalorder %s808_s7, %s804_s6 }
   0x5   : > { %p26_p2 = scmp.eq.s32.totalorder %s812_s8, 0  ;;  %p664_p4 = scmp.ge.s32.totalorder %s812_s8, 2 }
   0x6   : > { %s850_s13 = scalar_select %p16_p0, %s808_s7, %s18_s12  }
   0x7   : > { %p27_p3 = por %p26_p2, %p25_p1  ;;  %77 = sbr.rel (%p664_p4) target bundleno = 35 (0x23), region = 16 }
   0xc   : > { %80 = sbr.rel (!%p27_p3) target bundleno = 35 (0x23), region = 20  ;;  %s82_s14 = sand.u32 (%p27_p3), 1, %s808_s7  }
   0xd   : > { %s736_s15 = sshll.u32 (%p27_p3), %s812_s8, 5  ;;  %s764_s16 = smul.u32 (%p27_p3), 288, %s82_s14 }
   0xe   : > { %s858_s19 = scalar_lea.vmem (%p27_p3), %s1036_s0, %s736_s15 }
   0xf   : > { %v104_v0 = vld [vmem:[%s858_s19] sm:$0xff] (%p27_p3)   ;;  %v108_v1 = vld [vmem:[%s858_s19 + $0x8] sm:$0xff] (%p27_p3)   ;;  %v112_v2 = vld [vmem:[%s858_s19 + $0x10] sm:$0xff] (%p27_p3)   ;;  %s866_s20 = scalar_lea.vmem (%p27_p3), [#allocation2], %s764_s16 }
  0x10   : > { %v116_v3 = vld [vmem:[%s858_s19 + $0x18] sm:$0xff] (%p27_p3)   ;;  %v120_v4 = vld [vmem:[%s858_s19 + $0x40] sm:$0xff] (%p27_p3)   ;;  %v124_v5 = vld [vmem:[%s858_s19 + $0x48] sm:$0xff] (%p27_p3)   ;;  %105 = vst [vmem:[%s866_s20] sm:$0xff] (%p27_p3), %v104_v0  }
  0x11   : > { %109 = vst [vmem:[%s866_s20 + $0x8] sm:$0xff] %v108_v1   ;;  %113 = vst [vmem:[%s866_s20 + $0x10] sm:$0xff] %v112_v2   ;;  %v128_v6 = vld [vmem:[%s858_s19 + $0x50] sm:$0xff]   ;;  %v132_v7 = vld [vmem:[%s858_s19 + $0x58] sm:$0xff]  }
  0x12   : > { %117 = vst [vmem:[%s866_s20 + $0x18] sm:$0xff] %v116_v3   ;;  %121 = vst [vmem:[%s866_s20 + $0x20] sm:$0xff] %v120_v4   ;;  %v136_v8 = vld [vmem:[%s858_s19 + $0x80] sm:$0xff]   ;;  %v140_v9 = vld [vmem:[%s858_s19 + $0x88] sm:$0xff]  }
  0x13   : > { %125 = vst [vmem:[%s866_s20 + $0x28] sm:$0xff] %v124_v5   ;;  %129 = vst [vmem:[%s866_s20 + $0x30] sm:$0xff] %v128_v6   ;;  %v144_v10 = vld [vmem:[%s858_s19 + $0x90] sm:$0xff]   ;;  %v148_v11 = vld [vmem:[%s858_s19 + $0x98] sm:$0xff]  }
  0x14   : > { %133 = vst [vmem:[%s866_s20 + $0x38] sm:$0xff] %v132_v7   ;;  %137 = vst [vmem:[%s866_s20 + $0x40] sm:$0xff] %v136_v8   ;;  %v152_v12 = vld [vmem:[%s858_s19 + $0xc0] sm:$0xff]   ;;  %v156_v13 = vld [vmem:[%s858_s19 + $0xc8] sm:$0xff]  }
  0x15   : > { %141 = vst [vmem:[%s866_s20 + $0x48] sm:$0xff] %v140_v9   ;;  %145 = vst [vmem:[%s866_s20 + $0x50] sm:$0xff] %v144_v10   ;;  %v160_v14 = vld [vmem:[%s858_s19 + $0xd0] sm:$0xff]   ;;  %v164_v15 = vld [vmem:[%s858_s19 + $0xd8] sm:$0xff]  }
  0x16   : > { %149 = vst [vmem:[%s866_s20 + $0x58] sm:$0xff] %v148_v11   ;;  %153 = vst [vmem:[%s866_s20 + $0x60] sm:$0xff] %v152_v12   ;;  %v168_v16 = vld [vmem:[%s858_s19 + $0x100] sm:$0xff]   ;;  %v172_v17 = vld [vmem:[%s858_s19 + $0x108] sm:$0xff]  }
  0x17   : > { %157 = vst [vmem:[%s866_s20 + $0x68] sm:$0xff] %v156_v13   ;;  %161 = vst [vmem:[%s866_s20 + $0x70] sm:$0xff] %v160_v14   ;;  %v176_v18 = vld [vmem:[%s858_s19 + $0x110] sm:$0xff]   ;;  %v180_v19 = vld [vmem:[%s858_s19 + $0x118] sm:$0xff]  }
  0x18   : > { %165 = vst [vmem:[%s866_s20 + $0x78] sm:$0xff] %v164_v15   ;;  %169 = vst [vmem:[%s866_s20 + $0x80] sm:$0xff] %v168_v16   ;;  %v184_v20 = vld [vmem:[%s858_s19 + $0x140] sm:$0xff]   ;;  %v188_v21 = vld [vmem:[%s858_s19 + $0x148] sm:$0xff]  }
  0x19   : > { %173 = vst [vmem:[%s866_s20 + $0x88] sm:$0xff] %v172_v17   ;;  %177 = vst [vmem:[%s866_s20 + $0x90] sm:$0xff] %v176_v18   ;;  %v192_v22 = vld [vmem:[%s858_s19 + $0x150] sm:$0xff]   ;;  %v196_v23 = vld [vmem:[%s858_s19 + $0x158] sm:$0xff]  }
  0x1a   : > { %181 = vst [vmem:[%s866_s20 + $0x98] sm:$0xff] %v180_v19   ;;  %185 = vst [vmem:[%s866_s20 + $0xa0] sm:$0xff] %v184_v20   ;;  %v200_v24 = vld [vmem:[%s858_s19 + $0x180] sm:$0xff]   ;;  %v204_v25 = vld [vmem:[%s858_s19 + $0x188] sm:$0xff]  }
  0x1b   : > { %189 = vst [vmem:[%s866_s20 + $0xa8] sm:$0xff] %v188_v21   ;;  %193 = vst [vmem:[%s866_s20 + $0xb0] sm:$0xff] %v192_v22   ;;  %v208_v26 = vld [vmem:[%s858_s19 + $0x190] sm:$0xff]   ;;  %v212_v27 = vld [vmem:[%s858_s19 + $0x198] sm:$0xff]  }
  0x1c   : > { %197 = vst [vmem:[%s866_s20 + $0xb8] sm:$0xff] %v196_v23   ;;  %201 = vst [vmem:[%s866_s20 + $0xc0] sm:$0xff] %v200_v24   ;;  %v216_v28 = vld [vmem:[%s858_s19 + $0x1c0] sm:$0xff]   ;;  %v220_v29 = vld [vmem:[%s858_s19 + $0x1c8] sm:$0xff]  }
  0x1d   : > { %205 = vst [vmem:[%s866_s20 + $0xc8] sm:$0xff] %v204_v25   ;;  %209 = vst [vmem:[%s866_s20 + $0xd0] sm:$0xff] %v208_v26   ;;  %v224_v30 = vld [vmem:[%s858_s19 + $0x1d0] sm:$0xff]   ;;  %v228_v31 = vld [vmem:[%s858_s19 + $0x1d8] sm:$0xff]  }
  0x1e   : > { %213 = vst [vmem:[%s866_s20 + $0xd8] sm:$0xff] %v212_v27   ;;  %217 = vst [vmem:[%s866_s20 + $0xe0] sm:$0xff] %v216_v28   ;;  %v232_v32 = vld [vmem:[%s858_s19 + $0x200] sm:$0xff]   ;;  %v236_v33 = vld [vmem:[%s858_s19 + $0x208] sm:$0xff]  }
  0x1f   : > { %221 = vst [vmem:[%s866_s20 + $0xe8] sm:$0xff] %v220_v29   ;;  %225 = vst [vmem:[%s866_s20 + $0xf0] sm:$0xff] %v224_v30   ;;  %v240_v34 = vld [vmem:[%s858_s19 + $0x210] sm:$0xff]   ;;  %v244_v35 = vld [vmem:[%s858_s19 + $0x218] sm:$0xff]  }
  0x20   : > { %229 = vst [vmem:[%s866_s20 + $0xf8] sm:$0xff] %v228_v31   ;;  %233 = vst [vmem:[%s866_s20 + $0x100] sm:$0xff] %v232_v32  }
  0x21   : > { %237 = vst [vmem:[%s866_s20 + $0x108] sm:$0xff] %v236_v33   ;;  %241 = vst [vmem:[%s866_s20 + $0x110] sm:$0xff] %v240_v34  }
  0x22   : > { %245 = vst [vmem:[%s866_s20 + $0x118] sm:$0xff] %v244_v35  }
  0x23 PF: > { %p667_p5 = scmp.ge.s32.totalorder %s812_s8, 1  ;;  %p414_p6 = scmp.lt.s32.totalorder %s812_s8, 3 }
  0x25   : > { %p415_p7 = pnand %p667_p5, %p414_p6 }
  0x26   : > { %s421_s21 = sand.u32 (!%p415_p7), 1, %s804_s6   ;;  %s668_s24 = sshll.u32 (!%p415_p7), %s661_s9, 3 }
  0x27   : > { %418 = sbr.rel (%p415_p7) target bundleno = 81 (0x51), region = 61  ;;  %p442_p8 = scmp.lt.s32.totalorder (!%p415_p7), %s668_s24, 15 }
  0x28   : > { %s765_s22 = smul.u32 (!%p415_p7), 288, %s421_s21 }
  0x2a   : > { %s937_s23 = scalar_lea.vmem (!%p415_p7), [#allocation2], %s765_s22 }
  0x2c   : > { %v447_v36 = vld [vmem:[%s937_s23] sm:$0xf]  ;;  %v448_v37 = vld [vmem:[%s937_s23 + $0x4] sm:$0xf]  ;;  %v449_v54 = vld [vmem:[%s937_s23 + $0x8] sm:$0xf] }
  0x2d   : > { %v670_v38 = vld [vmem:[%s937_s23 + $0x20] sm:$0xf]  ;;  %v671_v39 = vld [vmem:[%s937_s23 + $0x24] sm:$0xf]  ;;  %v450_v55 = vld [vmem:[%s937_s23 + $0xc] sm:$0xf] }
  0x2e   : > { %v678_v40 = vld [vmem:[%s937_s23 + $0x40] sm:$0xf]  ;;  %v464_v41 = vmax.bf16 %v670_v38, %v447_v36  ;;  %v465_v42 = vmax.bf16 %v671_v39, %v448_v37  ;;  %v679_v43 = vld [vmem:[%s937_s23 + $0x44] sm:$0xf]  ;;  %v672_v56 = vld [vmem:[%s937_s23 + $0x28] sm:$0xf] }
  0x2f   : > { %v686_v44 = vld [vmem:[%s937_s23 + $0x60] sm:$0xf]  ;;  %v687_v45 = vld [vmem:[%s937_s23 + $0x64] sm:$0xf]  ;;  %v673_v57 = vld [vmem:[%s937_s23 + $0x2c] sm:$0xf]  ;;  %v466_v61 = vmax.bf16 %v672_v56, %v449_v54 }
  0x30   : > { %v481_v46 = vmax.bf16 %v678_v40, %v464_v41  ;;  %v482_v47 = vmax.bf16 %v679_v43, %v465_v42  ;;  %v694_v48 = vld [vmem:[%s937_s23 + $0x80] sm:$0xf]  ;;  %v695_v49 = vld [vmem:[%s937_s23 + $0x84] sm:$0xf]  ;;  %v467_v62 = vmax.bf16 %v673_v57, %v450_v55  ;;  %v680_v63 = vld [vmem:[%s937_s23 + $0x48] sm:$0xf] }
  0x31   : > { %v702_v52 = vld [vmem:[%s937_s23 + $0xa0] sm:$0xf]  ;;  %v703_v53 = vld [vmem:[%s937_s23 + $0xa4] sm:$0xf]  ;;  %v681_v0 = vld [vmem:[%s937_s23 + $0x4c] sm:$0xf]  ;;  %v483_v8 = vmax.bf16 %v680_v63, %v466_v61 }
  0x32   : > { %v498_v50 = vmax.bf16 %v686_v44, %v481_v46  ;;  %v499_v51 = vmax.bf16 %v687_v45, %v482_v47  ;;  %v710_v60 = vld [vmem:[%s937_s23 + $0xc0] sm:$0xf]  ;;  %v711_v1 = vld [vmem:[%s937_s23 + $0xc4] sm:$0xf]  ;;  %v688_v2 = vld [vmem:[%s937_s23 + $0x68] sm:$0xf]  ;;  %v484_v9 = vmax.bf16 %v681_v0, %v467_v62 }
  0x33   : > { %v689_v3 = vld [vmem:[%s937_s23 + $0x6c] sm:$0xf]  ;;  %s1042_s24 = smov (!%p442_p8, %s668_s24), 15  ;;  %v718_v6 = vld [vmem:[%s937_s23 + $0xe0] sm:$0xf]  ;;  %v500_v16 = vmax.bf16 %v688_v2, %v483_v8 }
  0x34   : > { %v515_v58 = vmax.bf16 %v694_v48, %v498_v50  ;;  %v516_v59 = vmax.bf16 %v695_v49, %v499_v51  ;;  %v719_v7 = vld [vmem:[%s937_s23 + $0xe4] sm:$0xf]  ;;  %v726_v10 = vld [vmem:[%s937_s23 + $0x100] sm:$0xf]  ;;  %v696_v12 = vld [vmem:[%s937_s23 + $0x88] sm:$0xf]  ;;  %v501_v17 = vmax.bf16 %v689_v3, %v484_v9 }
  0x35   : > { %v727_v11 = vld [vmem:[%s937_s23 + $0x104] sm:$0xf]  ;;  %v697_v13 = vld [vmem:[%s937_s23 + $0x8c] sm:$0xf]  ;;  %v704_v18 = vld [vmem:[%s937_s23 + $0xa8] sm:$0xf]  ;;  %v517_v26 = vmax.bf16 %v696_v12, %v500_v16 }
  0x36   : > { %v532_v4 = vmax.bf16 %v702_v52, %v515_v58  ;;  %v533_v5 = vmax.bf16 %v703_v53, %v516_v59  ;;  %v705_v19 = vld [vmem:[%s937_s23 + $0xac] sm:$0xf]  ;;  %v451_v20 = vld [vmem:[%s937_s23 + $0x10] sm:$0xf]  ;;  %v452_v21 = vld [vmem:[%s937_s23 + $0x14] sm:$0xf]  ;;  %v518_v27 = vmax.bf16 %v697_v13, %v501_v17 }
  0x37   : > { %v674_v22 = vld [vmem:[%s937_s23 + $0x30] sm:$0xf]  ;;  %v675_v23 = vld [vmem:[%s937_s23 + $0x34] sm:$0xf]  ;;  %s669_s25 = sshll.u32 %s1042_s24, 2  ;;  %v534_v37 = vmax.bf16 %v704_v18, %v517_v26 }
  0x38   : > { %v549_v14 = vmax.bf16 %v710_v60, %v532_v4  ;;  %v550_v15 = vmax.bf16 %v711_v1, %v533_v5  ;;  %v682_v28 = vld [vmem:[%s937_s23 + $0x50] sm:$0xf]  ;;  %v683_v29 = vld [vmem:[%s937_s23 + $0x54] sm:$0xf]  ;;  %v712_v30 = vld [vmem:[%s937_s23 + $0xc8] sm:$0xf]  ;;  %v468_v33 = vmax.bf16 %v674_v22, %v451_v20  ;;  %v469_v34 = vmax.bf16 %v675_v23, %v452_v21  ;;  %s990_s28 = scalar_lea.vmem %s1037_s1, %s669_s25 }
  0x39   : > { %v713_v31 = vld [vmem:[%s937_s23 + $0xcc] sm:$0xf]  ;;  %v720_v32 = vld [vmem:[%s937_s23 + $0xe8] sm:$0xf]  ;;  %v535_v38 = vmax.bf16 %v705_v19, %v518_v27  ;;  %v690_v40 = vld [vmem:[%s937_s23 + $0x70] sm:$0xf]  ;;  %v551_v48 = vmax.bf16 %v712_v30, %v534_v37 }
  0x3a   : > { %v566_v24 = vmax.bf16 %v718_v6, %v549_v14  ;;  %v567_v25 = vmax.bf16 %v719_v7, %v550_v15  ;;  %v721_v39 = vld [vmem:[%s937_s23 + $0xec] sm:$0xf]  ;;  %v691_v41 = vld [vmem:[%s937_s23 + $0x74] sm:$0xf]  ;;  %v728_v42 = vld [vmem:[%s937_s23 + $0x108] sm:$0xf]  ;;  %v485_v44 = vmax.bf16 %v682_v28, %v468_v33  ;;  %v486_v45 = vmax.bf16 %v683_v29, %v469_v34 }
  0x3b   : > { %v729_v43 = vld [vmem:[%s937_s23 + $0x10c] sm:$0xf]  ;;  %v698_v46 = vld [vmem:[%s937_s23 + $0x90] sm:$0xf]  ;;  %v552_v49 = vmax.bf16 %v713_v31, %v535_v38  ;;  %v699_v50 = vld [vmem:[%s937_s23 + $0x94] sm:$0xf]  ;;  %v568_v58 = vmax.bf16 %v720_v32, %v551_v48 }
  0x3c   : > { %v583_v35 = vmax.bf16 %v726_v10, %v566_v24  ;;  %v584_v36 = vmax.bf16 %v727_v11, %v567_v25  ;;  %v706_v51 = vld [vmem:[%s937_s23 + $0xb0] sm:$0xf]  ;;  %v453_v52 = vld [vmem:[%s937_s23 + $0x18] sm:$0xf]  ;;  %v502_v53 = vmax.bf16 %v690_v40, %v485_v44  ;;  %v503_v54 = vmax.bf16 %v691_v41, %v486_v45  ;;  %v454_v55 = vld [vmem:[%s937_s23 + $0x1c] sm:$0xf] }
  0x3d   : > { %v676_v56 = vld [vmem:[%s937_s23 + $0x38] sm:$0xf]  ;;  %v677_v57 = vld [vmem:[%s937_s23 + $0x3c] sm:$0xf]  ;;  %v569_v59 = vmax.bf16 %v721_v39, %v552_v49  ;;  %v707_v60 = vld [vmem:[%s937_s23 + $0xb4] sm:$0xf]  ;;  %v585_v5 = vmax.bf16 %v728_v42, %v568_v58 }
  0x3e   : > { %v757_v47 = vcombine.low %v583_v35, %v584_v36  ;;  %v470_v61 = vmax.bf16 %v676_v56, %v453_v52  ;;  %v471_v62 = vmax.bf16 %v677_v57, %v454_v55  ;;  %v684_v63 = vld [vmem:[%s937_s23 + $0x58] sm:$0xf]  ;;  %v685_v0 = vld [vmem:[%s937_s23 + $0x5c] sm:$0xf]  ;;  %v519_v1 = vmax.bf16 %v698_v46, %v502_v53  ;;  %v714_v7 = vld [vmem:[%s937_s23 + $0xd0] sm:$0xf] }
  0x3f   : > { %v520_v2 = vmax.bf16 %v699_v50, %v503_v54  ;;  %v692_v3 = vld [vmem:[%s937_s23 + $0x78] sm:$0xf]  ;;  %v693_v4 = vld [vmem:[%s937_s23 + $0x7c] sm:$0xf]  ;;  %v586_v6 = vmax.bf16 %v729_v43, %v569_v59  ;;  %v715_v8 = vld [vmem:[%s937_s23 + $0xd4] sm:$0xf] }
  0x40   : > { %741 = vst [vmem:[%s990_s28] sm:$0xff] %v757_v47   ;;  %v487_v9 = vmax.bf16 %v684_v63, %v470_v61  ;;  %v488_v10 = vmax.bf16 %v685_v0, %v471_v62  ;;  %v536_v11 = vmax.bf16 %v706_v51, %v519_v1  ;;  %v700_v13 = vld [vmem:[%s937_s23 + $0x98] sm:$0xf]  ;;  %v701_v14 = vld [vmem:[%s937_s23 + $0x9c] sm:$0xf]  ;;  %v722_v16 = vld [vmem:[%s937_s23 + $0xf0] sm:$0xf] }
  0x41   : > { %v537_v12 = vmax.bf16 %v707_v60, %v520_v2  ;;  %v758_v15 = vcombine.low %v585_v5, %v586_v6  ;;  %v723_v17 = vld [vmem:[%s937_s23 + $0xf4] sm:$0xf]  ;;  %v708_v22 = vld [vmem:[%s937_s23 + $0xb8] sm:$0xf]  ;;  %v709_v23 = vld [vmem:[%s937_s23 + $0xbc] sm:$0xf] }
  0x42   : > { %v504_v18 = vmax.bf16 %v692_v3, %v487_v9  ;;  %v505_v19 = vmax.bf16 %v693_v4, %v488_v10  ;;  %v553_v20 = vmax.bf16 %v714_v7, %v536_v11  ;;  %v730_v24 = vld [vmem:[%s937_s23 + $0x110] sm:$0xf]  ;;  %v731_v25 = vld [vmem:[%s937_s23 + $0x114] sm:$0xf]  ;;  %v716_v30 = vld [vmem:[%s937_s23 + $0xd8] sm:$0xf] }
  0x43   : > { %v554_v21 = vmax.bf16 %v715_v8, %v537_v12  ;;  %759 = vst [vmem:[%s990_s28 + $0x8] sm:$0xff] %v758_v15   ;;  %v717_v31 = vld [vmem:[%s937_s23 + $0xdc] sm:$0xf]  ;;  %v724_v36 = vld [vmem:[%s937_s23 + $0xf8] sm:$0xf] }
  0x44   : > { %v521_v26 = vmax.bf16 %v700_v13, %v504_v18  ;;  %v522_v27 = vmax.bf16 %v701_v14, %v505_v19  ;;  %v570_v28 = vmax.bf16 %v722_v16, %v553_v20  ;;  %v725_v37 = vld [vmem:[%s937_s23 + $0xfc] sm:$0xf]  ;;  %v732_v41 = vld [vmem:[%s937_s23 + $0x118] sm:$0xf] }
  0x45   : > { %v571_v29 = vmax.bf16 %v723_v17, %v554_v21  ;;  %v733_v42 = vld [vmem:[%s937_s23 + $0x11c] sm:$0xf] }
  0x46   : > { %v538_v32 = vmax.bf16 %v708_v22, %v521_v26  ;;  %v539_v33 = vmax.bf16 %v709_v23, %v522_v27  ;;  %v587_v34 = vmax.bf16 %v730_v24, %v570_v28 }
  0x47   : > { %v588_v35 = vmax.bf16 %v731_v25, %v571_v29 }
  0x48   : > { %v555_v38 = vmax.bf16 %v716_v30, %v538_v32  ;;  %v556_v39 = vmax.bf16 %v717_v31, %v539_v33 }
  0x49   : > { %v760_v40 = vcombine.low %v587_v34, %v588_v35 }
  0x4a   : > { %v572_v43 = vmax.bf16 %v724_v36, %v555_v38  ;;  %v573_v44 = vmax.bf16 %v725_v37, %v556_v39 }
  0x4b   : > { %761 = vst [vmem:[%s990_s28 + $0x10] sm:$0xff] %v760_v40  }
  0x4c   : > { %v589_v45 = vmax.bf16 %v732_v41, %v572_v43  ;;  %v590_v46 = vmax.bf16 %v733_v42, %v573_v44 }
  0x4e   : > { %v762_v47 = vcombine.low %v589_v45, %v590_v46 }
  0x50   : > { %763 = vst [vmem:[%s990_s28 + $0x18] sm:$0xff] %v762_v47  }
  0x51 PF: > { %p8_p9 = scmp.ge.s32.totalorder %s841_s10, 4   ;;  %s1038_s6 = smov %s808_s7 }
  0x52   : > { %s1039_s7 = smov %s850_s13  ;;  %s1040_s8 = smov %s841_s10 }
  0x53   :  { %10 = sbr.rel (!%p8_p9) target bundleno = 2 (0x2), region = 108 }

// kernel: vencoder_forward.10
= control target key start
LH: loop header
LB: loop body
LE: loop exit
PB: predicated region body
PF: predicated region fallthrough
CT: control target
= control target key end

     0   :  { %s2002_s15 = smov 0   ;;  %s2333_s0 = inlined_call_operand.vmem [shape: bf16[128,1152], index: 0, kind: input, shape index: {}]   ;;  %s2334_s1 = inlined_call_operand.vmem [shape: bf16[1152,128], index: 1, kind: input, shape index: {}]   ;;  %s2335_s2 = inlined_call_operand.vmem [shape: f32[1,128], index: 2, kind: input, shape index: {}]   ;;  %s2336_s3 = inlined_call_operand.vmem [shape: f32[1,128], index: 3, kind: input, shape index: {}]   ;;  %s2337_s4 = inlined_call_operand.vmem [shape: bf16[128,128], index: 4, kind: output, shape index: {}]  }
   0x1 LB: > { %s1464_s16 = sadd.s32 4294967295, %s1975_s15   ;;  %p1468_p0 = scmp.ge.s32.totalorder %s1975_s15, 1  ;;  %s1975_s15 = sphi %s2002_s15, %s14_s15  }
   0x2   : > { %p164_p1 = scmp.lt.s32.totalorder %s1975_s15, 3 }
   0x4   : > { %p165_p2 = pnand %p1468_p0, %p164_p1 }
   0x6   : > { %168 = sbr.rel (%p165_p2) target bundleno = 321 (0x141), region = 36 }
   0xb   : > { %v1845_v0 = vld [vmem:[%s2334_s1 + $0x78] sm:$0xff]   ;;  %v1849_v4 = vld [vmem:[%s2334_s1 + $0x70] sm:$0xff]   ;;  %v1853_v8 = vld [vmem:[%s2334_s1 + $0x68] sm:$0xff]   ;;  %s1469_s23 = sshll.u32 %s1464_s16, 3 }
   0xc   : > { %v1846_v1 = vld [vmem:[%s2334_s1 + $0xf8] sm:$0xff]   ;;  %1624 = vmatprep.subr.bf16.mxu0 %v1845_v0  ;;  %v1850_v5 = vld [vmem:[%s2334_s1 + $0xf0] sm:$0xff]   ;;  %v1854_v9 = vld [vmem:[%s2334_s1 + $0xe8] sm:$0xff]   ;;  %p192_p3 = scmp.lt.s32.totalorder %s1469_s23, 15 }
   0xd   : > { %v1847_v2 = vld [vmem:[%s2334_s1 + $0x38] sm:$0xff]   ;;  %1664 = vmatprep.subr.bf16.mxu1 %v1846_v1  ;;  %v1851_v6 = vld [vmem:[%s2334_s1 + $0x30] sm:$0xff]   ;;  %v1855_v10 = vld [vmem:[%s2334_s1 + $0x28] sm:$0xff]  }
   0xe   : > { %v1848_v3 = vld [vmem:[%s2334_s1 + $0xb8] sm:$0xff]   ;;  %1625 = vmatpush3.bf16.msra.mxu0 %v1847_v2  ;;  %v1852_v7 = vld [vmem:[%s2334_s1 + $0xb0] sm:$0xff]   ;;  %v1856_v11 = vld [vmem:[%s2334_s1 + $0xa8] sm:$0xff]   ;;  %s2355_s23 = smov (!%p192_p3, %s1469_s23), 15 }
   0xf   : > { %1665 = vmatpush3.bf16.msra.mxu1 %v1848_v3  ;;  %1626 = vmatprep.subr.bf16.mxu0 %v1849_v4  ;;  %v1857_v12 = vld [vmem:[%s2334_s1 + $0x60] sm:$0xff]   ;;  %v1861_v16 = vld [vmem:[%s2334_s1 + $0x58] sm:$0xff]   ;;  %v1865_v20 = vld [vmem:[%s2334_s1 + $0x50] sm:$0xff]   ;;  %s1836_s21 = smul.u32 36, %s2355_s23  ;;  %s1472_s28 = sshll.u32 %s2355_s23, 2 }
  0x10   : > { %1666 = vmatprep.subr.bf16.mxu1 %v1850_v5  ;;  %v1858_v13 = vld [vmem:[%s2334_s1 + $0xe0] sm:$0xff]   ;;  %v1862_v17 = vld [vmem:[%s2334_s1 + $0xd8] sm:$0xff]   ;;  %v1866_v21 = vld [vmem:[%s2334_s1 + $0xd0] sm:$0xff]   ;;  %s202_s5 = scalar_lea.vmem %s2337_s4, %s1472_s28 }
  0x11   : > { %v1859_v14 = vld [vmem:[%s2334_s1 + $0x20] sm:$0xff]   ;;  %v1863_v18 = vld [vmem:[%s2334_s1 + $0x18] sm:$0xff]   ;;  %v1867_v22 = vld [vmem:[%s2334_s1 + $0x10] sm:$0xff]   ;;  %s2108_s6 = scalar_lea.vmem %s2333_s0, %s1836_s21 }
  0x12   : > { %1627 = vmatpush3.bf16.msra.mxu0 %v1851_v6  ;;  %v1860_v15 = vld [vmem:[%s2334_s1 + $0xa0] sm:$0xff]   ;;  %v1864_v19 = vld [vmem:[%s2334_s1 + $0x98] sm:$0xff]   ;;  %v1868_v23 = vld [vmem:[%s2334_s1 + $0x90] sm:$0xff]  }
  0x13   : > { %1667 = vmatpush3.bf16.msra.mxu1 %v1852_v7  ;;  %1628 = vmatprep.subr.bf16.mxu0 %v1853_v8  ;;  %v1869_v24 = vld [vmem:[%s2334_s1 + $0x48] sm:$0xff]   ;;  %v1873_v28 = vld [vmem:[%s2334_s1 + $0x40] sm:$0xff]   ;;  %v1883_v36 = vld [vmem:[%s2334_s1 + $0x178] sm:$0xff]  }
  0x14   : > { %1668 = vmatprep.subr.bf16.mxu1 %v1854_v9  ;;  %v1870_v25 = vld [vmem:[%s2334_s1 + $0xc8] sm:$0xff]   ;;  %v1874_v29 = vld [vmem:[%s2334_s1 + $0xc0] sm:$0xff]   ;;  %v1884_v37 = vld [vmem:[%s2334_s1 + $0x1f8] sm:$0xff]  }
  0x15   : > { %v1871_v26 = vld [vmem:[%s2334_s1 + $0x8] sm:$0xff]   ;;  %v1875_v30 = vld [vmem:[%s2334_s1] sm:$0xff]   ;;  %v1885_v38 = vld [vmem:[%s2334_s1 + $0x138] sm:$0xff]  }
  0x16   : > { %1629 = vmatpush3.bf16.msra.mxu0 %v1855_v10  ;;  %v1872_v27 = vld [vmem:[%s2334_s1 + $0x88] sm:$0xff]   ;;  %v1876_v31 = vld [vmem:[%s2334_s1 + $0x80] sm:$0xff]   ;;  %v1886_v39 = vld [vmem:[%s2334_s1 + $0x1b8] sm:$0xff]  }
  0x17   : > { %1669 = vmatpush3.bf16.msra.mxu1 %v1856_v11  ;;  %1630 = vmatprep.subr.bf16.mxu0 %v1857_v12  ;;  %v1877_v32 = vld [vmem:[%s2108_s6] ss:$36 sps:$4 sm:$0xff]   ;;  %v1880_v34 = vld [vmem:[%s2108_s6 + $0x8] ss:$36 sps:$4 sm:$0xff]   ;;  %v1887_v40 = vld [vmem:[%s2334_s1 + $0x170] sm:$0xff]  }
  0x18   : > { %1670 = vmatprep.subr.bf16.mxu1 %v1858_v13  ;;  %v1879_v33 = vld [vmem:[%s2108_s6 + $0x4] ss:$36 sps:$4 sm:$0xff]   ;;  %v1882_v35 = vld [vmem:[%s2108_s6 + $0xc] ss:$36 sps:$4 sm:$0xff]   ;;  %v1893_v45 = vld [vmem:[%s2108_s6 + $0x54] ss:$36 sps:$4 sm:$0xff]  }
  0x19   : > { %1037 = vmatprep.mubr.bf16.mxu0 %v1879_v33  ;;  %1102 = vmatprep.mubr.bf16.mxu1 %v1882_v35  ;;  %v1888_v41 = vld [vmem:[%s2334_s1 + $0x1f0] sm:$0xff]   ;;  %v1895_v46 = vld [vmem:[%s2108_s6 + $0x48] ss:$36 sps:$4 sm:$0xff]   ;;  %v1901_v52 = vld [vmem:[%s2334_s1 + $0x160] sm:$0xff]  }
  0x1a   : > { %1631 = vmatpush3.bf16.msra.mxu0 %v1859_v14  ;;  %v1889_v42 = vld [vmem:[%s2334_s1 + $0x130] sm:$0xff]   ;;  %v1897_v48 = vld [vmem:[%s2334_s1 + $0x168] sm:$0xff]   ;;  %v1902_v53 = vld [vmem:[%s2334_s1 + $0x1e0] sm:$0xff]  }
  0x1b   : > { %1671 = vmatpush3.bf16.msra.mxu1 %v1860_v15  ;;  %1632 = vmatprep.subr.bf16.mxu0 %v1861_v16  ;;  %v1890_v43 = vld [vmem:[%s2334_s1 + $0x1b0] sm:$0xff]   ;;  %v1898_v49 = vld [vmem:[%s2334_s1 + $0x1e8] sm:$0xff]   ;;  %v1903_v54 = vld [vmem:[%s2334_s1 + $0x120] sm:$0xff]  }
  0x1c   : > { %1672 = vmatprep.subr.bf16.mxu1 %v1862_v17  ;;  %v1891_v44 = vld [vmem:[%s2108_s6 + $0x4c] ss:$36 sps:$4 sm:$0xff]   ;;  %v1904_v55 = vld [vmem:[%s2334_s1 + $0x1a0] sm:$0xff]   ;;  %v1905_v56 = vld [vmem:[%s2108_s6 + $0x94] ss:$36 sps:$4 sm:$0xff]  }
  0x1d   : > { %v1896_v47 = vld [vmem:[%s2108_s6 + $0x50] ss:$36 sps:$4 sm:$0xff]   ;;  %v1899_v50 = vld [vmem:[%s2334_s1 + $0x128] sm:$0xff]   ;;  %v1907_v57 = vld [vmem:[%s2108_s6 + $0x9c] ss:$36 sps:$4 sm:$0xff]  }
  0x1e   : > { %1633 = vmatpush3.bf16.msra.mxu0 %v1863_v18  ;;  %v1900_v51 = vld [vmem:[%s2334_s1 + $0x1a8] sm:$0xff]   ;;  %v1909_v58 = vld [vmem:[%s2108_s6 + $0x90] ss:$36 sps:$4 sm:$0xff]   ;;  %v1910_v59 = vld [vmem:[%s2108_s6 + $0x98] ss:$36 sps:$4 sm:$0xff]  }
  0x1f   : > { %1673 = vmatpush3.bf16.msra.mxu1 %v1864_v19  ;;  %1634 = vmatprep.subr.bf16.mxu0 %v1865_v20  ;;  %v1911_v60 = vld [vmem:[%s2334_s1 + $0x158] sm:$0xff]   ;;  %v1915_v0 = vld [vmem:[%s2334_s1 + $0x150] sm:$0xff]   ;;  %v1921_v5 = vld [vmem:[%s2108_s6 + $0xe4] ss:$36 sps:$4 sm:$0xff]  }
  0x20   : > { %1674 = vmatprep.subr.bf16.mxu1 %v1866_v21  ;;  %v1912_v61 = vld [vmem:[%s2334_s1 + $0x1d8] sm:$0xff]   ;;  %v1916_v1 = vld [vmem:[%s2334_s1 + $0x1d0] sm:$0xff]   ;;  %v1924_v7 = vld [vmem:[%s2108_s6 + $0xe0] ss:$36 sps:$4 sm:$0xff]  }
  0x21   : > { %v1913_v62 = vld [vmem:[%s2334_s1 + $0x118] sm:$0xff]   ;;  %v1917_v2 = vld [vmem:[%s2334_s1 + $0x110] sm:$0xff]   ;;  %v1925_v8 = vld [vmem:[%s2334_s1 + $0x148] sm:$0xff]  }
  0x22   : > { %1635 = vmatpush3.bf16.msra.mxu0 %v1867_v22  ;;  %v1914_v63 = vld [vmem:[%s2334_s1 + $0x198] sm:$0xff]   ;;  %v1918_v3 = vld [vmem:[%s2334_s1 + $0x190] sm:$0xff]   ;;  %v1926_v9 = vld [vmem:[%s2334_s1 + $0x1c8] sm:$0xff]  }
  0x23   : > { %1675 = vmatpush3.bf16.msra.mxu1 %v1868_v23  ;;  %1636 = vmatprep.subr.bf16.mxu0 %v1869_v24  ;;  %v1919_v4 = vld [vmem:[%s2108_s6 + $0xdc] ss:$36 sps:$4 sm:$0xff]   ;;  %v1927_v10 = vld [vmem:[%s2334_s1 + $0x108] sm:$0xff]   ;;  %v1933_v16 = vld [vmem:[%s2108_s6 + $0x10] ss:$36 sps:$4 sm:$0xff]  }
  0x24   : > { %1676 = vmatprep.subr.bf16.mxu1 %v1870_v25  ;;  %v1923_v6 = vld [vmem:[%s2108_s6 + $0xd8] ss:$36 sps:$4 sm:$0xff]   ;;  %v1928_v11 = vld [vmem:[%s2334_s1 + $0x188] sm:$0xff]   ;;  %v1929_v12 = vld [vmem:[%s2334_s1 + $0x140] sm:$0xff]  }
  0x25   : > { %v1930_v13 = vld [vmem:[%s2334_s1 + $0x1c0] sm:$0xff]   ;;  %v1935_v17 = vld [vmem:[%s2108_s6 + $0x14] ss:$36 sps:$4 sm:$0xff]   ;;  %v1957_v33 = vld [vmem:[%s2108_s6 + $0xec] ss:$36 sps:$4 sm:$0xff]  }
  0x26   : > { %1637 = vmatpush3.bf16.msra.mxu0 %v1871_v26  ;;  %v1931_v14 = vld [vmem:[%s2334_s1 + $0x100] sm:$0xff]   ;;  %v1936_v18 = vld [vmem:[%s2108_s6 + $0x18] ss:$36 sps:$4 sm:$0xff]   ;;  %v1940_v21 = vld [vmem:[%s2334_s1 + $0x230] sm:$0xff]  }
  0x27   : > { %1677 = vmatpush3.bf16.msra.mxu1 %v1872_v27  ;;  %1638 = vmatprep.subr.bf16.mxu0 %v1873_v28  ;;  %v1932_v15 = vld [vmem:[%s2334_s1 + $0x180] sm:$0xff]   ;;  %v1939_v20 = vld [vmem:[%s2334_s1 + $0x238] sm:$0xff]   ;;  %v1947_v26 = vld [vmem:[%s2334_s1 + $0x228] sm:$0xff]  }
  0x28   : > { %1678 = vmatprep.subr.bf16.mxu1 %v1874_v29  ;;  %v1938_v19 = vld [vmem:[%s2108_s6 + $0x1c] ss:$36 sps:$4 sm:$0xff]   ;;  %v1943_v23 = vld [vmem:[%s2108_s6 + $0x64] ss:$36 sps:$4 sm:$0xff]   ;;  %v1951_v28 = vld [vmem:[%s2108_s6 + $0xac] ss:$36 sps:$4 sm:$0xff]  }
  0x29   : > { %v1941_v22 = vld [vmem:[%s2108_s6 + $0x5c] ss:$36 sps:$4 sm:$0xff]   ;;  %v1949_v27 = vld [vmem:[%s2108_s6 + $0xa4] ss:$36 sps:$4 sm:$0xff]   ;;  %v1956_v35 = vld [vmem:[%s2334_s1 + $0x210] sm:$0xff]  }
  0x2a   : > { %1639 = vmatpush3.bf16.msra.mxu0 %v1875_v30  ;;  %v1945_v24 = vld [vmem:[%s2108_s6 + $0x58] ss:$36 sps:$4 sm:$0xff]   ;;  %v1946_v25 = vld [vmem:[%s2108_s6 + $0x60] ss:$36 sps:$4 sm:$0xff]  }
  0x2b   : > { %1679 = vmatpush3.bf16.msra.mxu1 %v1876_v31  ;;  %1704 = vmatprep.subr.bf16.mxu0 %v1883_v36  ;;  %v1948_v29 = vld [vmem:[%s2334_s1 + $0x220] sm:$0xff]   ;;  %v1954_v31 = vld [vmem:[%s2108_s6 + $0xa8] ss:$36 sps:$4 sm:$0xff]  }
  0x2c   : > { %1744 = vmatprep.subr.bf16.mxu1 %v1884_v37  ;;  %v1953_v30 = vld [vmem:[%s2108_s6 + $0xa0] ss:$36 sps:$4 sm:$0xff]   ;;  %v1961_v36 = vld [vmem:[%s2108_s6 + $0xe8] ss:$36 sps:$4 sm:$0xff]  }
  0x2d   : > { %1038 = vmatmul.mubr.bf16.vlgmr.msra.gmra.mxu0 %v1877_v32  ;;  %v1955_v32 = vld [vmem:[%s2334_s1 + $0x218] sm:$0xff]   ;;  %v1963_v37 = vld [vmem:[%s2334_s1 + $0x208] sm:$0xff]  }
  0x2e   : > { %1103 = vmatmul.mubr.bf16.vlgmr.msra.gmra.mxu1 %v1880_v34  ;;  %1705 = vmatpush3.bf16.msra.mxu0 %v1885_v38  ;;  %v1959_v34 = vld [vmem:[%s2108_s6 + $0xf4] ss:$36 sps:$4 sm:$0xff]  }
  0x2f   : > { %1745 = vmatpush3.bf16.msra.mxu1 %v1886_v39  ;;  %1706 = vmatprep.subr.bf16.mxu0 %v1887_v40  ;;  %v1962_v38 = vld [vmem:[%s2108_s6 + $0xf0] ss:$36 sps:$4 sm:$0xff]   ;;  %v1965_v39 = vld [vmem:[%s2108_s6 + $0x20] ss:$36 sps:$4 sm:$0xff]  }
  0x30   : > { %1746 = vmatprep.subr.bf16.mxu1 %v1888_v41  ;;  %1045 = vmatprep.mubr.bf16.mxu0 %v1891_v44  ;;  %v1966_v40 = vld [vmem:[%s2108_s6 + $0xb0] ss:$36 sps:$4 sm:$0xff]   ;;  %v1964_v41 = vld [vmem:[%s2334_s1 + $0x200] sm:$0xff]  }
  0x31   : > { %1110 = vmatprep.mubr.bf16.mxu1 %v1893_v45 }
  0x32   : > { %1707 = vmatpush3.bf16.msra.mxu0 %v1889_v42  ;;  %v1967_v42 = vld [vmem:[%s2108_s6 + $0x68] ss:$36 sps:$4 sm:$0xff]  }
  0x33   : > { %1747 = vmatpush3.bf16.msra.mxu1 %v1890_v43  ;;  %1708 = vmatprep.subr.bf16.mxu0 %v1897_v48  ;;  %v1968_v43 = vld [vmem:[%s2108_s6 + $0xf8] ss:$36 sps:$4 sm:$0xff]  }
  0x34   : > { %1748 = vmatprep.subr.bf16.mxu1 %v1898_v49 }
  0x35   : > { %1046 = vmatmul.mubr.bf16.gmra.mxu0 %v1895_v46 }
  0x36   : > { %1111 = vmatmul.mubr.bf16.gmra.mxu1 %v1896_v47  ;;  %1709 = vmatpush3.bf16.msra.mxu0 %v1899_v50 }
  0x37   : > { %1749 = vmatpush3.bf16.msra.mxu1 %v1900_v51  ;;  %1710 = vmatprep.subr.bf16.mxu0 %v1901_v52 }
  0x38   : > { %1750 = vmatprep.subr.bf16.mxu1 %v1902_v53  ;;  %1053 = vmatprep.mubr.bf16.mxu0 %v1905_v56 }
  0x39   : > { %1118 = vmatprep.mubr.bf16.mxu1 %v1907_v57 }
  0x3a   : > { %1711 = vmatpush3.bf16.msra.mxu0 %v1903_v54 }
  0x3b   : > { %1751 = vmatpush3.bf16.msra.mxu1 %v1904_v55  ;;  %1712 = vmatprep.subr.bf16.mxu0 %v1911_v60 }
  0x3c   : > { %1752 = vmatprep.subr.bf16.mxu1 %v1912_v61 }
  0x3d   : > { %1054 = vmatmul.mubr.bf16.gmra.mxu0 %v1909_v58 }
  0x3e   : > { %1119 = vmatmul.mubr.bf16.gmra.mxu1 %v1910_v59  ;;  %1713 = vmatpush3.bf16.msra.mxu0 %v1913_v62 }
  0x3f   : > { %1753 = vmatpush3.bf16.msra.mxu1 %v1914_v63  ;;  %1714 = vmatprep.subr.bf16.mxu0 %v1915_v0 }
  0x40   : > { %1754 = vmatprep.subr.bf16.mxu1 %v1916_v1  ;;  %1061 = vmatprep.mubr.bf16.mxu0 %v1919_v4 }
  0x41   : > { %1126 = vmatprep.mubr.bf16.mxu1 %v1921_v5 }
  0x42   : > { %1715 = vmatpush3.bf16.msra.mxu0 %v1917_v2 }
  0x43   : > { %1755 = vmatpush3.bf16.msra.mxu1 %v1918_v3  ;;  %1716 = vmatprep.subr.bf16.mxu0 %v1925_v8 }
  0x44   : > { %1756 = vmatprep.subr.bf16.mxu1 %v1926_v9 }
  0x45   : > { %1062 = vmatmul.mubr.bf16.gmra.mxu0 %v1923_v6 }
  0x46   : > { %1127 = vmatmul.mubr.bf16.gmra.mxu1 %v1924_v7  ;;  %1717 = vmatpush3.bf16.msra.mxu0 %v1927_v10 }
  0x47   : > { %1757 = vmatpush3.bf16.msra.mxu1 %v1928_v11  ;;  %1718 = vmatprep.subr.bf16.mxu0 %v1929_v12 }
  0x48   : > { %1758 = vmatprep.subr.bf16.mxu1 %v1930_v13  ;;  %1167 = vmatprep.mubr.bf16.mxu0 %v1935_v17 }
  0x49   : > { %1232 = vmatprep.mubr.bf16.mxu1 %v1938_v19 }
  0x4a   : > { %1719 = vmatpush3.bf16.msra.mxu0 %v1931_v14 }
  0x4b   : > { %1759 = vmatpush3.bf16.msra.mxu1 %v1932_v15  ;;  %1796 = vmatprep.subr.bf16.mxu0 %v1939_v20 }
  0x4c   : > { %1820 = vmatprep.subr.bf16.mxu1 %v1939_v20 }
  0x4d   : > { %1168 = vmatmul.mubr.bf16.vlgmr.msra.gmra.mxu0 %v1933_v16 }
  0x4e   : > { %1233 = vmatmul.mubr.bf16.vlgmr.msra.gmra.mxu1 %v1936_v18  ;;  %1797 = vmatpush3.bf16.msra.mxu0 %v1939_v20 }
  0x4f   : > { %1828 = vmatpush3.bf16.msra.mxu1 %v1939_v20  ;;  %1798 = vmatprep.subr.bf16.mxu0 %v1940_v21 }
  0x50   : > { %1821 = vmatprep.subr.bf16.mxu1 %v1940_v21  ;;  %1175 = vmatprep.mubr.bf16.mxu0 %v1941_v22 }
  0x51   : > { %1240 = vmatprep.mubr.bf16.mxu1 %v1943_v23 }
  0x52   : > { %1799 = vmatpush3.bf16.msra.mxu0 %v1940_v21 }
  0x53   : > { %1829 = vmatpush3.bf16.msra.mxu1 %v1940_v21  ;;  %1800 = vmatprep.subr.bf16.mxu0 %v1947_v26 }
  0x54   : > { %1822 = vmatprep.subr.bf16.mxu1 %v1947_v26 }
  0x55   : > { %1176 = vmatmul.mubr.bf16.gmra.mxu0 %v1945_v24 }
  0x56   : > { %1241 = vmatmul.mubr.bf16.gmra.mxu1 %v1946_v25  ;;  %1183 = vmatprep.mubr.bf16.mxu0 %v1949_v27 }
  0x57   : > { %1801 = vmatpush3.bf16.msra.mxu0 %v1947_v26  ;;  %1248 = vmatprep.mubr.bf16.mxu1 %v1951_v28 }
  0x58   : > { %1830 = vmatpush3.bf16.msra.mxu1 %v1947_v26  ;;  %1802 = vmatprep.subr.bf16.mxu0 %v1948_v29 }
  0x59   : > { %1823 = vmatprep.subr.bf16.mxu1 %v1948_v29 }
  0x5b   : > { %1803 = vmatpush3.bf16.msra.mxu0 %v1948_v29 }
  0x5c   : > { %1831 = vmatpush3.bf16.msra.mxu1 %v1948_v29  ;;  %1804 = vmatprep.subr.bf16.mxu0 %v1955_v32 }
  0x5d   : > { %1184 = vmatmul.mubr.bf16.gmra.mxu0 %v1953_v30  ;;  %1824 = vmatprep.subr.bf16.mxu1 %v1955_v32 }
  0x5e   : > { %1249 = vmatmul.mubr.bf16.gmra.mxu1 %v1954_v31  ;;  %1191 = vmatprep.mubr.bf16.mxu0 %v1957_v33 }
  0x5f   : > { %1805 = vmatpush3.bf16.msra.mxu0 %v1955_v32  ;;  %1256 = vmatprep.mubr.bf16.mxu1 %v1959_v34 }
  0x60   : > { %1832 = vmatpush3.bf16.msra.mxu1 %v1955_v32  ;;  %1806 = vmatprep.subr.bf16.mxu0 %v1956_v35 }
  0x61   : > { %1825 = vmatprep.subr.bf16.mxu1 %v1956_v35 }
  0x63   : > { %1807 = vmatpush3.bf16.msra.mxu0 %v1956_v35 }
  0x64   : > { %1833 = vmatpush3.bf16.msra.mxu1 %v1956_v35  ;;  %1808 = vmatprep.subr.bf16.mxu0 %v1963_v37 }
  0x65   : > { %1192 = vmatmul.mubr.bf16.gmra.mxu0 %v1961_v36  ;;  %1826 = vmatprep.subr.bf16.mxu1 %v1963_v37 }
  0x66   : > { %1257 = vmatmul.mubr.bf16.gmra.mxu1 %v1962_v38  ;;  %1812 = vmatprep.mubr.bf16.mxu0 %v1965_v39 }
  0x67   : > { %1809 = vmatpush3.bf16.msra.mxu0 %v1963_v37  ;;  %1816 = vmatprep.mubr.bf16.mxu1 %v1966_v40 }
  0x68   : > { %1834 = vmatpush3.bf16.msra.mxu1 %v1963_v37  ;;  %1810 = vmatprep.subr.bf16.mxu0 %v1964_v41 }
  0x69   : > { %1827 = vmatprep.subr.bf16.mxu1 %v1964_v41 }
  0x6b   : > { %1811 = vmatpush3.bf16.msra.mxu0 %v1964_v41 }
  0x6c   : > { %1835 = vmatpush3.bf16.msra.mxu1 %v1964_v41 }
  0x6e   : > { %1813 = vmatmul.mubr.bf16.vlgmr.msra.gmra.mxu0 %v1967_v42 }
  0x6f   : > { %1817 = vmatmul.mubr.bf16.vlgmr.msra.gmra.mxu1 %v1968_v43 }
  0xed   : > { %v1640_v44 = vpop.f32.mrf.mxu0 }
  0xee   : > { %v1680_v45 = vpop.f32.mrf.mxu1 }
  0xef   : > { %v1641_v46 = vpop.f32.mrf.mxu0 }
  0xf0   : > { %v1681_v47 = vpop.f32.mrf.mxu1  ;;  %v1642_v33 = vadd.f32 %v1641_v46, %v1640_v44 }
  0xf1   : > { %v2272_v48 = vpop.f32.mrf.mxu0  ;;  %v1682_v34 = vadd.f32 %v1681_v47, %v1680_v45 }
  0xf2   : > { %v2274_v49 = vpop.f32.mrf.mxu1 }
  0xf3   : > { %v2276_v50 = vpop.f32.mrf.mxu0 }
  0xf4   : > { %v2278_v51 = vpop.f32.mrf.mxu1 }
  0xf5   : > { %v1646_v52 = vpop.f32.mrf.mxu0 }
  0xf6   : > { %v1686_v53 = vpop.f32.mrf.mxu1 }
  0xf7   : > { %v1647_v54 = vpop.f32.mrf.mxu0 }
  0xf8   : > { %v1687_v55 = vpop.f32.mrf.mxu1  ;;  %v1648_v37 = vadd.f32 %v1647_v54, %v1646_v52  ;;  %v1685_v54 = vadd.f32 %v2278_v51, %v2274_v49 }
  0xf9   : > { %v1649_v56 = vpop.f32.mrf.mxu0  ;;  %v1688_v38 = vadd.f32 %v1687_v55, %v1686_v53  ;;  %v1645_v53 = vadd.f32 %v2276_v50, %v2272_v48 }
  0xfa   : > { %v1689_v57 = vpop.f32.mrf.mxu1 }
  0xfb   : > { %v1650_v58 = vpop.f32.mrf.mxu0  ;;  %v1113_v46 = vadd.f32 %v1688_v38, %v1648_v37 }
  0xfc   : > { %v1690_v59 = vpop.f32.mrf.mxu1  ;;  %v1651_v41 = vadd.f32 %v1650_v58, %v1649_v56 }
  0xfd   : > { %v1652_v60 = vpop.f32.mrf.mxu0  ;;  %v1691_v42 = vadd.f32 %v1690_v59, %v1689_v57 }
  0xfe   : > { %v1692_v61 = vpop.f32.mrf.mxu1 }
  0xff   : > { %v1653_v62 = vpop.f32.mrf.mxu0  ;;  %v1116_v55 = vadd.f32 %v1691_v42, %v1651_v41 }
 0x100   : > { %v1693_v63 = vpop.f32.mrf.mxu1 }
 0x101   : > { %v2280_v0 = vpop.f32.mrf.mxu0 }
 0x102   : > { %v2282_v1 = vpop.f32.mrf.mxu1 }
 0x103   : > { %v2284_v2 = vpop.f32.mrf.mxu0 }
 0x104   : > { %v2286_v3 = vpop.f32.mrf.mxu1 }
 0x105   : > { %2338 = vst [vmem:[#allocation2_spill] sm:$0xff] %v2286_v3  ;;  %v1658_v4 = vpop.f32.mrf.mxu0 }
 0x106   : > { %v1698_v5 = vpop.f32.mrf.mxu1 }
 0x107   : > { %v1659_v6 = vpop.f32.mrf.mxu0 }
 0x108   : > { %v1699_v7 = vpop.f32.mrf.mxu1  ;;  %v1660_v39 = vadd.f32 %v1659_v6, %v1658_v4 }
 0x109   : > { %v1661_v8 = vpop.f32.mrf.mxu0  ;;  %v1700_v40 = vadd.f32 %v1699_v7, %v1698_v5 }
 0x10a   : > { %v1701_v9 = vpop.f32.mrf.mxu1 }
 0x10b   : > { %v1662_v10 = vpop.f32.mrf.mxu0  ;;  %v1129_v47 = vadd.f32 %v1700_v40, %v1660_v39 }
 0x10c   : > { %v1702_v11 = vpop.f32.mrf.mxu1  ;;  %v2346_v4 = vld [vmem:[#allocation2_spill] sm:$0xff] }
 0x10d   : > { %v1720_v12 = vpop.f32.mrf.mxu0  ;;  %v1703_v3 = vadd.f32 %v1702_v11, %v1701_v9  ;;  %v1697_v5 = vadd.f32 %v2346_v4, %v2282_v1 }
 0x10e   : > { %v2288_v13 = vpop.f32.mrf.mxu1 }
 0x10f   : > { %2339 = vst [vmem:[#allocation3_spill] sm:$0xff] %v2288_v13  ;;  %v1721_v14 = vpop.f32.mrf.mxu0  ;;  %v1663_v13 = vadd.f32 %v1662_v10, %v1661_v8  ;;  %v1108_v10 = vadd.f32 %v1685_v54, %v1645_v53 }
 0x110   : > { %v2290_v15 = vpop.f32.mrf.mxu1 }
 0x111   : > { %2340 = vst [vmem:[#allocation4_spill] sm:$0xff] %v2290_v15  ;;  %v1723_v16 = vpop.f32.mrf.mxu0  ;;  %v1105_v15 = vadd.f32 %v1682_v34, %v1642_v33  ;;  %v1132_v6 = vadd.f32 %v1703_v3, %v1663_v13 }
 0x112   : > { %v2292_v17 = vpop.f32.mrf.mxu1 }
 0x113   : > { %2341 = vst [vmem:[#allocation5_spill] sm:$0xff] %v2292_v17  ;;  %v1724_v18 = vpop.f32.mrf.mxu0  ;;  %v1654_v17 = vadd.f32 %v1653_v62, %v1652_v60 }
 0x114   : > { %v2294_v19 = vpop.f32.mrf.mxu1  ;;  %v1725_v49 = vadd.f32 %v1724_v18, %v1723_v16 }
 0x115   : > { %2342 = vst [vmem:[#allocation6_spill] sm:$0xff] %v2294_v19  ;;  %v1726_v20 = vpop.f32.mrf.mxu0 }
 0x116   : > { %v1766_v21 = vpop.f32.mrf.mxu1  ;;  %v1173_v16 = vadd.f32 %v1725_v49, %v1108_v10 }
 0x117   : > { %v1727_v22 = vpop.f32.mrf.mxu0 }
 0x118   : > { %v1767_v23 = vpop.f32.mrf.mxu1 }
 0x119   : > { %v1729_v24 = vpop.f32.mrf.mxu0  ;;  %v1768_v51 = vadd.f32 %v1767_v23, %v1766_v21 }
 0x11a   : > { %v2296_v25 = vpop.f32.mrf.mxu1 }
 0x11b   : > { %2343 = vst [vmem:[#allocation7_spill] sm:$0xff] %v2296_v25  ;;  %v1730_v26 = vpop.f32.mrf.mxu0  ;;  %v1728_v25 = vadd.f32 %v1727_v22, %v1726_v20  ;;  %v2348_v20 = vld [vmem:[#allocation4_spill] sm:$0xff] }
 0x11c   : > { %v2298_v27 = vpop.f32.mrf.mxu1 }
 0x11d   : > { %2344 = vst [vmem:[#allocation8_spill] sm:$0xff] %v2298_v27  ;;  %v1732_v28 = vpop.f32.mrf.mxu0  ;;  %v1694_v27 = vadd.f32 %v1693_v63, %v1692_v61  ;;  %v1178_v60 = vadd.f32 %v1728_v25, %v1113_v46  ;;  %v1731_v61 = vadd.f32 %v1730_v26, %v1729_v24  ;;  %v1657_v63 = vadd.f32 %v2284_v2, %v2280_v0 }
 0x11e   : > { %v1772_v29 = vpop.f32.mrf.mxu1 }
 0x11f   : > { %v1733_v30 = vpop.f32.mrf.mxu0  ;;  %v1121_v59 = vadd.f32 %v1694_v27, %v1654_v17  ;;  %v1181_v0 = vadd.f32 %v1731_v61, %v1116_v55  ;;  %v1243_v24 = vadd.f32 %v1768_v51, %v1178_v60  ;;  %v1124_v1 = vadd.f32 %v1697_v5, %v1657_v63 }
 0x120   : > { %v1773_v31 = vpop.f32.mrf.mxu1  ;;  %v1734_v56 = vadd.f32 %v1733_v30, %v1732_v28 }
 0x121   : > { %v1735_v32 = vpop.f32.mrf.mxu0  ;;  %v1774_v3 = vadd.f32 %v1773_v31, %v1772_v29  ;;  %v2352_v29 = vld [vmem:[#allocation6_spill] sm:$0xff] }
 0x122   : > { %v2300_v35 = vpop.f32.mrf.mxu1  ;;  %v1186_v11 = vadd.f32 %v1734_v56, %v1121_v59  ;;  %v2349_v18 = vld [vmem:[#allocation7_spill] sm:$0xff] }
 0x123   : > { %2345 = vst [vmem:[#allocation9_spill] sm:$0xff] %v2300_v35  ;;  %v1736_v36 = vpop.f32.mrf.mxu0  ;;  %v1722_v35 = vadd.f32 %v1721_v14, %v1720_v12 }
 0x124   : > { %v2302_v43 = vpop.f32.mrf.mxu1  ;;  %v1737_v12 = vadd.f32 %v1736_v36, %v1735_v32  ;;  %v2350_v21 = vld [vmem:[#allocation8_spill] sm:$0xff]  ;;  %v1251_v34 = vadd.f32 %v1774_v3, %v1186_v11  ;;  %v2351_v36 = vld [vmem:[#allocation5_spill] sm:$0xff] }
 0x125   : > { %v1738_v19 = vpop.f32.mrf.mxu0  ;;  %v1170_v8 = vadd.f32 %v1722_v35, %v1105_v15  ;;  %v1581_v15 = vld [vmem:[%s2335_s2] ss:$0 sm:$0xff]  ;;  %v1771_v23 = vadd.f32 %v2350_v21, %v2349_v18  ;;  %v1765_v31 = vadd.f32 %v2352_v29, %v2351_v36 }
 0x126   : > { %v1778_v44 = vpop.f32.mrf.mxu1  ;;  %v1189_v30 = vadd.f32 %v1737_v12, %v1124_v1 }
 0x127   : > { %v1739_v45 = vpop.f32.mrf.mxu0  ;;  %v1246_v40 = vadd.f32 %v1771_v23, %v1181_v0  ;;  %v1238_v55 = vadd.f32 %v1765_v31, %v1173_v16 }
 0x128   : > { %v1740_v52 = vadd.f32 %v1739_v45, %v1738_v19  ;;  %v1779_v57 = vpop.f32.mrf.mxu1  ;;  %v2347_v19 = vld [vmem:[#allocation3_spill] sm:$0xff] }
 0x129   : > { %v1741_v58 = vpop.f32.mrf.mxu0  ;;  %v1780_v7 = vadd.f32 %v1779_v57, %v1778_v44  ;;  %v1762_v22 = vadd.f32 %v2348_v20, %v2347_v19  ;;  %v1582_v44 = vld [vmem:[%s2336_s3] ss:$0 sm:$0xff] }
 0x12a   : > { %v1194_v62 = vadd.f32 %v1740_v52, %v1129_v47  ;;  %v1781_v48 = vpop.f32.mrf.mxu1  ;;  %v2353_v41 = vld [vmem:[#allocation9_spill] sm:$0xff] }
 0x12b   : > { %v1742_v50 = vpop.f32.mrf.mxu0  ;;  %v1235_v28 = vadd.f32 %v1762_v22, %v1170_v8  ;;  %v1777_v42 = vadd.f32 %v2302_v43, %v2353_v41 }
 0x12c   : > { %v1743_v9 = vadd.f32 %v1742_v50, %v1741_v58  ;;  %v1782_v14 = vpop.f32.mrf.mxu1  ;;  %v1259_v17 = vadd.f32 %v1780_v7, %v1194_v62 }
 0x12d   : > { %v1783_v13 = vadd.f32 %v1782_v14, %v1781_v48  ;;  %v1254_v59 = vadd.f32 %v1777_v42, %v1189_v30 }
 0x12e   : > { %v1197_v2 = vadd.f32 %v1743_v9, %v1132_v6  ;;  %v1814_v25 = vpop.f32.mrf.mxu0 }
 0x12f   : > { %v1308_v26 = vadd.f32 %v1814_v25, %v1243_v24  ;;  %v1818_v27 = vpop.f32.mrf.mxu1 }
 0x130   : > { %v1324_v32 = vadd.f32 %v1818_v27, %v1259_v17  ;;  %v1299_v33 = vpop.f32.mrf.mxu0  ;;  %v1262_v35 = vadd.f32 %v1783_v13, %v1197_v2 }
 0x131   : > { %v1339_v37 = vmul.f32 %v1581_v15, %v1308_v26  ;;  %v1300_v38 = vadd.f32 %v1299_v33, %v1235_v28  ;;  %v1315_v39 = vpop.f32.mrf.mxu1 }
 0x132   : > { %v1343_v45 = vmul.f32 %v1581_v15, %v1324_v32  ;;  %v1316_v46 = vadd.f32 %v1315_v39, %v1251_v34  ;;  %v1815_v47 = vpop.f32.mrf.mxu0 }
 0x133   : > { %v1337_v52 = vmul.f32 %v1581_v15, %v1300_v38  ;;  %v1311_v53 = vadd.f32 %v1815_v47, %v1246_v40  ;;  %v1819_v54 = vpop.f32.mrf.mxu1  ;;  %v1354_v60 = vadd.f32 %v1582_v44, %v1339_v37 }
 0x134   : > { %v1341_v56 = vmul.f32 %v1581_v15, %v1316_v46  ;;  %v1327_v57 = vadd.f32 %v1819_v54, %v1262_v35  ;;  %v1302_v58 = vpop.f32.mrf.mxu0  ;;  %v1358_v63 = vadd.f32 %v1582_v44, %v1343_v45 }
 0x135   : > { %v1340_v61 = vmul.f32 %v1581_v15, %v1311_v53  ;;  %v1303_v62 = vadd.f32 %v1302_v58, %v1238_v55  ;;  %v1318_v43 = vpop.f32.mrf.mxu1  ;;  %v1352_v6 = vadd.f32 %v1582_v44, %v1337_v52  ;;  %v1362_v51 = vmax.f32 %v1354_v60, 0.0 }
 0x136   : > { %v1344_v4 = vmul.f32 %v1581_v15, %v1327_v57  ;;  %v1319_v5 = vadd.f32 %v1318_v43, %v1254_v59  ;;  %v1356_v50 = vadd.f32 %v1582_v44, %v1341_v56  ;;  %v1366_v11 = vmax.f32 %v1358_v63, 0.0 }
 0x137   : > { %v1355_v7 = vadd.f32 %v1582_v44, %v1340_v61  ;;  %v1338_v48 = vmul.f32 %v1581_v15, %v1303_v62  ;;  %v1360_v17 = vmax.f32 %v1352_v6, 0.0 }
 0x138   : > { %v1359_v8 = vadd.f32 %v1582_v44, %v1344_v4  ;;  %v1342_v49 = vmul.f32 %v1581_v15, %v1319_v5  ;;  %v1364_v22 = vmax.f32 %v1356_v50, 0.0 }
 0x139   : > { %v1363_v9 = vmax.f32 %v1355_v7, 0.0  ;;  %v1353_v10 = vadd.f32 %v1582_v44, %v1338_v48 }
 0x13a   : > { %v1367_v12 = vmax.f32 %v1359_v8, 0.0  ;;  %v1357_v14 = vadd.f32 %v1582_v44, %v1342_v49 }
 0x13b   : > { %v1609_v19 = vpack.c.bf16 %v1363_v9, %v1362_v51  ;;  %v1361_v20 = vmax.f32 %v1353_v10, 0.0 }
 0x13c   : > { %v1619_v0 = vpack.c.bf16 %v1367_v12, %v1366_v11  ;;  %v1365_v2 = vmax.f32 %v1357_v14, 0.0 }
 0x13d   : > { %1621 = vst [vmem:[%s202_s5 + $0x8] sm:$0xff] %v1609_v19   ;;  %v1604_v24 = vpack.c.bf16 %v1361_v20, %v1360_v17 }
 0x13e   : > { %1623 = vst [vmem:[%s202_s5 + $0x18] sm:$0xff] %v1619_v0   ;;  %v1614_v1 = vpack.c.bf16 %v1365_v2, %v1364_v22 }
 0x13f   : > { %1605 = vst [vmem:[%s202_s5] sm:$0xff] %v1604_v24  }
 0x140   : > { %1622 = vst [vmem:[%s202_s5 + $0x10] sm:$0xff] %v1614_v1  }
 0x141 PF: > { %s14_s15 = sadd.s32 1, %s1975_s15  }
 0x142   : > { %p11_p4 = scmp.ge.s32.totalorder %s14_s15, 4  }
 0x144   :  { %13 = sbr.rel (!%p11_p4) target bundleno = 1 (0x1), region = 66 }

// kernel: vencoder_forward.11
= control target key start
LH: loop header
LB: loop body
LE: loop exit
PB: predicated region body
PF: predicated region fallthrough
CT: control target
= control target key end

     0   :  { %s2113_s18 = smov 0   ;;  %s2479_s0 = inlined_call_operand.vmem [shape: bf16[128,1152], index: 0, kind: input, shape index: {}]   ;;  %s2480_s1 = inlined_call_operand.vmem [shape: bf16[1152,128], index: 1, kind: input, shape index: {}]   ;;  %s2481_s2 = inlined_call_operand.vmem [shape: f32[1,128], index: 2, kind: input, shape index: {}]   ;;  %s2482_s3 = inlined_call_operand.vmem [shape: f32[1,128], index: 3, kind: input, shape index: {}]   ;;  %s2483_s4 = inlined_call_operand.vmem [shape: bf16[128,128], index: 4, kind: input, shape index: {}]   ;;  %s2484_s5 = inlined_call_operand.vmem [shape: bf16[128,128], index: 5, kind: output, shape index: {}]  }
   0x1 LB: > { %s1549_s19 = sadd.s32 4294967295, %s2081_s18   ;;  %p1553_p0 = scmp.ge.s32.totalorder %s2081_s18, 1  ;;  %s2081_s18 = sphi %s2113_s18, %s15_s18  }
   0x2   : > { %p200_p1 = scmp.lt.s32.totalorder %s2081_s18, 3 }
   0x4   : > { %p201_p2 = pnand %p1553_p0, %p200_p1 }
   0x6   : > { %204 = sbr.rel (%p201_p2) target bundleno = 323 (0x143), region = 40 }
   0xb   : > { %v1951_v0 = vld [vmem:[%s2480_s1 + $0x78] sm:$0xff]   ;;  %v1955_v4 = vld [vmem:[%s2480_s1 + $0x70] sm:$0xff]   ;;  %v1959_v8 = vld [vmem:[%s2480_s1 + $0x68] sm:$0xff]   ;;  %s1554_s27 = sshll.u32 %s1549_s19, 3 }
   0xc   : > { %v1952_v1 = vld [vmem:[%s2480_s1 + $0xf8] sm:$0xff]   ;;  %1730 = vmatprep.subr.bf16.mxu0 %v1951_v0  ;;  %v1956_v5 = vld [vmem:[%s2480_s1 + $0xf0] sm:$0xff]   ;;  %v1960_v9 = vld [vmem:[%s2480_s1 + $0xe8] sm:$0xff]   ;;  %p235_p3 = scmp.lt.s32.totalorder %s1554_s27, 15 }
   0xd   : > { %v1953_v2 = vld [vmem:[%s2480_s1 + $0x38] sm:$0xff]   ;;  %1770 = vmatprep.subr.bf16.mxu1 %v1952_v1  ;;  %v1957_v6 = vld [vmem:[%s2480_s1 + $0x30] sm:$0xff]   ;;  %v1961_v10 = vld [vmem:[%s2480_s1 + $0x28] sm:$0xff]  }
   0xe   : > { %v1954_v3 = vld [vmem:[%s2480_s1 + $0xb8] sm:$0xff]   ;;  %1731 = vmatpush3.bf16.msra.mxu0 %v1953_v2  ;;  %v1958_v7 = vld [vmem:[%s2480_s1 + $0xb0] sm:$0xff]   ;;  %v1962_v11 = vld [vmem:[%s2480_s1 + $0xa8] sm:$0xff]   ;;  %s2500_s27 = smov (!%p235_p3, %s1554_s27), 15 }
   0xf   : > { %1771 = vmatpush3.bf16.msra.mxu1 %v1954_v3  ;;  %1732 = vmatprep.subr.bf16.mxu0 %v1955_v4  ;;  %v1963_v12 = vld [vmem:[%s2480_s1 + $0x60] sm:$0xff]   ;;  %v1967_v16 = vld [vmem:[%s2480_s1 + $0x58] sm:$0xff]   ;;  %v1971_v20 = vld [vmem:[%s2480_s1 + $0x50] sm:$0xff]   ;;  %s1942_s26 = smul.u32 36, %s2500_s27 }
  0x10   : > { %1772 = vmatprep.subr.bf16.mxu1 %v1956_v5  ;;  %v1964_v13 = vld [vmem:[%s2480_s1 + $0xe0] sm:$0xff]   ;;  %v1968_v17 = vld [vmem:[%s2480_s1 + $0xd8] sm:$0xff]   ;;  %v1972_v21 = vld [vmem:[%s2480_s1 + $0xd0] sm:$0xff]  }
  0x11   : > { %v1965_v14 = vld [vmem:[%s2480_s1 + $0x20] sm:$0xff]   ;;  %v1969_v18 = vld [vmem:[%s2480_s1 + $0x18] sm:$0xff]   ;;  %v1973_v22 = vld [vmem:[%s2480_s1 + $0x10] sm:$0xff]   ;;  %s2219_s12 = scalar_lea.vmem %s2479_s0, %s1942_s26 }
  0x12   : > { %1733 = vmatpush3.bf16.msra.mxu0 %v1957_v6  ;;  %v1966_v15 = vld [vmem:[%s2480_s1 + $0xa0] sm:$0xff]   ;;  %v1970_v19 = vld [vmem:[%s2480_s1 + $0x98] sm:$0xff]   ;;  %v1974_v23 = vld [vmem:[%s2480_s1 + $0x90] sm:$0xff]  }
  0x13   : > { %1773 = vmatpush3.bf16.msra.mxu1 %v1958_v7  ;;  %1734 = vmatprep.subr.bf16.mxu0 %v1959_v8  ;;  %v1975_v24 = vld [vmem:[%s2480_s1 + $0x48] sm:$0xff]   ;;  %v1979_v28 = vld [vmem:[%s2480_s1 + $0x40] sm:$0xff]   ;;  %v1989_v36 = vld [vmem:[%s2480_s1 + $0x178] sm:$0xff]  }
  0x14   : > { %1774 = vmatprep.subr.bf16.mxu1 %v1960_v9  ;;  %v1976_v25 = vld [vmem:[%s2480_s1 + $0xc8] sm:$0xff]   ;;  %v1980_v29 = vld [vmem:[%s2480_s1 + $0xc0] sm:$0xff]   ;;  %v1990_v37 = vld [vmem:[%s2480_s1 + $0x1f8] sm:$0xff]  }
  0x15   : > { %v1977_v26 = vld [vmem:[%s2480_s1 + $0x8] sm:$0xff]   ;;  %v1981_v30 = vld [vmem:[%s2480_s1] sm:$0xff]   ;;  %v1991_v38 = vld [vmem:[%s2480_s1 + $0x138] sm:$0xff]  }
  0x16   : > { %1735 = vmatpush3.bf16.msra.mxu0 %v1961_v10  ;;  %v1978_v27 = vld [vmem:[%s2480_s1 + $0x88] sm:$0xff]   ;;  %v1982_v31 = vld [vmem:[%s2480_s1 + $0x80] sm:$0xff]   ;;  %v1992_v39 = vld [vmem:[%s2480_s1 + $0x1b8] sm:$0xff]  }
  0x17   : > { %1775 = vmatpush3.bf16.msra.mxu1 %v1962_v11  ;;  %1736 = vmatprep.subr.bf16.mxu0 %v1963_v12  ;;  %v1983_v32 = vld [vmem:[%s2219_s12] ss:$36 sps:$4 sm:$0xff]   ;;  %v1986_v34 = vld [vmem:[%s2219_s12 + $0x8] ss:$36 sps:$4 sm:$0xff]   ;;  %v1993_v40 = vld [vmem:[%s2480_s1 + $0x170] sm:$0xff]  }
  0x18   : > { %1776 = vmatprep.subr.bf16.mxu1 %v1964_v13  ;;  %v1985_v33 = vld [vmem:[%s2219_s12 + $0x4] ss:$36 sps:$4 sm:$0xff]   ;;  %v1988_v35 = vld [vmem:[%s2219_s12 + $0xc] ss:$36 sps:$4 sm:$0xff]   ;;  %v1999_v45 = vld [vmem:[%s2219_s12 + $0x54] ss:$36 sps:$4 sm:$0xff]  }
  0x19   : > { %1086 = vmatprep.mubr.bf16.mxu0 %v1985_v33  ;;  %1151 = vmatprep.mubr.bf16.mxu1 %v1988_v35  ;;  %v1994_v41 = vld [vmem:[%s2480_s1 + $0x1f0] sm:$0xff]   ;;  %v2001_v46 = vld [vmem:[%s2219_s12 + $0x48] ss:$36 sps:$4 sm:$0xff]   ;;  %v2007_v52 = vld [vmem:[%s2480_s1 + $0x160] sm:$0xff]  }
  0x1a   : > { %1737 = vmatpush3.bf16.msra.mxu0 %v1965_v14  ;;  %v1995_v42 = vld [vmem:[%s2480_s1 + $0x130] sm:$0xff]   ;;  %v2003_v48 = vld [vmem:[%s2480_s1 + $0x168] sm:$0xff]   ;;  %v2008_v53 = vld [vmem:[%s2480_s1 + $0x1e0] sm:$0xff]  }
  0x1b   : > { %1777 = vmatpush3.bf16.msra.mxu1 %v1966_v15  ;;  %1738 = vmatprep.subr.bf16.mxu0 %v1967_v16  ;;  %v1996_v43 = vld [vmem:[%s2480_s1 + $0x1b0] sm:$0xff]   ;;  %v2004_v49 = vld [vmem:[%s2480_s1 + $0x1e8] sm:$0xff]   ;;  %v2009_v54 = vld [vmem:[%s2480_s1 + $0x120] sm:$0xff]  }
  0x1c   : > { %1778 = vmatprep.subr.bf16.mxu1 %v1968_v17  ;;  %v1997_v44 = vld [vmem:[%s2219_s12 + $0x4c] ss:$36 sps:$4 sm:$0xff]   ;;  %v2010_v55 = vld [vmem:[%s2480_s1 + $0x1a0] sm:$0xff]   ;;  %v2011_v56 = vld [vmem:[%s2219_s12 + $0x94] ss:$36 sps:$4 sm:$0xff]  }
  0x1d   : > { %v2002_v47 = vld [vmem:[%s2219_s12 + $0x50] ss:$36 sps:$4 sm:$0xff]   ;;  %v2005_v50 = vld [vmem:[%s2480_s1 + $0x128] sm:$0xff]   ;;  %v2013_v57 = vld [vmem:[%s2219_s12 + $0x9c] ss:$36 sps:$4 sm:$0xff]  }
  0x1e   : > { %1739 = vmatpush3.bf16.msra.mxu0 %v1969_v18  ;;  %v2006_v51 = vld [vmem:[%s2480_s1 + $0x1a8] sm:$0xff]   ;;  %v2015_v58 = vld [vmem:[%s2219_s12 + $0x90] ss:$36 sps:$4 sm:$0xff]   ;;  %v2016_v59 = vld [vmem:[%s2219_s12 + $0x98] ss:$36 sps:$4 sm:$0xff]  }
  0x1f   : > { %1779 = vmatpush3.bf16.msra.mxu1 %v1970_v19  ;;  %1740 = vmatprep.subr.bf16.mxu0 %v1971_v20  ;;  %v2017_v60 = vld [vmem:[%s2480_s1 + $0x158] sm:$0xff]   ;;  %v2021_v0 = vld [vmem:[%s2480_s1 + $0x150] sm:$0xff]   ;;  %v2027_v5 = vld [vmem:[%s2219_s12 + $0xe4] ss:$36 sps:$4 sm:$0xff]  }
  0x20   : > { %1780 = vmatprep.subr.bf16.mxu1 %v1972_v21  ;;  %v2018_v61 = vld [vmem:[%s2480_s1 + $0x1d8] sm:$0xff]   ;;  %v2022_v1 = vld [vmem:[%s2480_s1 + $0x1d0] sm:$0xff]   ;;  %v2030_v7 = vld [vmem:[%s2219_s12 + $0xe0] ss:$36 sps:$4 sm:$0xff]  }
  0x21   : > { %v2019_v62 = vld [vmem:[%s2480_s1 + $0x118] sm:$0xff]   ;;  %v2023_v2 = vld [vmem:[%s2480_s1 + $0x110] sm:$0xff]   ;;  %v2031_v8 = vld [vmem:[%s2480_s1 + $0x148] sm:$0xff]  }
  0x22   : > { %1741 = vmatpush3.bf16.msra.mxu0 %v1973_v22  ;;  %v2020_v63 = vld [vmem:[%s2480_s1 + $0x198] sm:$0xff]   ;;  %v2024_v3 = vld [vmem:[%s2480_s1 + $0x190] sm:$0xff]   ;;  %v2032_v9 = vld [vmem:[%s2480_s1 + $0x1c8] sm:$0xff]  }
  0x23   : > { %1781 = vmatpush3.bf16.msra.mxu1 %v1974_v23  ;;  %1742 = vmatprep.subr.bf16.mxu0 %v1975_v24  ;;  %v2025_v4 = vld [vmem:[%s2219_s12 + $0xdc] ss:$36 sps:$4 sm:$0xff]   ;;  %v2033_v10 = vld [vmem:[%s2480_s1 + $0x108] sm:$0xff]   ;;  %v2039_v16 = vld [vmem:[%s2219_s12 + $0x10] ss:$36 sps:$4 sm:$0xff]  }
  0x24   : > { %1782 = vmatprep.subr.bf16.mxu1 %v1976_v25  ;;  %v2029_v6 = vld [vmem:[%s2219_s12 + $0xd8] ss:$36 sps:$4 sm:$0xff]   ;;  %v2034_v11 = vld [vmem:[%s2480_s1 + $0x188] sm:$0xff]   ;;  %v2035_v12 = vld [vmem:[%s2480_s1 + $0x140] sm:$0xff]  }
  0x25   : > { %v2036_v13 = vld [vmem:[%s2480_s1 + $0x1c0] sm:$0xff]   ;;  %v2041_v17 = vld [vmem:[%s2219_s12 + $0x14] ss:$36 sps:$4 sm:$0xff]   ;;  %v2063_v33 = vld [vmem:[%s2219_s12 + $0xec] ss:$36 sps:$4 sm:$0xff]  }
  0x26   : > { %1743 = vmatpush3.bf16.msra.mxu0 %v1977_v26  ;;  %v2037_v14 = vld [vmem:[%s2480_s1 + $0x100] sm:$0xff]   ;;  %v2042_v18 = vld [vmem:[%s2219_s12 + $0x18] ss:$36 sps:$4 sm:$0xff]   ;;  %v2046_v21 = vld [vmem:[%s2480_s1 + $0x230] sm:$0xff]  }
  0x27   : > { %1783 = vmatpush3.bf16.msra.mxu1 %v1978_v27  ;;  %1744 = vmatprep.subr.bf16.mxu0 %v1979_v28  ;;  %v2038_v15 = vld [vmem:[%s2480_s1 + $0x180] sm:$0xff]   ;;  %v2045_v20 = vld [vmem:[%s2480_s1 + $0x238] sm:$0xff]   ;;  %v2053_v26 = vld [vmem:[%s2480_s1 + $0x228] sm:$0xff]  }
  0x28   : > { %1784 = vmatprep.subr.bf16.mxu1 %v1980_v29  ;;  %v2044_v19 = vld [vmem:[%s2219_s12 + $0x1c] ss:$36 sps:$4 sm:$0xff]   ;;  %v2049_v23 = vld [vmem:[%s2219_s12 + $0x64] ss:$36 sps:$4 sm:$0xff]   ;;  %v2057_v28 = vld [vmem:[%s2219_s12 + $0xac] ss:$36 sps:$4 sm:$0xff]  }
  0x29   : > { %v2047_v22 = vld [vmem:[%s2219_s12 + $0x5c] ss:$36 sps:$4 sm:$0xff]   ;;  %v2055_v27 = vld [vmem:[%s2219_s12 + $0xa4] ss:$36 sps:$4 sm:$0xff]   ;;  %v2062_v35 = vld [vmem:[%s2480_s1 + $0x210] sm:$0xff]  }
  0x2a   : > { %1745 = vmatpush3.bf16.msra.mxu0 %v1981_v30  ;;  %v2051_v24 = vld [vmem:[%s2219_s12 + $0x58] ss:$36 sps:$4 sm:$0xff]   ;;  %v2052_v25 = vld [vmem:[%s2219_s12 + $0x60] ss:$36 sps:$4 sm:$0xff]  }
  0x2b   : > { %1785 = vmatpush3.bf16.msra.mxu1 %v1982_v31  ;;  %1810 = vmatprep.subr.bf16.mxu0 %v1989_v36  ;;  %v2054_v29 = vld [vmem:[%s2480_s1 + $0x220] sm:$0xff]   ;;  %v2060_v31 = vld [vmem:[%s2219_s12 + $0xa8] ss:$36 sps:$4 sm:$0xff]  }
  0x2c   : > { %1850 = vmatprep.subr.bf16.mxu1 %v1990_v37  ;;  %v2059_v30 = vld [vmem:[%s2219_s12 + $0xa0] ss:$36 sps:$4 sm:$0xff]   ;;  %v2067_v36 = vld [vmem:[%s2219_s12 + $0xe8] ss:$36 sps:$4 sm:$0xff]  }
  0x2d   : > { %1087 = vmatmul.mubr.bf16.vlgmr.msra.gmra.mxu0 %v1983_v32  ;;  %v2061_v32 = vld [vmem:[%s2480_s1 + $0x218] sm:$0xff]   ;;  %v2069_v37 = vld [vmem:[%s2480_s1 + $0x208] sm:$0xff]  }
  0x2e   : > { %1152 = vmatmul.mubr.bf16.vlgmr.msra.gmra.mxu1 %v1986_v34  ;;  %1811 = vmatpush3.bf16.msra.mxu0 %v1991_v38  ;;  %v2065_v34 = vld [vmem:[%s2219_s12 + $0xf4] ss:$36 sps:$4 sm:$0xff]  }
  0x2f   : > { %1851 = vmatpush3.bf16.msra.mxu1 %v1992_v39  ;;  %1812 = vmatprep.subr.bf16.mxu0 %v1993_v40  ;;  %v2068_v38 = vld [vmem:[%s2219_s12 + $0xf0] ss:$36 sps:$4 sm:$0xff]   ;;  %v2071_v39 = vld [vmem:[%s2219_s12 + $0x20] ss:$36 sps:$4 sm:$0xff]  }
  0x30   : > { %1852 = vmatprep.subr.bf16.mxu1 %v1994_v41  ;;  %1094 = vmatprep.mubr.bf16.mxu0 %v1997_v44  ;;  %v2072_v40 = vld [vmem:[%s2219_s12 + $0xb0] ss:$36 sps:$4 sm:$0xff]   ;;  %v2070_v41 = vld [vmem:[%s2480_s1 + $0x200] sm:$0xff]  }
  0x31   : > { %1159 = vmatprep.mubr.bf16.mxu1 %v1999_v45 }
  0x32   : > { %1813 = vmatpush3.bf16.msra.mxu0 %v1995_v42  ;;  %v2073_v42 = vld [vmem:[%s2219_s12 + $0x68] ss:$36 sps:$4 sm:$0xff]  }
  0x33   : > { %1853 = vmatpush3.bf16.msra.mxu1 %v1996_v43  ;;  %1814 = vmatprep.subr.bf16.mxu0 %v2003_v48  ;;  %v2074_v43 = vld [vmem:[%s2219_s12 + $0xf8] ss:$36 sps:$4 sm:$0xff]   ;;  %s1557_s12 = sshll.u32 %s2500_s27, 2 }
  0x34   : > { %1854 = vmatprep.subr.bf16.mxu1 %v2004_v49  ;;  %s2421_s19 = scalar_lea.vmem %s2483_s4, %s1557_s12  ;;  %s251_s20 = scalar_lea.vmem %s2484_s5, %s1557_s12 }
  0x35   : > { %1095 = vmatmul.mubr.bf16.gmra.mxu0 %v2001_v46 }
  0x36   : > { %1160 = vmatmul.mubr.bf16.gmra.mxu1 %v2002_v47  ;;  %1815 = vmatpush3.bf16.msra.mxu0 %v2005_v50 }
  0x37   : > { %1855 = vmatpush3.bf16.msra.mxu1 %v2006_v51  ;;  %1816 = vmatprep.subr.bf16.mxu0 %v2007_v52 }
  0x38   : > { %1856 = vmatprep.subr.bf16.mxu1 %v2008_v53  ;;  %1102 = vmatprep.mubr.bf16.mxu0 %v2011_v56 }
  0x39   : > { %1167 = vmatprep.mubr.bf16.mxu1 %v2013_v57 }
  0x3a   : > { %1817 = vmatpush3.bf16.msra.mxu0 %v2009_v54 }
  0x3b   : > { %1857 = vmatpush3.bf16.msra.mxu1 %v2010_v55  ;;  %1818 = vmatprep.subr.bf16.mxu0 %v2017_v60 }
  0x3c   : > { %1858 = vmatprep.subr.bf16.mxu1 %v2018_v61 }
  0x3d   : > { %1103 = vmatmul.mubr.bf16.gmra.mxu0 %v2015_v58 }
  0x3e   : > { %1168 = vmatmul.mubr.bf16.gmra.mxu1 %v2016_v59  ;;  %1819 = vmatpush3.bf16.msra.mxu0 %v2019_v62 }
  0x3f   : > { %1859 = vmatpush3.bf16.msra.mxu1 %v2020_v63  ;;  %1820 = vmatprep.subr.bf16.mxu0 %v2021_v0 }
  0x40   : > { %1860 = vmatprep.subr.bf16.mxu1 %v2022_v1  ;;  %1110 = vmatprep.mubr.bf16.mxu0 %v2025_v4 }
  0x41   : > { %1175 = vmatprep.mubr.bf16.mxu1 %v2027_v5 }
  0x42   : > { %1821 = vmatpush3.bf16.msra.mxu0 %v2023_v2 }
  0x43   : > { %1861 = vmatpush3.bf16.msra.mxu1 %v2024_v3  ;;  %1822 = vmatprep.subr.bf16.mxu0 %v2031_v8 }
  0x44   : > { %1862 = vmatprep.subr.bf16.mxu1 %v2032_v9 }
  0x45   : > { %1111 = vmatmul.mubr.bf16.gmra.mxu0 %v2029_v6 }
  0x46   : > { %1176 = vmatmul.mubr.bf16.gmra.mxu1 %v2030_v7  ;;  %1823 = vmatpush3.bf16.msra.mxu0 %v2033_v10 }
  0x47   : > { %1863 = vmatpush3.bf16.msra.mxu1 %v2034_v11  ;;  %1824 = vmatprep.subr.bf16.mxu0 %v2035_v12 }
  0x48   : > { %1864 = vmatprep.subr.bf16.mxu1 %v2036_v13  ;;  %1216 = vmatprep.mubr.bf16.mxu0 %v2041_v17 }
  0x49   : > { %1281 = vmatprep.mubr.bf16.mxu1 %v2044_v19 }
  0x4a   : > { %1825 = vmatpush3.bf16.msra.mxu0 %v2037_v14 }
  0x4b   : > { %1865 = vmatpush3.bf16.msra.mxu1 %v2038_v15  ;;  %1902 = vmatprep.subr.bf16.mxu0 %v2045_v20 }
  0x4c   : > { %1926 = vmatprep.subr.bf16.mxu1 %v2045_v20 }
  0x4d   : > { %1217 = vmatmul.mubr.bf16.vlgmr.msra.gmra.mxu0 %v2039_v16 }
  0x4e   : > { %1282 = vmatmul.mubr.bf16.vlgmr.msra.gmra.mxu1 %v2042_v18  ;;  %1903 = vmatpush3.bf16.msra.mxu0 %v2045_v20 }
  0x4f   : > { %1934 = vmatpush3.bf16.msra.mxu1 %v2045_v20  ;;  %1904 = vmatprep.subr.bf16.mxu0 %v2046_v21 }
  0x50   : > { %1927 = vmatprep.subr.bf16.mxu1 %v2046_v21  ;;  %1224 = vmatprep.mubr.bf16.mxu0 %v2047_v22 }
  0x51   : > { %1289 = vmatprep.mubr.bf16.mxu1 %v2049_v23 }
  0x52   : > { %1905 = vmatpush3.bf16.msra.mxu0 %v2046_v21 }
  0x53   : > { %1935 = vmatpush3.bf16.msra.mxu1 %v2046_v21  ;;  %1906 = vmatprep.subr.bf16.mxu0 %v2053_v26 }
  0x54   : > { %1928 = vmatprep.subr.bf16.mxu1 %v2053_v26 }
  0x55   : > { %1225 = vmatmul.mubr.bf16.gmra.mxu0 %v2051_v24 }
  0x56   : > { %1290 = vmatmul.mubr.bf16.gmra.mxu1 %v2052_v25  ;;  %1232 = vmatprep.mubr.bf16.mxu0 %v2055_v27 }
  0x57   : > { %1907 = vmatpush3.bf16.msra.mxu0 %v2053_v26  ;;  %1297 = vmatprep.mubr.bf16.mxu1 %v2057_v28 }
  0x58   : > { %1936 = vmatpush3.bf16.msra.mxu1 %v2053_v26  ;;  %1908 = vmatprep.subr.bf16.mxu0 %v2054_v29 }
  0x59   : > { %1929 = vmatprep.subr.bf16.mxu1 %v2054_v29 }
  0x5b   : > { %1909 = vmatpush3.bf16.msra.mxu0 %v2054_v29 }
  0x5c   : > { %1937 = vmatpush3.bf16.msra.mxu1 %v2054_v29  ;;  %1910 = vmatprep.subr.bf16.mxu0 %v2061_v32 }
  0x5d   : > { %1233 = vmatmul.mubr.bf16.gmra.mxu0 %v2059_v30  ;;  %1930 = vmatprep.subr.bf16.mxu1 %v2061_v32 }
  0x5e   : > { %1298 = vmatmul.mubr.bf16.gmra.mxu1 %v2060_v31  ;;  %1240 = vmatprep.mubr.bf16.mxu0 %v2063_v33 }
  0x5f   : > { %1911 = vmatpush3.bf16.msra.mxu0 %v2061_v32  ;;  %1305 = vmatprep.mubr.bf16.mxu1 %v2065_v34 }
  0x60   : > { %1938 = vmatpush3.bf16.msra.mxu1 %v2061_v32  ;;  %1912 = vmatprep.subr.bf16.mxu0 %v2062_v35 }
  0x61   : > { %1931 = vmatprep.subr.bf16.mxu1 %v2062_v35 }
  0x63   : > { %1913 = vmatpush3.bf16.msra.mxu0 %v2062_v35 }
  0x64   : > { %1939 = vmatpush3.bf16.msra.mxu1 %v2062_v35  ;;  %1914 = vmatprep.subr.bf16.mxu0 %v2069_v37 }
  0x65   : > { %1241 = vmatmul.mubr.bf16.gmra.mxu0 %v2067_v36  ;;  %1932 = vmatprep.subr.bf16.mxu1 %v2069_v37 }
  0x66   : > { %1306 = vmatmul.mubr.bf16.gmra.mxu1 %v2068_v38  ;;  %1918 = vmatprep.mubr.bf16.mxu0 %v2071_v39 }
  0x67   : > { %1915 = vmatpush3.bf16.msra.mxu0 %v2069_v37  ;;  %1922 = vmatprep.mubr.bf16.mxu1 %v2072_v40 }
  0x68   : > { %1940 = vmatpush3.bf16.msra.mxu1 %v2069_v37  ;;  %1916 = vmatprep.subr.bf16.mxu0 %v2070_v41  ;;  %v2426_v37 = vld [vmem:[%s2421_s19 + $0x8] sm:$0xff]  }
  0x69   : > { %1933 = vmatprep.subr.bf16.mxu1 %v2070_v41 }
  0x6b   : > { %1917 = vmatpush3.bf16.msra.mxu0 %v2070_v41 }
  0x6c   : > { %1941 = vmatpush3.bf16.msra.mxu1 %v2070_v41 }
  0x6e   : > { %1919 = vmatmul.mubr.bf16.vlgmr.msra.gmra.mxu0 %v2073_v42  ;;  %v2429_v42 = vld [vmem:[%s2421_s19 + $0x18] sm:$0xff]  }
  0x6f   : > { %1923 = vmatmul.mubr.bf16.vlgmr.msra.gmra.mxu1 %v2074_v43 }
  0xed   : > { %v1746_v44 = vpop.f32.mrf.mxu0 }
  0xee   : > { %v1786_v45 = vpop.f32.mrf.mxu1 }
  0xef   : > { %v1747_v46 = vpop.f32.mrf.mxu0 }
  0xf0   : > { %v1787_v47 = vpop.f32.mrf.mxu1  ;;  %v1748_v33 = vadd.f32 %v1747_v46, %v1746_v44 }
  0xf1   : > { %v2383_v48 = vpop.f32.mrf.mxu0  ;;  %v1788_v34 = vadd.f32 %v1787_v47, %v1786_v45  ;;  %v1694_v45 = vunpack.c.l.bf16 %v2426_v37 }
  0xf2   : > { %v2385_v49 = vpop.f32.mrf.mxu1 }
  0xf3   : > { %v2387_v50 = vpop.f32.mrf.mxu0  ;;  %v1154_v46 = vadd.f32 %v1788_v34, %v1748_v33 }
  0xf4   : > { %v2389_v51 = vpop.f32.mrf.mxu1 }
  0xf5   : > { %v1752_v52 = vpop.f32.mrf.mxu0 }
  0xf6   : > { %v1792_v53 = vpop.f32.mrf.mxu1 }
  0xf7   : > { %v1753_v54 = vpop.f32.mrf.mxu0 }
  0xf8   : > { %v1793_v55 = vpop.f32.mrf.mxu1  ;;  %v1754_v38 = vadd.f32 %v1753_v54, %v1752_v52 }
  0xf9   : > { %v1755_v56 = vpop.f32.mrf.mxu0  ;;  %v1794_v39 = vadd.f32 %v1793_v55, %v1792_v53  ;;  %v1702_v53 = vunpack.c.l.bf16 %v2429_v42 }
  0xfa   : > { %v1795_v57 = vpop.f32.mrf.mxu1 }
  0xfb   : > { %v1756_v58 = vpop.f32.mrf.mxu0  ;;  %v1162_v54 = vadd.f32 %v1794_v39, %v1754_v38  ;;  %v1725_v38 = vld [vmem:[%s2421_s19 + $0x10] sm:$0xff]  }
  0xfc   : > { %v1796_v59 = vpop.f32.mrf.mxu1  ;;  %v1757_v43 = vadd.f32 %v1756_v58, %v1755_v56  ;;  %v1791_v58 = vadd.f32 %v2389_v51, %v2385_v49 }
  0xfd   : > { %v1758_v60 = vpop.f32.mrf.mxu0 }
  0xfe   : > { %v1798_v61 = vpop.f32.mrf.mxu1 }
  0xff   : > { %v1759_v62 = vpop.f32.mrf.mxu0 }
 0x100   : > { %v1799_v63 = vpop.f32.mrf.mxu1 }
 0x101   : > { %v2391_v0 = vpop.f32.mrf.mxu0 }
 0x102   : > { %v2393_v1 = vpop.f32.mrf.mxu1 }
 0x103   : > { %v2395_v2 = vpop.f32.mrf.mxu0 }
 0x104   : > { %v2397_v3 = vpop.f32.mrf.mxu1 }
 0x105   : > { %v1764_v4 = vpop.f32.mrf.mxu0 }
 0x106   : > { %v1804_v5 = vpop.f32.mrf.mxu1 }
 0x107   : > { %v1765_v6 = vpop.f32.mrf.mxu0 }
 0x108   : > { %v1805_v7 = vpop.f32.mrf.mxu1  ;;  %v1766_v40 = vadd.f32 %v1765_v6, %v1764_v4 }
 0x109   : > { %v1767_v8 = vpop.f32.mrf.mxu0  ;;  %v1806_v41 = vadd.f32 %v1805_v7, %v1804_v5 }
 0x10a   : > { %v1807_v9 = vpop.f32.mrf.mxu1 }
 0x10b   : > { %v1768_v10 = vpop.f32.mrf.mxu0  ;;  %v1178_v55 = vadd.f32 %v1806_v41, %v1766_v40 }
 0x10c   : > { %v1808_v11 = vpop.f32.mrf.mxu1  ;;  %v1769_v47 = vadd.f32 %v1768_v10, %v1767_v8  ;;  %v1763_v8 = vadd.f32 %v2395_v2, %v2391_v0 }
 0x10d   : > { %v1826_v12 = vpop.f32.mrf.mxu0 }
 0x10e   : > { %v2399_v13 = vpop.f32.mrf.mxu1 }
 0x10f   : > { %v1827_v14 = vpop.f32.mrf.mxu0 }
 0x110   : > { %v2401_v15 = vpop.f32.mrf.mxu1  ;;  %v1828_v4 = vadd.f32 %v1827_v14, %v1826_v12 }
 0x111   : > { %2485 = vst [vmem:[#allocation2_spill] sm:$0xff] %v2401_v15  ;;  %v2403_v16 = vpop.f32.mrf.mxu0 }
 0x112   : > { %v2405_v17 = vpop.f32.mrf.mxu1  ;;  %v1219_v49 = vadd.f32 %v1828_v4, %v1154_v46 }
 0x113   : > { %2486 = vst [vmem:[#allocation3_spill] sm:$0xff] %v2405_v17  ;;  %v1830_v18 = vpop.f32.mrf.mxu0 }
 0x114   : > { %v2407_v19 = vpop.f32.mrf.mxu1  ;;  %v1831_v51 = vadd.f32 %v1830_v18, %v2403_v16 }
 0x115   : > { %2487 = vst [vmem:[#allocation4_spill] sm:$0xff] %v2407_v19  ;;  %v1832_v20 = vpop.f32.mrf.mxu0  ;;  %v1797_v19 = vadd.f32 %v1796_v59, %v1795_v57  ;;  %v1751_v57 = vadd.f32 %v2387_v50, %v2383_v48 }
 0x116   : > { %v1872_v21 = vpop.f32.mrf.mxu1 }
 0x117   : > { %v1833_v22 = vpop.f32.mrf.mxu0  ;;  %v1165_v59 = vadd.f32 %v1797_v19, %v1757_v43  ;;  %v2445_v19 = vld [vmem:[%s2421_s19] sm:$0xff]  }
 0x118   : > { %v1873_v23 = vpop.f32.mrf.mxu1  ;;  %v1834_v44 = vadd.f32 %v1833_v22, %v1832_v20  ;;  %v1157_v20 = vadd.f32 %v1791_v58, %v1751_v57  ;;  %v2492_v0 = vld [vmem:[#allocation2_spill] sm:$0xff] }
 0x119   : > { %v1835_v24 = vpop.f32.mrf.mxu0  ;;  %v1874_v12 = vadd.f32 %v1873_v23, %v1872_v21  ;;  %v1668_v21 = vld [vmem:[%s2481_s2] ss:$0 sm:$0xff]  ;;  %v1690_v23 = vunpack.c.l.bf16 %v2445_v19 }
 0x11a   : > { %v2409_v25 = vpop.f32.mrf.mxu1  ;;  %v1227_v5 = vadd.f32 %v1834_v44, %v1162_v54  ;;  %v2496_v46 = vld [vmem:[#allocation3_spill] sm:$0xff] }
 0x11b   : > { %2488 = vst [vmem:[#allocation5_spill] sm:$0xff] %v2409_v25  ;;  %v1836_v26 = vpop.f32.mrf.mxu0  ;;  %v1760_v25 = vadd.f32 %v1759_v62, %v1758_v60 }
 0x11c   : > { %v2411_v27 = vpop.f32.mrf.mxu1  ;;  %v1837_v6 = vadd.f32 %v1836_v26, %v1835_v24 }
 0x11d   : > { %2489 = vst [vmem:[#allocation6_spill] sm:$0xff] %v2411_v27  ;;  %v1838_v28 = vpop.f32.mrf.mxu0 }
 0x11e   : > { %v2414_v29 = vpop.f32.mrf.mxu1  ;;  %v1230_v2 = vadd.f32 %v1837_v6, %v1165_v59 }
 0x11f   : > { %2490 = vst [vmem:[#allocation7_spill] sm:$0xff] %v2414_v29  ;;  %v1839_v30 = vpop.f32.mrf.mxu0  ;;  %v1800_v29 = vadd.f32 %v1799_v63, %v1798_v61 }
 0x120   : > { %v1879_v31 = vpop.f32.mrf.mxu1  ;;  %v1840_v60 = vadd.f32 %v1839_v30, %v1838_v28  ;;  %v1222_v30 = vadd.f32 %v1831_v51, %v1157_v20 }
 0x121   : > { %v1841_v32 = vpop.f32.mrf.mxu0  ;;  %v1170_v63 = vadd.f32 %v1800_v29, %v1760_v25 }
 0x122   : > { %v2423_v35 = vpop.f32.mrf.mxu1 }
 0x123   : > { %2491 = vst [vmem:[#allocation8_spill] sm:$0xff] %v2423_v35  ;;  %v1842_v36 = vpop.f32.mrf.mxu0  ;;  %v1809_v35 = vadd.f32 %v1808_v11, %v1807_v9  ;;  %v1803_v9 = vadd.f32 %v2397_v3, %v2393_v1  ;;  %v1235_v22 = vadd.f32 %v1840_v60, %v1170_v63  ;;  %v1868_v1 = vadd.f32 %v2492_v0, %v2399_v13 }
 0x124   : > { %v2431_v17 = vpop.f32.mrf.mxu1  ;;  %v1843_v24 = vadd.f32 %v1842_v36, %v1841_v32  ;;  %v2494_v32 = vld [vmem:[#allocation5_spill] sm:$0xff]  ;;  %v2495_v33 = vld [vmem:[#allocation6_spill] sm:$0xff] }
 0x125   : > { %v1844_v27 = vpop.f32.mrf.mxu0  ;;  %v1181_v10 = vadd.f32 %v1809_v35, %v1769_v47  ;;  %v1877_v34 = vadd.f32 %v2495_v33, %v2494_v32  ;;  %v1284_v36 = vadd.f32 %v1868_v1, %v1219_v49  ;;  %v2497_v47 = vld [vmem:[#allocation4_spill] sm:$0xff] }
 0x126   : > { %v1884_v15 = vpop.f32.mrf.mxu1  ;;  %v2493_v28 = vld [vmem:[#allocation7_spill] sm:$0xff] }
 0x127   : > { %v1845_v52 = vpop.f32.mrf.mxu0  ;;  %v1880_v29 = vadd.f32 %v1879_v31, %v2493_v28  ;;  %v1669_v31 = vld [vmem:[%s2482_s3] ss:$0 sm:$0xff]  ;;  %v1699_v28 = vunpack.c.h.bf16 %v1725_v38 }
 0x128   : > { %v1846_v56 = vadd.f32 %v1845_v52, %v1844_v27  ;;  %v1885_v61 = vpop.f32.mrf.mxu1  ;;  %v1173_v27 = vadd.f32 %v1803_v9, %v1763_v8  ;;  %v1871_v52 = vadd.f32 %v2497_v47, %v2496_v46 }
 0x129   : > { %v1847_v62 = vpop.f32.mrf.mxu0  ;;  %v1886_v48 = vadd.f32 %v1885_v61, %v1884_v15  ;;  %v1292_v15 = vadd.f32 %v1874_v12, %v1227_v5  ;;  %v1300_v43 = vadd.f32 %v1880_v29, %v1235_v22  ;;  %v1698_v61 = vunpack.c.l.bf16 %v1725_v38 }
 0x12a   : > { %v1243_v7 = vadd.f32 %v1846_v56, %v1178_v55  ;;  %v1887_v50 = vpop.f32.mrf.mxu1  ;;  %v1238_v39 = vadd.f32 %v1843_v24, %v1173_v27  ;;  %v1295_v56 = vadd.f32 %v1877_v34, %v1230_v2  ;;  %v2498_v57 = vld [vmem:[#allocation8_spill] sm:$0xff]  ;;  %v1287_v8 = vadd.f32 %v1871_v52, %v1222_v30 }
 0x12b   : > { %v1848_v11 = vpop.f32.mrf.mxu0  ;;  %v1883_v58 = vadd.f32 %v2431_v17, %v2498_v57  ;;  %v1695_v12 = vunpack.c.h.bf16 %v2426_v37  ;;  %v1703_v24 = vunpack.c.h.bf16 %v2429_v42  ;;  %v1691_v2 = vunpack.c.h.bf16 %v2445_v19 }
 0x12c   : > { %v1849_v14 = vadd.f32 %v1848_v11, %v1847_v62  ;;  %v1888_v25 = vpop.f32.mrf.mxu1  ;;  %v1308_v26 = vadd.f32 %v1886_v48, %v1243_v7 }
 0x12d   : > { %v1889_v16 = vadd.f32 %v1888_v25, %v1887_v50  ;;  %v1303_v11 = vadd.f32 %v1883_v58, %v1238_v39 }
 0x12e   : > { %v1246_v3 = vadd.f32 %v1849_v14, %v1181_v10  ;;  %v1920_v18 = vpop.f32.mrf.mxu0 }
 0x12f   : > { %v1357_v35 = vadd.f32 %v1920_v18, %v1292_v15  ;;  %v1924_v13 = vpop.f32.mrf.mxu1 }
 0x130   : > { %v1373_v40 = vadd.f32 %v1924_v13, %v1308_v26  ;;  %v1348_v41 = vpop.f32.mrf.mxu0  ;;  %v1311_v44 = vadd.f32 %v1889_v16, %v1246_v3 }
 0x131   : > { %v1388_v54 = vmul.f32 %v1668_v21, %v1357_v35  ;;  %v1349_v55 = vadd.f32 %v1348_v41, %v1284_v36  ;;  %v1364_v4 = vpop.f32.mrf.mxu1 }
 0x132   : > { %v1392_v59 = vmul.f32 %v1668_v21, %v1373_v40  ;;  %v1365_v60 = vadd.f32 %v1364_v4, %v1300_v43  ;;  %v1921_v62 = vpop.f32.mrf.mxu0 }
 0x133   : > { %v1403_v63 = vadd.f32 %v1669_v31, %v1388_v54  ;;  %v1386_v5 = vmul.f32 %v1668_v21, %v1349_v55  ;;  %v1360_v6 = vadd.f32 %v1921_v62, %v1295_v56  ;;  %v1925_v7 = vpop.f32.mrf.mxu1 }
 0x134   : > { %v1407_v9 = vadd.f32 %v1669_v31, %v1392_v59  ;;  %v1390_v10 = vmul.f32 %v1668_v21, %v1365_v60  ;;  %v1376_v48 = vadd.f32 %v1925_v7, %v1311_v44  ;;  %v1351_v50 = vpop.f32.mrf.mxu0 }
 0x135   : > { %v1401_v49 = vadd.f32 %v1669_v31, %v1386_v5  ;;  %v1389_v51 = vmul.f32 %v1668_v21, %v1360_v6  ;;  %v1352_v14 = vadd.f32 %v1351_v50, %v1287_v8  ;;  %v1367_v17 = vpop.f32.mrf.mxu1  ;;  %v1427_v26 = vadd.f32 %v1694_v45, %v1403_v63 }
 0x136   : > { %v1405_v20 = vadd.f32 %v1669_v31, %v1390_v10  ;;  %v1393_v22 = vmul.f32 %v1668_v21, %v1376_v48  ;;  %v1368_v25 = vadd.f32 %v1367_v17, %v1303_v11  ;;  %v1431_v3 = vadd.f32 %v1702_v53, %v1407_v9 }
 0x137   : > { %v1404_v0 = vadd.f32 %v1669_v31, %v1389_v51  ;;  %v1387_v1 = vmul.f32 %v1668_v21, %v1352_v14  ;;  %v1425_v29 = vadd.f32 %v1690_v23, %v1401_v49  ;;  %v1435_v34 = vmax.f32 %v1427_v26, 0.0 }
 0x138   : > { %v1408_v15 = vadd.f32 %v1669_v31, %v1393_v22  ;;  %v1391_v27 = vmul.f32 %v1668_v21, %v1368_v25  ;;  %v1429_v30 = vadd.f32 %v1698_v61, %v1405_v20  ;;  %v1439_v35 = vmax.f32 %v1431_v3, 0.0 }
 0x139   : > { %v1428_v16 = vadd.f32 %v1695_v12, %v1404_v0  ;;  %v1402_v18 = vadd.f32 %v1669_v31, %v1387_v1  ;;  %v1433_v19 = vmax.f32 %v1425_v29, 0.0 }
 0x13a   : > { %v1432_v32 = vadd.f32 %v1703_v24, %v1408_v15  ;;  %v1406_v33 = vadd.f32 %v1669_v31, %v1391_v27  ;;  %v1437_v23 = vmax.f32 %v1429_v30, 0.0 }
 0x13b   : > { %v1436_v37 = vmax.f32 %v1428_v16, 0.0  ;;  %v1426_v45 = vadd.f32 %v1691_v2, %v1402_v18 }
 0x13c   : > { %v1440_v42 = vmax.f32 %v1432_v32, 0.0  ;;  %v1430_v53 = vadd.f32 %v1699_v28, %v1406_v33 }
 0x13d   : > { %v1712_v21 = vpack.c.bf16 %v1436_v37, %v1435_v34  ;;  %v1434_v13 = vmax.f32 %v1426_v45, 0.0 }
 0x13e   : > { %v1722_v36 = vpack.c.bf16 %v1440_v42, %v1439_v35  ;;  %v1438_v38 = vmax.f32 %v1430_v53, 0.0 }
 0x13f   : > { %1727 = vst [vmem:[%s251_s20 + $0x8] sm:$0xff] %v1712_v21   ;;  %v1707_v39 = vpack.c.bf16 %v1434_v13, %v1433_v19 }
 0x140   : > { %1729 = vst [vmem:[%s251_s20 + $0x18] sm:$0xff] %v1722_v36   ;;  %v1717_v31 = vpack.c.bf16 %v1438_v38, %v1437_v23 }
 0x141   : > { %1708 = vst [vmem:[%s251_s20] sm:$0xff] %v1707_v39  }
 0x142   : > { %1728 = vst [vmem:[%s251_s20 + $0x10] sm:$0xff] %v1717_v31  }
 0x143 PF: > { %s15_s18 = sadd.s32 1, %s2081_s18  }
 0x144   : > { %p12_p4 = scmp.ge.s32.totalorder %s15_s18, 4  }
 0x146   :  { %14 = sbr.rel (!%p12_p4) target bundleno = 1 (0x1), region = 73 }

// kernel: vencoder_forward.13
= control target key start
LH: loop header
LB: loop body
LE: loop exit
PB: predicated region body
PF: predicated region fallthrough
CT: control target
= control target key end

     0   :  { %s1893_s15 = smov 0   ;;  %s2365_s0 = inlined_call_operand.vmem [shape: bf16[32,1152], index: 0, kind: input, shape index: {}]   ;;  %s2366_s1 = inlined_call_operand.vmem [shape: bf16[1152,256], index: 1, kind: input, shape index: {}]   ;;  %s2367_s2 = inlined_call_operand.vmem [shape: f32[1,256], index: 2, kind: input, shape index: {}]   ;;  %s2368_s3 = inlined_call_operand.vmem [shape: f32[1,256], index: 3, kind: input, shape index: {}]   ;;  %s2369_s4 = inlined_call_operand.vmem [shape: bf16[32,256], index: 4, kind: output, shape index: {}]  }
   0x1 LB: > { %s1450_s16 = sadd.s32 4294967295, %s1865_s15   ;;  %p1454_p0 = scmp.ge.s32.totalorder %s1865_s15, 1  ;;  %s1865_s15 = sphi %s1893_s15, %s14_s15  }
   0x2   : > { %p164_p1 = scmp.lt.s32.totalorder %s1865_s15, 3 }
   0x4   : > { %p165_p2 = pnand %p1454_p0, %p164_p1 }
   0x5   : > { %s1455_s29 = sshll.u32 (!%p165_p2), %s1450_s16, 1 }
   0x6   : > { %168 = sbr.rel (%p165_p2) target bundleno = 382 (0x17e), region = 36  ;;  %p193_p3 = scmp.lt.s32.totalorder (!%p165_p2), %s1455_s29, 3 }
   0xb   : > { %v1630_v0 = vld [vmem:[%s2366_s1 + $0x74] ss:$8 sps:$4 sm:$0xff]   ;;  %v1634_v2 = vld [vmem:[%s2366_s1 + $0x70] ss:$8 sps:$4 sm:$0xff]   ;;  %v1636_v4 = vld [vmem:[%s2366_s1 + $0x64] ss:$8 sps:$4 sm:$0xff]  }
   0xc   : > { %v1632_v1 = vld [vmem:[%s2366_s1 + $0x174] ss:$8 sps:$4 sm:$0xff]   ;;  %1127 = vmatprep.subr.bf16.mxu0 %v1630_v0  ;;  %v1635_v3 = vld [vmem:[%s2366_s1 + $0x170] ss:$8 sps:$4 sm:$0xff]   ;;  %v1638_v5 = vld [vmem:[%s2366_s1 + $0x164] ss:$8 sps:$4 sm:$0xff]  }
   0xd   : > { %1170 = vmatprep.subr.bf16.mxu1 %v1632_v1  ;;  %1128 = vmatpush1.bf16.msra.mxu0 %v1634_v2  ;;  %v1640_v6 = vld [vmem:[%s2366_s1 + $0x60] ss:$8 sps:$4 sm:$0xff]   ;;  %v1642_v8 = vld [vmem:[%s2366_s1 + $0x54] ss:$8 sps:$4 sm:$0xff]   ;;  %v1646_v10 = vld [vmem:[%s2366_s1 + $0x50] ss:$8 sps:$4 sm:$0xff]  }
   0xe   : > { %1171 = vmatpush1.bf16.msra.mxu1 %v1635_v3  ;;  %1129 = vmatprep.subr.bf16.mxu0 %v1636_v4  ;;  %v1641_v7 = vld [vmem:[%s2366_s1 + $0x160] ss:$8 sps:$4 sm:$0xff]   ;;  %v1644_v9 = vld [vmem:[%s2366_s1 + $0x154] ss:$8 sps:$4 sm:$0xff]   ;;  %v1647_v11 = vld [vmem:[%s2366_s1 + $0x150] ss:$8 sps:$4 sm:$0xff]  }
   0xf   : > { %1172 = vmatprep.subr.bf16.mxu1 %v1638_v5  ;;  %v1648_v12 = vld [vmem:[%s2366_s1 + $0x44] ss:$8 sps:$4 sm:$0xff]   ;;  %v1652_v14 = vld [vmem:[%s2366_s1 + $0x40] ss:$8 sps:$4 sm:$0xff]   ;;  %v1654_v16 = vld [vmem:[%s2366_s1 + $0x34] ss:$8 sps:$4 sm:$0xff]  }
  0x10   : > { %v1650_v13 = vld [vmem:[%s2366_s1 + $0x144] ss:$8 sps:$4 sm:$0xff]   ;;  %v1653_v15 = vld [vmem:[%s2366_s1 + $0x140] ss:$8 sps:$4 sm:$0xff]   ;;  %v1656_v17 = vld [vmem:[%s2366_s1 + $0x134] ss:$8 sps:$4 sm:$0xff]  }
  0x11   : > { %1130 = vmatpush1.bf16.msra.mxu0 %v1640_v6  ;;  %v1658_v18 = vld [vmem:[%s2366_s1 + $0x30] ss:$8 sps:$4 sm:$0xff]   ;;  %v1660_v20 = vld [vmem:[%s2366_s1 + $0x24] ss:$8 sps:$4 sm:$0xff]   ;;  %v1664_v22 = vld [vmem:[%s2366_s1 + $0x20] ss:$8 sps:$4 sm:$0xff]  }
  0x12   : > { %1173 = vmatpush1.bf16.msra.mxu1 %v1641_v7  ;;  %1131 = vmatprep.subr.bf16.mxu0 %v1642_v8  ;;  %v1659_v19 = vld [vmem:[%s2366_s1 + $0x130] ss:$8 sps:$4 sm:$0xff]   ;;  %v1662_v21 = vld [vmem:[%s2366_s1 + $0x124] ss:$8 sps:$4 sm:$0xff]   ;;  %v1665_v23 = vld [vmem:[%s2366_s1 + $0x120] ss:$8 sps:$4 sm:$0xff]  }
  0x13   : > { %1174 = vmatprep.subr.bf16.mxu1 %v1644_v9  ;;  %v1666_v24 = vld [vmem:[%s2366_s1 + $0x14] ss:$8 sps:$4 sm:$0xff]   ;;  %v1670_v26 = vld [vmem:[%s2366_s1 + $0x10] ss:$8 sps:$4 sm:$0xff]   ;;  %v1672_v28 = vld [vmem:[%s2366_s1 + $0x4] ss:$8 sps:$4 sm:$0xff]  }
  0x14   : > { %v1668_v25 = vld [vmem:[%s2366_s1 + $0x114] ss:$8 sps:$4 sm:$0xff]   ;;  %v1671_v27 = vld [vmem:[%s2366_s1 + $0x110] ss:$8 sps:$4 sm:$0xff]   ;;  %v1674_v29 = vld [vmem:[%s2366_s1 + $0x104] ss:$8 sps:$4 sm:$0xff]  }
  0x15   : > { %1132 = vmatpush1.bf16.msra.mxu0 %v1646_v10  ;;  %v1676_v30 = vld [vmem:[%s2366_s1] ss:$8 sps:$4 sm:$0xff]   ;;  %v1678_v32 = vld [vmem:[%s2366_s1 + $0xf4] ss:$8 sps:$4 sm:$0xff]   ;;  %v1682_v34 = vld [vmem:[%s2366_s1 + $0xf0] ss:$8 sps:$4 sm:$0xff]  }
  0x16   : > { %1175 = vmatpush1.bf16.msra.mxu1 %v1647_v11  ;;  %1133 = vmatprep.subr.bf16.mxu0 %v1648_v12  ;;  %v1677_v31 = vld [vmem:[%s2366_s1 + $0x100] ss:$8 sps:$4 sm:$0xff]   ;;  %v1680_v33 = vld [vmem:[%s2366_s1 + $0x1f4] ss:$8 sps:$4 sm:$0xff]   ;;  %v1683_v35 = vld [vmem:[%s2366_s1 + $0x1f0] ss:$8 sps:$4 sm:$0xff]  }
  0x17   : > { %1176 = vmatprep.subr.bf16.mxu1 %v1650_v13  ;;  %v1684_v36 = vld [vmem:[%s2366_s1 + $0xe4] ss:$8 sps:$4 sm:$0xff]   ;;  %s2371_s29 = smov (!%p193_p3, %s1455_s29), 3  ;;  %v1688_v38 = vld [vmem:[%s2366_s1 + $0xe0] ss:$8 sps:$4 sm:$0xff]  }
  0x18   : > { %v1686_v37 = vld [vmem:[%s2366_s1 + $0x1e4] ss:$8 sps:$4 sm:$0xff]   ;;  %v1689_v39 = vld [vmem:[%s2366_s1 + $0x1e0] ss:$8 sps:$4 sm:$0xff]   ;;  %v1690_v40 = vld [vmem:[%s2366_s1 + $0xd4] ss:$8 sps:$4 sm:$0xff]  }
  0x19   : > { %1134 = vmatpush1.bf16.msra.mxu0 %v1652_v14  ;;  %s1620_s27 = smul.u32 36, %s2371_s29  ;;  %v1692_v41 = vld [vmem:[%s2366_s1 + $0x1d4] ss:$8 sps:$4 sm:$0xff]   ;;  %v1694_v42 = vld [vmem:[%s2366_s1 + $0xd0] ss:$8 sps:$4 sm:$0xff]   ;;  %s1617_s7 = sshll.u32 %s2371_s29, 3 }
  0x1a   : > { %1177 = vmatpush1.bf16.msra.mxu1 %v1653_v15  ;;  %1135 = vmatprep.subr.bf16.mxu0 %v1654_v16  ;;  %v1695_v43 = vld [vmem:[%s2366_s1 + $0x1d0] ss:$8 sps:$4 sm:$0xff]   ;;  %v1696_v44 = vld [vmem:[%s2366_s1 + $0xc4] ss:$8 sps:$4 sm:$0xff]   ;;  %v1700_v46 = vld [vmem:[%s2366_s1 + $0xc0] ss:$8 sps:$4 sm:$0xff]   ;;  %s204_s10 = scalar_lea.vmem %s2369_s4, %s1617_s7 }
  0x1b   : > { %1178 = vmatprep.subr.bf16.mxu1 %v1656_v17  ;;  %s2044_s12 = scalar_lea.vmem %s2365_s0, %s1620_s27  ;;  %v1698_v45 = vld [vmem:[%s2366_s1 + $0x1c4] ss:$8 sps:$4 sm:$0xff]   ;;  %v1701_v47 = vld [vmem:[%s2366_s1 + $0x1c0] ss:$8 sps:$4 sm:$0xff]   ;;  %v1702_v48 = vld [vmem:[%s2366_s1 + $0xb4] ss:$8 sps:$4 sm:$0xff]  }
  0x1c   : > { %v1728_v49 = vld [vmem:[%s2044_s12 + $0x4] ss:$36 sps:$4 sm:$0xff]   ;;  %v1704_v50 = vld [vmem:[%s2366_s1 + $0x1b4] ss:$8 sps:$4 sm:$0xff]   ;;  %v1731_v51 = vld [vmem:[%s2044_s12 + $0xc] ss:$36 sps:$4 sm:$0xff]  }
  0x1d   : > { %1136 = vmatpush1.bf16.msra.mxu0 %v1658_v18  ;;  %1159 = vmatprep.mubr.bf16.mxu0 %v1728_v49  ;;  %v1706_v52 = vld [vmem:[%s2366_s1 + $0xb0] ss:$8 sps:$4 sm:$0xff]   ;;  %v1708_v54 = vld [vmem:[%s2366_s1 + $0xa4] ss:$8 sps:$4 sm:$0xff]   ;;  %v1712_v56 = vld [vmem:[%s2366_s1 + $0xa0] ss:$8 sps:$4 sm:$0xff]  }
  0x1e   : > { %1179 = vmatpush1.bf16.msra.mxu1 %v1659_v19  ;;  %1137 = vmatprep.subr.bf16.mxu0 %v1660_v20  ;;  %v1707_v53 = vld [vmem:[%s2366_s1 + $0x1b0] ss:$8 sps:$4 sm:$0xff]   ;;  %v1710_v55 = vld [vmem:[%s2366_s1 + $0x1a4] ss:$8 sps:$4 sm:$0xff]   ;;  %v1713_v57 = vld [vmem:[%s2366_s1 + $0x1a0] ss:$8 sps:$4 sm:$0xff]  }
  0x1f   : > { %1180 = vmatprep.subr.bf16.mxu1 %v1662_v21  ;;  %1202 = vmatprep.mubr.bf16.mxu1 %v1731_v51  ;;  %v1714_v58 = vld [vmem:[%s2366_s1 + $0x94] ss:$8 sps:$4 sm:$0xff]   ;;  %v1718_v60 = vld [vmem:[%s2366_s1 + $0x90] ss:$8 sps:$4 sm:$0xff]   ;;  %v1720_v62 = vld [vmem:[%s2366_s1 + $0x84] ss:$8 sps:$4 sm:$0xff]  }
  0x20   : > { %v1716_v59 = vld [vmem:[%s2366_s1 + $0x194] ss:$8 sps:$4 sm:$0xff]   ;;  %v1719_v61 = vld [vmem:[%s2366_s1 + $0x190] ss:$8 sps:$4 sm:$0xff]   ;;  %v1722_v63 = vld [vmem:[%s2366_s1 + $0x184] ss:$8 sps:$4 sm:$0xff]  }
  0x21   : > { %1138 = vmatpush1.bf16.msra.mxu0 %v1664_v22  ;;  %v1724_v0 = vld [vmem:[%s2366_s1 + $0x80] ss:$8 sps:$4 sm:$0xff]   ;;  %v1734_v2 = vld [vmem:[%s2366_s1 + $0x274] ss:$8 sps:$4 sm:$0xff]   ;;  %v1732_v6 = vld [vmem:[%s2366_s1 + $0x270] ss:$8 sps:$4 sm:$0xff]  }
  0x22   : > { %1181 = vmatpush1.bf16.msra.mxu1 %v1665_v23  ;;  %1139 = vmatprep.subr.bf16.mxu0 %v1666_v24  ;;  %v1725_v1 = vld [vmem:[%s2366_s1 + $0x180] ss:$8 sps:$4 sm:$0xff]   ;;  %v1737_v3 = vld [vmem:[%s2366_s1 + $0x374] ss:$8 sps:$4 sm:$0xff]   ;;  %v1735_v7 = vld [vmem:[%s2366_s1 + $0x370] ss:$8 sps:$4 sm:$0xff]  }
  0x23   : > { %1182 = vmatprep.subr.bf16.mxu1 %v1668_v25  ;;  %v1726_v4 = vld [vmem:[%s2044_s12] ss:$36 sps:$4 sm:$0xff]   ;;  %v1729_v5 = vld [vmem:[%s2044_s12 + $0x8] ss:$36 sps:$4 sm:$0xff]   ;;  %v1746_v12 = vld [vmem:[%s2366_s1 + $0x254] ss:$8 sps:$4 sm:$0xff]  }
  0x24   : > { %v1740_v8 = vld [vmem:[%s2366_s1 + $0x264] ss:$8 sps:$4 sm:$0xff]   ;;  %v1738_v10 = vld [vmem:[%s2366_s1 + $0x260] ss:$8 sps:$4 sm:$0xff]   ;;  %v1749_v13 = vld [vmem:[%s2366_s1 + $0x354] ss:$8 sps:$4 sm:$0xff]  }
  0x25   : > { %1140 = vmatpush1.bf16.msra.mxu0 %v1670_v26  ;;  %v1743_v9 = vld [vmem:[%s2366_s1 + $0x364] ss:$8 sps:$4 sm:$0xff]   ;;  %v1741_v11 = vld [vmem:[%s2366_s1 + $0x360] ss:$8 sps:$4 sm:$0xff]   ;;  %v1744_v14 = vld [vmem:[%s2366_s1 + $0x250] ss:$8 sps:$4 sm:$0xff]  }
  0x26   : > { %1183 = vmatpush1.bf16.msra.mxu1 %v1671_v27  ;;  %1141 = vmatprep.subr.bf16.mxu0 %v1672_v28  ;;  %v1747_v15 = vld [vmem:[%s2366_s1 + $0x350] ss:$8 sps:$4 sm:$0xff]   ;;  %v1752_v16 = vld [vmem:[%s2366_s1 + $0x244] ss:$8 sps:$4 sm:$0xff]   ;;  %v1750_v18 = vld [vmem:[%s2366_s1 + $0x240] ss:$8 sps:$4 sm:$0xff]  }
  0x27   : > { %1184 = vmatprep.subr.bf16.mxu1 %v1674_v29  ;;  %v1755_v17 = vld [vmem:[%s2366_s1 + $0x344] ss:$8 sps:$4 sm:$0xff]   ;;  %v1753_v19 = vld [vmem:[%s2366_s1 + $0x340] ss:$8 sps:$4 sm:$0xff]   ;;  %v1758_v20 = vld [vmem:[%s2366_s1 + $0x234] ss:$8 sps:$4 sm:$0xff]  }
  0x28   : > { %v1761_v21 = vld [vmem:[%s2366_s1 + $0x334] ss:$8 sps:$4 sm:$0xff]   ;;  %v1756_v22 = vld [vmem:[%s2366_s1 + $0x230] ss:$8 sps:$4 sm:$0xff]   ;;  %v1764_v24 = vld [vmem:[%s2366_s1 + $0x224] ss:$8 sps:$4 sm:$0xff]  }
  0x29   : > { %1142 = vmatpush1.bf16.msra.mxu0 %v1676_v30  ;;  %v1759_v23 = vld [vmem:[%s2366_s1 + $0x330] ss:$8 sps:$4 sm:$0xff]   ;;  %v1767_v25 = vld [vmem:[%s2366_s1 + $0x324] ss:$8 sps:$4 sm:$0xff]   ;;  %v1762_v26 = vld [vmem:[%s2366_s1 + $0x220] ss:$8 sps:$4 sm:$0xff]  }
  0x2a   : > { %1185 = vmatpush1.bf16.msra.mxu1 %v1677_v31  ;;  %1143 = vmatprep.subr.bf16.mxu0 %v1678_v32  ;;  %v1765_v27 = vld [vmem:[%s2366_s1 + $0x320] ss:$8 sps:$4 sm:$0xff]   ;;  %v1770_v28 = vld [vmem:[%s2366_s1 + $0x214] ss:$8 sps:$4 sm:$0xff]   ;;  %v1768_v30 = vld [vmem:[%s2366_s1 + $0x210] ss:$8 sps:$4 sm:$0xff]  }
  0x2b   : > { %1186 = vmatprep.subr.bf16.mxu1 %v1680_v33  ;;  %v1773_v29 = vld [vmem:[%s2366_s1 + $0x314] ss:$8 sps:$4 sm:$0xff]   ;;  %v1771_v31 = vld [vmem:[%s2366_s1 + $0x310] ss:$8 sps:$4 sm:$0xff]   ;;  %v1776_v32 = vld [vmem:[%s2366_s1 + $0x204] ss:$8 sps:$4 sm:$0xff]  }
  0x2c   : > { %v1779_v33 = vld [vmem:[%s2366_s1 + $0x304] ss:$8 sps:$4 sm:$0xff]   ;;  %v1795_v49 = vld [vmem:[%s2366_s1 + $0x3d0] ss:$8 sps:$4 sm:$0xff]  }
  0x2d   : > { %1144 = vmatpush2.bf16.msra.mxu0 %v1682_v34  ;;  %v1830_v34 = vld [vmem:[%s2044_s12 + $0x14] ss:$36 sps:$4 sm:$0xff]   ;;  %v1803_v51 = vld [vmem:[%s2366_s1 + $0x3c4] ss:$8 sps:$4 sm:$0xff]  }
  0x2e   : > { %1187 = vmatpush2.bf16.msra.mxu1 %v1683_v35  ;;  %1145 = vmatprep.subr.bf16.mxu0 %v1684_v36  ;;  %v1774_v35 = vld [vmem:[%s2366_s1 + $0x200] ss:$8 sps:$4 sm:$0xff]  }
  0x2f   : > { %1188 = vmatprep.subr.bf16.mxu1 %v1686_v37  ;;  %v1777_v36 = vld [vmem:[%s2366_s1 + $0x300] ss:$8 sps:$4 sm:$0xff]  }
  0x30   : > { %v1836_v37 = vld [vmem:[%s2044_s12 + $0x1c] ss:$36 sps:$4 sm:$0xff]  }
  0x31   : > { %1146 = vmatpush2.bf16.msra.mxu0 %v1688_v38  ;;  %v1782_v38 = vld [vmem:[%s2366_s1 + $0x2f4] ss:$8 sps:$4 sm:$0xff]  }
  0x32   : > { %1189 = vmatpush2.bf16.msra.mxu1 %v1689_v39  ;;  %1147 = vmatprep.subr.bf16.mxu0 %v1690_v40  ;;  %v1785_v39 = vld [vmem:[%s2366_s1 + $0x3f4] ss:$8 sps:$4 sm:$0xff]   ;;  %v1780_v40 = vld [vmem:[%s2366_s1 + $0x2f0] ss:$8 sps:$4 sm:$0xff]  }
  0x33   : > { %1190 = vmatprep.subr.bf16.mxu1 %v1692_v41  ;;  %v1783_v41 = vld [vmem:[%s2366_s1 + $0x3f0] ss:$8 sps:$4 sm:$0xff]  }
  0x35   : > { %1148 = vmatpush2.bf16.msra.mxu0 %v1694_v42  ;;  %v1788_v42 = vld [vmem:[%s2366_s1 + $0x2e4] ss:$8 sps:$4 sm:$0xff]  }
  0x36   : > { %1191 = vmatpush2.bf16.msra.mxu1 %v1695_v43  ;;  %1149 = vmatprep.subr.bf16.mxu0 %v1696_v44  ;;  %v1791_v43 = vld [vmem:[%s2366_s1 + $0x3e4] ss:$8 sps:$4 sm:$0xff]   ;;  %v1786_v44 = vld [vmem:[%s2366_s1 + $0x2e0] ss:$8 sps:$4 sm:$0xff]  }
  0x37   : > { %1192 = vmatprep.subr.bf16.mxu1 %v1698_v45  ;;  %v1789_v45 = vld [vmem:[%s2366_s1 + $0x3e0] ss:$8 sps:$4 sm:$0xff]  }
  0x39   : > { %1150 = vmatpush2.bf16.msra.mxu0 %v1700_v46  ;;  %v1794_v46 = vld [vmem:[%s2366_s1 + $0x2d4] ss:$8 sps:$4 sm:$0xff]  }
  0x3a   : > { %1193 = vmatpush2.bf16.msra.mxu1 %v1701_v47  ;;  %1151 = vmatprep.subr.bf16.mxu0 %v1702_v48  ;;  %v1797_v47 = vld [vmem:[%s2366_s1 + $0x3d4] ss:$8 sps:$4 sm:$0xff]   ;;  %v1792_v48 = vld [vmem:[%s2366_s1 + $0x2d0] ss:$8 sps:$4 sm:$0xff]  }
  0x3b   : > { %1194 = vmatprep.subr.bf16.mxu1 %v1704_v50  ;;  %v1800_v50 = vld [vmem:[%s2366_s1 + $0x2c4] ss:$8 sps:$4 sm:$0xff]  }
  0x3d   : > { %1152 = vmatpush2.bf16.msra.mxu0 %v1706_v52  ;;  %v1798_v52 = vld [vmem:[%s2366_s1 + $0x2c0] ss:$8 sps:$4 sm:$0xff]  }
  0x3e   : > { %1195 = vmatpush2.bf16.msra.mxu1 %v1707_v53  ;;  %1153 = vmatprep.subr.bf16.mxu0 %v1708_v54  ;;  %v1801_v53 = vld [vmem:[%s2366_s1 + $0x3c0] ss:$8 sps:$4 sm:$0xff]   ;;  %v1806_v54 = vld [vmem:[%s2366_s1 + $0x2b4] ss:$8 sps:$4 sm:$0xff]  }
  0x3f   : > { %1196 = vmatprep.subr.bf16.mxu1 %v1710_v55  ;;  %v1809_v55 = vld [vmem:[%s2366_s1 + $0x3b4] ss:$8 sps:$4 sm:$0xff]  }
  0x41   : > { %1154 = vmatpush2.bf16.msra.mxu0 %v1712_v56  ;;  %v1804_v56 = vld [vmem:[%s2366_s1 + $0x2b0] ss:$8 sps:$4 sm:$0xff]  }
  0x42   : > { %1197 = vmatpush2.bf16.msra.mxu1 %v1713_v57  ;;  %1155 = vmatprep.subr.bf16.mxu0 %v1714_v58  ;;  %v1807_v57 = vld [vmem:[%s2366_s1 + $0x3b0] ss:$8 sps:$4 sm:$0xff]   ;;  %v1812_v58 = vld [vmem:[%s2366_s1 + $0x2a4] ss:$8 sps:$4 sm:$0xff]  }
  0x43   : > { %1198 = vmatprep.subr.bf16.mxu1 %v1716_v59  ;;  %v1815_v59 = vld [vmem:[%s2366_s1 + $0x3a4] ss:$8 sps:$4 sm:$0xff]  }
  0x45   : > { %1156 = vmatpush2.bf16.msra.mxu0 %v1718_v60  ;;  %v1810_v60 = vld [vmem:[%s2366_s1 + $0x2a0] ss:$8 sps:$4 sm:$0xff]  }
  0x46   : > { %1199 = vmatpush2.bf16.msra.mxu1 %v1719_v61  ;;  %1157 = vmatprep.subr.bf16.mxu0 %v1720_v62  ;;  %v1813_v61 = vld [vmem:[%s2366_s1 + $0x3a0] ss:$8 sps:$4 sm:$0xff]   ;;  %v1818_v62 = vld [vmem:[%s2366_s1 + $0x294] ss:$8 sps:$4 sm:$0xff]  }
  0x47   : > { %1200 = vmatprep.subr.bf16.mxu1 %v1722_v63  ;;  %v1821_v63 = vld [vmem:[%s2366_s1 + $0x394] ss:$8 sps:$4 sm:$0xff]  }
  0x49   : > { %1158 = vmatpush2.bf16.msra.mxu0 %v1724_v0  ;;  %v1816_v0 = vld [vmem:[%s2366_s1 + $0x290] ss:$8 sps:$4 sm:$0xff]  }
  0x4a   : > { %1201 = vmatpush2.bf16.msra.mxu1 %v1725_v1  ;;  %1213 = vmatprep.subr.bf16.mxu0 %v1734_v2  ;;  %v1819_v1 = vld [vmem:[%s2366_s1 + $0x390] ss:$8 sps:$4 sm:$0xff]   ;;  %v1824_v2 = vld [vmem:[%s2366_s1 + $0x284] ss:$8 sps:$4 sm:$0xff]  }
  0x4b   : > { %1256 = vmatprep.subr.bf16.mxu1 %v1737_v3  ;;  %v1827_v3 = vld [vmem:[%s2366_s1 + $0x384] ss:$8 sps:$4 sm:$0xff]  }
  0x4c   : > { %1160 = vmatmul.mubr.bf16.vlgmr.msra.gmra.mxu0 %v1726_v4  ;;  %v1822_v4 = vld [vmem:[%s2366_s1 + $0x280] ss:$8 sps:$4 sm:$0xff]  }
  0x4d   : > { %1203 = vmatmul.mubr.bf16.vlgmr.msra.gmra.mxu1 %v1729_v5  ;;  %1214 = vmatpush1.bf16.msra.mxu0 %v1732_v6  ;;  %v1825_v5 = vld [vmem:[%s2366_s1 + $0x380] ss:$8 sps:$4 sm:$0xff]   ;;  %v1833_v6 = vld [vmem:[%s2366_s1 + $0x474] ss:$8 sps:$4 sm:$0xff]  }
  0x4e   : > { %1257 = vmatpush1.bf16.msra.mxu1 %v1735_v7  ;;  %1215 = vmatprep.subr.bf16.mxu0 %v1740_v8  ;;  %v1828_v7 = vld [vmem:[%s2044_s12 + $0x10] ss:$36 sps:$4 sm:$0xff]   ;;  %v1834_v8 = vld [vmem:[%s2044_s12 + $0x18] ss:$36 sps:$4 sm:$0xff]  }
  0x4f   : > { %1258 = vmatprep.subr.bf16.mxu1 %v1743_v9  ;;  %1245 = vmatprep.mubr.bf16.mxu0 %v1830_v34  ;;  %v1831_v9 = vld [vmem:[%s2366_s1 + $0x470] ss:$8 sps:$4 sm:$0xff]   ;;  %v1344_v34 = vlaneseq }
  0x50   : > { %1288 = vmatprep.mubr.bf16.mxu1 %v1836_v37 }
  0x51   : > { %1216 = vmatpush1.bf16.msra.mxu0 %v1738_v10  ;;  %v1839_v10 = vld [vmem:[%s2366_s1 + $0x464] ss:$8 sps:$4 sm:$0xff]  }
  0x52   : > { %1259 = vmatpush1.bf16.msra.mxu1 %v1741_v11  ;;  %1217 = vmatprep.subr.bf16.mxu0 %v1746_v12  ;;  %v1837_v11 = vld [vmem:[%s2366_s1 + $0x460] ss:$8 sps:$4 sm:$0xff]   ;;  %v1867_v12 = vmov 0  }
  0x53   : > { %1260 = vmatprep.subr.bf16.mxu1 %v1749_v13  ;;  %v1842_v13 = vld [vmem:[%s2366_s1 + $0x454] ss:$8 sps:$4 sm:$0xff]  }
  0x55   : > { %1218 = vmatpush1.bf16.msra.mxu0 %v1744_v14  ;;  %v1840_v14 = vld [vmem:[%s2366_s1 + $0x450] ss:$8 sps:$4 sm:$0xff]  }
  0x56   : > { %1261 = vmatpush1.bf16.msra.mxu1 %v1747_v15  ;;  %1219 = vmatprep.subr.bf16.mxu0 %v1752_v16  ;;  %v1845_v15 = vld [vmem:[%s2366_s1 + $0x444] ss:$8 sps:$4 sm:$0xff]   ;;  %v1843_v16 = vld [vmem:[%s2366_s1 + $0x440] ss:$8 sps:$4 sm:$0xff]  }
  0x57   : > { %1262 = vmatprep.subr.bf16.mxu1 %v1755_v17  ;;  %v1848_v17 = vld [vmem:[%s2366_s1 + $0x434] ss:$8 sps:$4 sm:$0xff]  }
  0x59   : > { %1220 = vmatpush1.bf16.msra.mxu0 %v1750_v18  ;;  %v1846_v18 = vld [vmem:[%s2366_s1 + $0x430] ss:$8 sps:$4 sm:$0xff]  }
  0x5a   : > { %1263 = vmatpush1.bf16.msra.mxu1 %v1753_v19  ;;  %1221 = vmatprep.subr.bf16.mxu0 %v1758_v20  ;;  %v1851_v19 = vld [vmem:[%s2366_s1 + $0x424] ss:$8 sps:$4 sm:$0xff]   ;;  %v1849_v20 = vld [vmem:[%s2366_s1 + $0x420] ss:$8 sps:$4 sm:$0xff]  }
  0x5b   : > { %1264 = vmatprep.subr.bf16.mxu1 %v1761_v21  ;;  %v1854_v21 = vld [vmem:[%s2366_s1 + $0x414] ss:$8 sps:$4 sm:$0xff]  }
  0x5d   : > { %1222 = vmatpush1.bf16.msra.mxu0 %v1756_v22  ;;  %v1852_v22 = vld [vmem:[%s2366_s1 + $0x410] ss:$8 sps:$4 sm:$0xff]  }
  0x5e   : > { %1265 = vmatpush1.bf16.msra.mxu1 %v1759_v23  ;;  %1223 = vmatprep.subr.bf16.mxu0 %v1764_v24  ;;  %v1857_v23 = vld [vmem:[%s2366_s1 + $0x404] ss:$8 sps:$4 sm:$0xff]   ;;  %v1855_v24 = vld [vmem:[%s2366_s1 + $0x400] ss:$8 sps:$4 sm:$0xff]  }
  0x5f   : > { %1266 = vmatprep.subr.bf16.mxu1 %v1767_v25  ;;  %v1858_v25 = vld [vmem:[%s2044_s12 + $0x20] ss:$36 sps:$4 sm:$0xff]  }
  0x61   : > { %1224 = vmatpush1.bf16.msra.mxu0 %v1762_v26 }
  0x62   : > { %1267 = vmatpush1.bf16.msra.mxu1 %v1765_v27  ;;  %1225 = vmatprep.subr.bf16.mxu0 %v1770_v28 }
  0x63   : > { %1268 = vmatprep.subr.bf16.mxu1 %v1773_v29 }
  0x65   : > { %1226 = vmatpush1.bf16.msra.mxu0 %v1768_v30 }
  0x66   : > { %1269 = vmatpush1.bf16.msra.mxu1 %v1771_v31  ;;  %1227 = vmatprep.subr.bf16.mxu0 %v1776_v32 }
  0x67   : > { %1270 = vmatprep.subr.bf16.mxu1 %v1779_v33 }
  0x69   : > { %1228 = vmatpush1.bf16.msra.mxu0 %v1774_v35 }
  0x6a   : > { %1271 = vmatpush1.bf16.msra.mxu1 %v1777_v36  ;;  %1229 = vmatprep.subr.bf16.mxu0 %v1782_v38  ;;  %v1345_v38 = vshrl.u32 %v1344_v34, 7 }
  0x6b   : > { %1272 = vmatprep.subr.bf16.mxu1 %v1785_v39 }
  0x6d   : > { %1230 = vmatpush2.bf16.msra.mxu0 %v1780_v40 }
  0x6e   : > { %1273 = vmatpush2.bf16.msra.mxu1 %v1783_v41  ;;  %1231 = vmatprep.subr.bf16.mxu0 %v1788_v42 }
  0x6f   : > { %1274 = vmatprep.subr.bf16.mxu1 %v1791_v43 }
  0x71   : > { %1232 = vmatpush2.bf16.msra.mxu0 %v1786_v44  ;;  %v1346_v44 = vsub.s32 0, %v1345_v38 }
  0x72   : > { %1275 = vmatpush2.bf16.msra.mxu1 %v1789_v45  ;;  %1233 = vmatprep.subr.bf16.mxu0 %v1794_v46  ;;  %v1342_v45 = vld [vmem:[%s2367_s2] sm:$0x3] }
  0x73   : > { %1276 = vmatprep.subr.bf16.mxu1 %v1797_v47 }
  0x75   : > { %1234 = vmatpush2.bf16.msra.mxu0 %v1792_v48  ;;  %v1358_v48 = vld [vmem:[%s2368_s3] sm:$0x3] }
  0x76   : > { %1277 = vmatpush2.bf16.msra.mxu1 %v1795_v49  ;;  %1235 = vmatprep.subr.bf16.mxu0 %v1800_v50  ;;  %v1350_v49 = vsub.s32 1, %v1345_v38 }
  0x77   : > { %1278 = vmatprep.subr.bf16.mxu1 %v1803_v51 }
  0x79   : > { %1236 = vmatpush2.bf16.msra.mxu0 %v1798_v52 }
  0x7a   : > { %1279 = vmatpush2.bf16.msra.mxu1 %v1801_v53  ;;  %1237 = vmatprep.subr.bf16.mxu0 %v1806_v54 }
  0x7b   : > { %1280 = vmatprep.subr.bf16.mxu1 %v1809_v55  ;;  %v1347_v55 = vrot.slane %v1342_v45, %v1346_v44 }
  0x7d   : > { %1238 = vmatpush2.bf16.msra.mxu0 %v1804_v56 }
  0x7e   : > { %1281 = vmatpush2.bf16.msra.mxu1 %v1807_v57  ;;  %1239 = vmatprep.subr.bf16.mxu0 %v1812_v58  ;;  %v1363_v57 = vrot.slane %v1358_v48, %v1346_v44 }
  0x7f   : > { %1282 = vmatprep.subr.bf16.mxu1 %v1815_v59 }
  0x81   : > { %1240 = vmatpush2.bf16.msra.mxu0 %v1810_v60 }
  0x82   : > { %1283 = vmatpush2.bf16.msra.mxu1 %v1813_v61  ;;  %1241 = vmatprep.subr.bf16.mxu0 %v1818_v62  ;;  %v1351_v61 = vrot.slane %v1342_v45, %v1350_v49 }
  0x83   : > { %1284 = vmatprep.subr.bf16.mxu1 %v1821_v63 }
  0x85   : > { %1242 = vmatpush2.bf16.msra.mxu0 %v1816_v0 }
  0x86   : > { %1285 = vmatpush2.bf16.msra.mxu1 %v1819_v1  ;;  %1243 = vmatprep.subr.bf16.mxu0 %v1824_v2 }
  0x87   : > { %1286 = vmatprep.subr.bf16.mxu1 %v1827_v3  ;;  %v1367_v3 = vrot.slane %v1358_v48, %v1350_v49 }
  0x89   : > { %1244 = vmatpush2.bf16.msra.mxu0 %v1822_v4 }
  0x8a   : > { %1287 = vmatpush2.bf16.msra.mxu1 %v1825_v5  ;;  %1299 = vmatprep.subr.bf16.mxu0 %v1833_v6 }
  0x8c   : > { %1246 = vmatmul.mubr.bf16.vlgmr.msra.gmra.mxu0 %v1828_v7 }
  0x8d   : > { %1289 = vmatmul.mubr.bf16.vlgmr.msra.gmra.mxu1 %v1834_v8  ;;  %1300 = vmatpush1.bf16.msra.mxu0 %v1831_v9 }
  0x8e   : > { %1331 = vmatprep.mubr.bf16.mxu0 %v1867_v12  ;;  %1301 = vmatprep.subr.bf16.mxu0 %v1839_v10 }
  0x91   : > { %1302 = vmatpush1.bf16.msra.mxu0 %v1837_v11 }
  0x92   : > { %1303 = vmatprep.subr.bf16.mxu0 %v1842_v13 }
  0x95   : > { %1304 = vmatpush1.bf16.msra.mxu0 %v1840_v14 }
  0x96   : > { %1305 = vmatprep.subr.bf16.mxu0 %v1845_v15 }
  0x99   : > { %1306 = vmatpush1.bf16.msra.mxu0 %v1843_v16 }
  0x9a   : > { %1307 = vmatprep.subr.bf16.mxu0 %v1848_v17 }
  0x9d   : > { %1308 = vmatpush1.bf16.msra.mxu0 %v1846_v18 }
  0x9e   : > { %1309 = vmatprep.subr.bf16.mxu0 %v1851_v19 }
  0xa1   : > { %1310 = vmatpush1.bf16.msra.mxu0 %v1849_v20 }
  0xa2   : > { %1311 = vmatprep.subr.bf16.mxu0 %v1854_v21 }
  0xa5   : > { %1312 = vmatpush1.bf16.msra.mxu0 %v1852_v22 }
  0xa6   : > { %1313 = vmatprep.subr.bf16.mxu0 %v1857_v23 }
  0xa9   : > { %1314 = vmatpush1.bf16.msra.mxu0 %v1855_v24 }
  0xac   : > { %1332 = vmatmul.mubr.bf16.vlgmr.msra.gmra.mxu0 %v1858_v25 }
 0x10c   : > { %v1161_v26 = vpop.f32.mrf.mxu0 }
 0x10d   : > { %v1204_v27 = vpop.f32.mrf.mxu1 }
 0x10e   : > { %v1163_v28 = vpop.f32.mrf.mxu0  ;;  %v1205_v39 = vadd.f32 %v1204_v27, %v1161_v26 }
 0x10f   : > { %v1206_v29 = vpop.f32.mrf.mxu1 }
 0x110   : > { %v1165_v30 = vpop.f32.mrf.mxu0  ;;  %v1207_v42 = vadd.f32 %v1206_v29, %v1163_v28 }
 0x111   : > { %v1208_v31 = vpop.f32.mrf.mxu1 }
 0x112   : > { %v1167_v32 = vpop.f32.mrf.mxu0  ;;  %v1209_v46 = vadd.f32 %v1208_v31, %v1165_v30 }
 0x113   : > { %v1210_v35 = vpop.f32.mrf.mxu1 }
 0x114   : > { %v1211_v52 = vadd.f32 %v1210_v35, %v1167_v32 }
 0x14c   : > { %v1247_v33 = vpop.f32.mrf.mxu0 }
 0x14d   : > { %v1290_v37 = vpop.f32.mrf.mxu1  ;;  %v1248_v43 = vadd.f32 %v1247_v33, %v1205_v39 }
 0x14e   : > { %v1249_v36 = vpop.f32.mrf.mxu0 }
 0x14f   : > { %v1292_v41 = vpop.f32.mrf.mxu1  ;;  %v1250_v47 = vadd.f32 %v1249_v36, %v1207_v42  ;;  %v1291_v53 = vadd.f32 %v1290_v37, %v1248_v43 }
 0x150   : > { %v1251_v40 = vpop.f32.mrf.mxu0 }
 0x151   : > { %v1294_v51 = vpop.f32.mrf.mxu1  ;;  %v1252_v54 = vadd.f32 %v1251_v40, %v1209_v46  ;;  %v1293_v58 = vadd.f32 %v1292_v41, %v1250_v47 }
 0x152   : > { %v1253_v50 = vpop.f32.mrf.mxu0 }
 0x153   : > { %v1254_v59 = vadd.f32 %v1253_v50, %v1211_v52  ;;  %v1296_v62 = vpop.f32.mrf.mxu1  ;;  %v1295_v0 = vadd.f32 %v1294_v51, %v1252_v54 }
 0x155   : > { %v1297_v5 = vadd.f32 %v1296_v62, %v1254_v59 }
 0x16c   : > { %v1333_v56 = vpop.f32.mrf.mxu0 }
 0x16d   : > { %v1334_v60 = vadd.f32 %v1333_v56, %v1291_v53 }
 0x16e   : > { %v1335_v63 = vpop.f32.mrf.mxu0 }
 0x16f   : > { %v1354_v1 = vmul.f32 %v1347_v55, %v1334_v60  ;;  %v1336_v2 = vadd.f32 %v1335_v63, %v1293_v58 }
 0x170   : > { %v1337_v4 = vpop.f32.mrf.mxu0 }
 0x171   : > { %v1370_v6 = vadd.f32 %v1363_v57, %v1354_v1  ;;  %v1355_v7 = vmul.f32 %v1351_v61, %v1336_v2  ;;  %v1338_v8 = vadd.f32 %v1337_v4, %v1295_v0 }
 0x172   : > { %v1339_v9 = vpop.f32.mrf.mxu0 }
 0x173   : > { %v1371_v10 = vadd.f32 %v1367_v3, %v1355_v7  ;;  %v1356_v11 = vmul.f32 %v1347_v55, %v1338_v8  ;;  %v1340_v12 = vadd.f32 %v1339_v9, %v1297_v5  ;;  %v1374_v13 = vmax.f32 %v1370_v6, 0.0 }
 0x175   : > { %v1375_v14 = vmax.f32 %v1371_v10, 0.0  ;;  %v1372_v15 = vadd.f32 %v1363_v57, %v1356_v11  ;;  %v1357_v16 = vmul.f32 %v1351_v61, %v1340_v12 }
 0x177   : > { %v1618_v17 = vpack.c.bf16 %v1375_v14, %v1374_v13  ;;  %v1373_v18 = vadd.f32 %v1367_v3, %v1357_v16  ;;  %v1376_v19 = vmax.f32 %v1372_v15, 0.0 }
 0x179   : > { %1390 = vst [vmem:[%s204_s10] sm:$0xff] %v1618_v17  ;;  %v1377_v20 = vmax.f32 %v1373_v18, 0.0 }
 0x17b   : > { %v1619_v21 = vpack.c.bf16 %v1377_v20, %v1376_v19 }
 0x17d   : > { %1391 = vst [vmem:[%s204_s10 + $0x8] sm:$0xff] %v1619_v21 }
 0x17e PF: > { %s14_s15 = sadd.s32 1, %s1865_s15  }
 0x17f   : > { %p11_p4 = scmp.ge.s32.totalorder %s14_s15, 4  }
 0x181   :  { %13 = sbr.rel (!%p11_p4) target bundleno = 1 (0x1), region = 66 }

// kernel: vencoder_forward.15
= control target key start
LH: loop header
LB: loop body
LE: loop exit
PB: predicated region body
PF: predicated region fallthrough
CT: control target
= control target key end

     0   :  { %v337_v1 = vmov 0   ;;  %vm43_vm0 = vcmask 261120   ;;  %s432_s1 = inlined_call_operand.vmem [shape: bf16[32,256], index: 1, kind: input, shape index: {}]   ;;  %s433_s2 = inlined_call_operand.vmem [shape: bf16[256,128], index: 2, kind: input, shape index: {}]   ;;  %s434_s0 = inlined_call_operand.vmem [shape: bf16[2,32], index: 0, kind: input, shape index: {}]   ;;  %s435_s3 = inlined_call_operand.vmem [shape: f32[1,128], index: 3, kind: input, shape index: {}]   ;;  %s436_s4 = inlined_call_operand.vmem [shape: f32[2,128], index: 4, kind: output, shape index: {}]  }
   0x1   :  { %v315_v0 = vld [vmem:[%s432_s1 + $0x14] ss:$8 sps:$4 sm:$0xff]   ;;  %79 = vmatprep.mubr.bf16.mxu0 %v337_v1  ;;  %v317_v2 = vld [vmem:[%s432_s1 + $0x10] ss:$8 sps:$4 sm:$0xff]   ;;  %v318_v3 = vld [vmem:[%s432_s1 + $0x4] ss:$8 sps:$4 sm:$0xff]  }
   0x2   :  { %59 = vmatprep.subr.bf16.mxu0 %v315_v0  ;;  %v320_v4 = vld [vmem:[%s432_s1] ss:$8 sps:$4 sm:$0xff]   ;;  %v321_v5 = vld [vmem:[%s433_s2 + $0x78] sm:$0xff]   ;;  %v323_v8 = vld [vmem:[%s433_s2 + $0x70] sm:$0xff]  }
   0x3   :  { %60 = vmatpush1.bf16.msra.mxu0 %v317_v2  ;;  %v322_v6 = vld [vmem:[%s433_s2 + $0x38] sm:$0xff]   ;;  %v18_v7 = vld [vmem:[%s434_s0] sm:$0x1]  ;;  %292 = vmatprep.subr.bf16.mxu1 %v321_v5  ;;  %v324_v9 = vld [vmem:[%s433_s2 + $0x30] sm:$0xff]  }
   0x4   :  { %61 = vmatprep.subr.bf16.mxu0 %v318_v3  ;;  %293 = vmatpush3.bf16.msra.mxu1 %v322_v6  ;;  %v325_v10 = vld [vmem:[%s433_s2 + $0x68] sm:$0xff]   ;;  %v327_v12 = vld [vmem:[%s433_s2 + $0x60] sm:$0xff]   ;;  %v329_v14 = vld [vmem:[%s433_s2 + $0x58] sm:$0xff]  }
   0x5   :  { %294 = vmatprep.subr.bf16.mxu1 %v323_v8  ;;  %v326_v11 = vld [vmem:[%s433_s2 + $0x28] sm:$0xff]   ;;  %v328_v13 = vld [vmem:[%s433_s2 + $0x20] sm:$0xff]   ;;  %v330_v15 = vld [vmem:[%s433_s2 + $0x18] sm:$0xff]  }
   0x6   :  { %v331_v16 = vld [vmem:[%s433_s2 + $0x50] sm:$0xff]   ;;  %v333_v18 = vld [vmem:[%s433_s2 + $0x48] sm:$0xff]   ;;  %v335_v20 = vld [vmem:[%s433_s2 + $0x40] sm:$0xff]  }
   0x7   :  { %62 = vmatpush1.bf16.msra.mxu0 %v320_v4  ;;  %v332_v17 = vld [vmem:[%s433_s2 + $0x10] sm:$0xff]   ;;  %v334_v19 = vld [vmem:[%s433_s2 + $0x8] sm:$0xff]   ;;  %v336_v21 = vld [vmem:[%s433_s2] sm:$0xff]  }
   0x8   :  { %295 = vmatpush3.bf16.msra.mxu1 %v324_v9  ;;  %v275_v29 = vld [vmem:[%s435_s3] ss:$0 sm:$0xff] }
   0x9   :  { %296 = vmatprep.subr.bf16.mxu1 %v325_v10 }
   0xa   :  { %274 = vmatmul.mubr.msk.bf16.vlgmr.msra.gmra.mxu0 %vm43_vm0, %v18_v7 }
   0xc   :  { %297 = vmatpush3.bf16.msra.mxu1 %v326_v11 }
   0xd   :  { %298 = vmatprep.subr.bf16.mxu1 %v327_v12 }
  0x10   :  { %299 = vmatpush3.bf16.msra.mxu1 %v328_v13 }
  0x11   :  { %300 = vmatprep.subr.bf16.mxu1 %v329_v14 }
  0x14   :  { %301 = vmatpush3.bf16.msra.mxu1 %v330_v15 }
  0x15   :  { %302 = vmatprep.subr.bf16.mxu1 %v331_v16 }
  0x18   :  { %303 = vmatpush3.bf16.msra.mxu1 %v332_v17 }
  0x19   :  { %304 = vmatprep.subr.bf16.mxu1 %v333_v18 }
  0x1c   :  { %305 = vmatpush3.bf16.msra.mxu1 %v334_v19 }
  0x1d   :  { %306 = vmatprep.subr.bf16.mxu1 %v335_v20 }
  0x20   :  { %307 = vmatpush3.bf16.msra.mxu1 %v336_v21 }
  0xca   :  { %v81_v22 = vpop.f32.mrf.mxu0 }
  0xcb   :  { %v88_v25 = vpack.c.bf16 %v81_v22, %v81_v22 }
  0xcc   :  { %v83_v23 = vpop.f32.mrf.mxu0 }
  0xcd   :  { %v89_v24 = vpack.c.bf16 %v83_v23, %v83_v23 }
  0xce   :  { %v85_v26 = vpop.f32.mrf.mxu0 }
  0xcf   :  { %257 = vmatprep.mubr.bf16.mxu1 %v89_v24 }
  0xd0   :  { %v86_v27 = vpop.f32.mrf.mxu0  ;;  %258 = vmatmul.mubr.bf16.vlgmr.msra.gmra.mxu1 %v88_v25 }
 0x190   :  { %v308_v28 = vpop.f32.mrf.mxu1 }
 0x192   :  { %v309_v30 = vpop.f32.mrf.mxu1 }
 0x193   :  { %v310_v31 = vadd.f32 %v309_v30, %v308_v28 }
 0x194   :  { %v311_v32 = vpop.f32.mrf.mxu1 }
 0x195   :  { %v260_v33 = vadd.f32 %v310_v31, %v275_v29 }
 0x196   :  { %v312_v34 = vpop.f32.mrf.mxu1 }
 0x197   :  { %265 = vst [vmem:[%s436_s4] sm:$0x3] %v260_v33 }

// kernel: vencoder_forward.12
= control target key start
LH: loop header
LB: loop body
LE: loop exit
PB: predicated region body
PF: predicated region fallthrough
CT: control target
= control target key end

     0   :  { %s557_s15 = smov 0   ;;  %s632_s0 = inlined_call_operand.vmem [shape: bf16[32,128], index: 0, kind: input, shape index: {}]   ;;  %s633_s1 = inlined_call_operand.vmem [shape: bf16[128,256], index: 1, kind: input, shape index: {}]   ;;  %s634_s2 = inlined_call_operand.vmem [shape: f32[1,256], index: 2, kind: input, shape index: {}]   ;;  %s635_s3 = inlined_call_operand.vmem [shape: f32[1,256], index: 3, kind: input, shape index: {}]   ;;  %s636_s4 = inlined_call_operand.vmem [shape: bf16[32,256], index: 4, kind: output, shape index: {}]  }
   0x1 LB: > { %s455_s16 = sadd.s32 4294967295, %s529_s15   ;;  %p459_p0 = scmp.ge.s32.totalorder %s529_s15, 1  ;;  %s529_s15 = sphi %s557_s15, %s14_s15  }
   0x2   : > { %p163_p1 = scmp.lt.s32.totalorder %s529_s15, 3 }
   0x4   : > { %p164_p2 = pnand %p459_p0, %p163_p1 }
   0x5   : > { %s460_s19 = sshll.u32 (!%p164_p2), %s455_s16, 1 }
   0x6   : > { %167 = sbr.rel (%p164_p2) target bundleno = 250 (0xfa), region = 36  ;;  %p191_p3 = scmp.lt.s32.totalorder (!%p164_p2), %s460_s19, 3 }
   0xb   : > { %v498_v0 = vld [vmem:[%s633_s1 + $0x74] ss:$8 sps:$4 sm:$0xff]   ;;  %v500_v1 = vld [vmem:[%s633_s1 + $0x70] ss:$8 sps:$4 sm:$0xff]   ;;  %v531_v2 = vmov 0   ;;  %s638_s19 = smov (!%p191_p3, %s460_s19), 3  ;;  %v353_v18 = vlaneseq }
   0xc   : > { %340 = vmatprep.mubr.bf16.mxu0 %v531_v2  ;;  %308 = vmatprep.subr.bf16.mxu0 %v498_v0  ;;  %v501_v3 = vld [vmem:[%s633_s1 + $0x64] ss:$8 sps:$4 sm:$0xff]   ;;  %v503_v4 = vld [vmem:[%s633_s1 + $0x60] ss:$8 sps:$4 sm:$0xff]   ;;  %v504_v5 = vld [vmem:[%s633_s1 + $0x54] ss:$8 sps:$4 sm:$0xff]  }
   0xd   : > { %309 = vmatpush1.bf16.msra.mxu0 %v500_v1  ;;  %s461_s28 = sshll.u32 %s638_s19, 2  ;;  %v506_v6 = vld [vmem:[%s633_s1 + $0x50] ss:$8 sps:$4 sm:$0xff]   ;;  %v507_v7 = vld [vmem:[%s633_s1 + $0x44] ss:$8 sps:$4 sm:$0xff]   ;;  %v354_v19 = vshrl.u32 %v353_v18, 7 }
   0xe   : > { %310 = vmatprep.subr.bf16.mxu0 %v501_v3  ;;  %s194_s9 = scalar_lea.vmem %s632_s0, %s461_s28  ;;  %v509_v8 = vld [vmem:[%s633_s1 + $0x40] ss:$8 sps:$4 sm:$0xff]   ;;  %v510_v9 = vld [vmem:[%s633_s1 + $0x34] ss:$8 sps:$4 sm:$0xff]   ;;  %v512_v10 = vld [vmem:[%s633_s1 + $0x30] ss:$8 sps:$4 sm:$0xff]  }
   0xf   : > { %v513_v11 = vld [vmem:[%s633_s1 + $0x24] ss:$8 sps:$4 sm:$0xff]   ;;  %v515_v12 = vld [vmem:[%s633_s1 + $0x20] ss:$8 sps:$4 sm:$0xff]   ;;  %v516_v13 = vld [vmem:[%s633_s1 + $0x14] ss:$8 sps:$4 sm:$0xff]  }
  0x10   : > { %v518_v14 = vld [vmem:[%s633_s1 + $0x10] ss:$8 sps:$4 sm:$0xff]   ;;  %v519_v15 = vld [vmem:[%s633_s1 + $0x4] ss:$8 sps:$4 sm:$0xff]   ;;  %v521_v16 = vld [vmem:[%s633_s1] ss:$8 sps:$4 sm:$0xff]  }
  0x11   : > { %311 = vmatpush1.bf16.msra.mxu0 %v503_v4  ;;  %v522_v17 = vld [vmem:[%s194_s9] sm:$0xff]   ;;  %v355_v20 = vsub.s32 0, %v354_v19  ;;  %v359_v22 = vsub.s32 1, %v354_v19  ;;  %s486_s8 = sshll.u32 %s638_s19, 3 }
  0x12   : > { %312 = vmatprep.subr.bf16.mxu0 %v504_v5  ;;  %v351_v21 = vld [vmem:[%s634_s2] sm:$0x3]  ;;  %s201_s11 = scalar_lea.vmem %s636_s4, %s486_s8 }
  0x13   : > { %v356_v23 = vrot.slane %v351_v21, %v355_v20  ;;  %v367_v24 = vld [vmem:[%s635_s3] sm:$0x3]  ;;  %v360_v25 = vrot.slane %v351_v21, %v359_v22 }
  0x14   : > { %v372_v28 = vrot.slane %v367_v24, %v355_v20  ;;  %v376_v29 = vrot.slane %v367_v24, %v359_v22 }
  0x15   : > { %313 = vmatpush1.bf16.msra.mxu0 %v506_v6 }
  0x16   : > { %314 = vmatprep.subr.bf16.mxu0 %v507_v7 }
  0x19   : > { %315 = vmatpush1.bf16.msra.mxu0 %v509_v8 }
  0x1a   : > { %316 = vmatprep.subr.bf16.mxu0 %v510_v9 }
  0x1d   : > { %317 = vmatpush1.bf16.msra.mxu0 %v512_v10 }
  0x1e   : > { %318 = vmatprep.subr.bf16.mxu0 %v513_v11 }
  0x21   : > { %319 = vmatpush1.bf16.msra.mxu0 %v515_v12 }
  0x22   : > { %320 = vmatprep.subr.bf16.mxu0 %v516_v13 }
  0x25   : > { %321 = vmatpush1.bf16.msra.mxu0 %v518_v14 }
  0x26   : > { %322 = vmatprep.subr.bf16.mxu0 %v519_v15 }
  0x29   : > { %323 = vmatpush1.bf16.msra.mxu0 %v521_v16 }
  0x2c   : > { %341 = vmatmul.mubr.bf16.vlgmr.msra.gmra.mxu0 %v522_v17 }
  0xec   : > { %v342_v26 = vpop.f32.mrf.mxu0 }
  0xed   : > { %v363_v27 = vmul.f32 %v356_v23, %v342_v26 }
  0xee   : > { %v344_v30 = vpop.f32.mrf.mxu0 }
  0xef   : > { %v364_v31 = vmul.f32 %v360_v25, %v344_v30  ;;  %v379_v33 = vadd.f32 %v372_v28, %v363_v27 }
  0xf0   : > { %v346_v32 = vpop.f32.mrf.mxu0 }
  0xf1   : > { %v380_v34 = vadd.f32 %v376_v29, %v364_v31  ;;  %v365_v35 = vmul.f32 %v356_v23, %v346_v32 }
  0xf2   : > { %v348_v36 = vpop.f32.mrf.mxu0 }
  0xf3   : > { %v487_v37 = vpack.c.bf16 %v380_v34, %v379_v33  ;;  %v366_v38 = vmul.f32 %v360_v25, %v348_v36  ;;  %v381_v39 = vadd.f32 %v372_v28, %v365_v35 }
  0xf5   : > { %395 = vst [vmem:[%s201_s11] sm:$0xff] %v487_v37  ;;  %v382_v40 = vadd.f32 %v376_v29, %v366_v38 }
  0xf7   : > { %v488_v41 = vpack.c.bf16 %v382_v40, %v381_v39 }
  0xf9   : > { %396 = vst [vmem:[%s201_s11 + $0x8] sm:$0xff] %v488_v41 }
  0xfa PF: > { %s14_s15 = sadd.s32 1, %s529_s15  }
  0xfb   : > { %p11_p4 = scmp.ge.s32.totalorder %s14_s15, 4  }
  0xfd   :  { %13 = sbr.rel (!%p11_p4) target bundleno = 1 (0x1), region = 66 }

// kernel: vencoder_forward.14
= control target key start
LH: loop header
LB: loop body
LE: loop exit
PB: predicated region body
PF: predicated region fallthrough
CT: control target
= control target key end

     0   :  { %s3444_s18 = smov 0   ;;  %s4364_s0 = inlined_call_operand.vmem [shape: bf16[32,2304], index: 0, kind: input, shape index: {}]   ;;  %s4365_s1 = inlined_call_operand.vmem [shape: bf16[2304,256], index: 1, kind: input, shape index: {}]   ;;  %s4366_s2 = inlined_call_operand.vmem [shape: f32[1,256], index: 2, kind: input, shape index: {}]   ;;  %s4367_s3 = inlined_call_operand.vmem [shape: f32[1,256], index: 3, kind: input, shape index: {}]   ;;  %s4368_s4 = inlined_call_operand.vmem [shape: bf16[32,256], index: 4, kind: input, shape index: {}]   ;;  %s4369_s5 = inlined_call_operand.vmem [shape: bf16[32,256], index: 5, kind: output, shape index: {}]  }
   0x1 LB: > { %s2611_s19 = sadd.s32 4294967295, %s3412_s18   ;;  %p2615_p0 = scmp.ge.s32.totalorder %s3412_s18, 1  ;;  %s3412_s18 = sphi %s3444_s18, %s15_s18  }
   0x2   : > { %p201_p1 = scmp.lt.s32.totalorder %s3412_s18, 3 }
   0x4   : > { %p202_p2 = pnand %p2615_p0, %p201_p1 }
   0x5   : > { %s2616_s9 = sshll.u32 (!%p202_p2), %s2611_s19, 1 }
   0x6   : > { %205 = sbr.rel (%p202_p2) target bundleno = 544 (0x220), region = 40  ;;  %p238_p3 = scmp.lt.s32.totalorder (!%p202_p2), %s2616_s9, 3 }
   0xb   : > { %v2947_v0 = vld [vmem:[%s4365_s1 + $0x74] ss:$8 sps:$4 sm:$0xff]   ;;  %v2951_v2 = vld [vmem:[%s4365_s1 + $0x70] ss:$8 sps:$4 sm:$0xff]   ;;  %v2953_v4 = vld [vmem:[%s4365_s1 + $0x64] ss:$8 sps:$4 sm:$0xff]  }
   0xc   : > { %v2949_v1 = vld [vmem:[%s4365_s1 + $0x174] ss:$8 sps:$4 sm:$0xff]   ;;  %2094 = vmatprep.subr.bf16.mxu0 %v2947_v0  ;;  %v2952_v3 = vld [vmem:[%s4365_s1 + $0x170] ss:$8 sps:$4 sm:$0xff]   ;;  %v2955_v5 = vld [vmem:[%s4365_s1 + $0x164] ss:$8 sps:$4 sm:$0xff]  }
   0xd   : > { %2137 = vmatprep.subr.bf16.mxu1 %v2949_v1  ;;  %2095 = vmatpush1.bf16.msra.mxu0 %v2951_v2  ;;  %v2957_v6 = vld [vmem:[%s4365_s1 + $0x60] ss:$8 sps:$4 sm:$0xff]   ;;  %v2959_v8 = vld [vmem:[%s4365_s1 + $0x54] ss:$8 sps:$4 sm:$0xff]   ;;  %v2963_v10 = vld [vmem:[%s4365_s1 + $0x50] ss:$8 sps:$4 sm:$0xff]  }
   0xe   : > { %2138 = vmatpush1.bf16.msra.mxu1 %v2952_v3  ;;  %2096 = vmatprep.subr.bf16.mxu0 %v2953_v4  ;;  %v2958_v7 = vld [vmem:[%s4365_s1 + $0x160] ss:$8 sps:$4 sm:$0xff]   ;;  %v2961_v9 = vld [vmem:[%s4365_s1 + $0x154] ss:$8 sps:$4 sm:$0xff]   ;;  %v2964_v11 = vld [vmem:[%s4365_s1 + $0x150] ss:$8 sps:$4 sm:$0xff]  }
   0xf   : > { %2139 = vmatprep.subr.bf16.mxu1 %v2955_v5  ;;  %v2965_v12 = vld [vmem:[%s4365_s1 + $0x44] ss:$8 sps:$4 sm:$0xff]   ;;  %v2969_v14 = vld [vmem:[%s4365_s1 + $0x40] ss:$8 sps:$4 sm:$0xff]   ;;  %v2971_v16 = vld [vmem:[%s4365_s1 + $0x34] ss:$8 sps:$4 sm:$0xff]  }
  0x10   : > { %v2967_v13 = vld [vmem:[%s4365_s1 + $0x144] ss:$8 sps:$4 sm:$0xff]   ;;  %v2970_v15 = vld [vmem:[%s4365_s1 + $0x140] ss:$8 sps:$4 sm:$0xff]   ;;  %v2973_v17 = vld [vmem:[%s4365_s1 + $0x134] ss:$8 sps:$4 sm:$0xff]  }
  0x11   : > { %2097 = vmatpush1.bf16.msra.mxu0 %v2957_v6  ;;  %v2975_v18 = vld [vmem:[%s4365_s1 + $0x30] ss:$8 sps:$4 sm:$0xff]   ;;  %v2977_v20 = vld [vmem:[%s4365_s1 + $0x24] ss:$8 sps:$4 sm:$0xff]   ;;  %v2981_v22 = vld [vmem:[%s4365_s1 + $0x20] ss:$8 sps:$4 sm:$0xff]  }
  0x12   : > { %2140 = vmatpush1.bf16.msra.mxu1 %v2958_v7  ;;  %2098 = vmatprep.subr.bf16.mxu0 %v2959_v8  ;;  %v2976_v19 = vld [vmem:[%s4365_s1 + $0x130] ss:$8 sps:$4 sm:$0xff]   ;;  %v2979_v21 = vld [vmem:[%s4365_s1 + $0x124] ss:$8 sps:$4 sm:$0xff]   ;;  %v2982_v23 = vld [vmem:[%s4365_s1 + $0x120] ss:$8 sps:$4 sm:$0xff]  }
  0x13   : > { %2141 = vmatprep.subr.bf16.mxu1 %v2961_v9  ;;  %v2983_v24 = vld [vmem:[%s4365_s1 + $0x14] ss:$8 sps:$4 sm:$0xff]   ;;  %v2987_v26 = vld [vmem:[%s4365_s1 + $0x10] ss:$8 sps:$4 sm:$0xff]   ;;  %v2989_v28 = vld [vmem:[%s4365_s1 + $0x4] ss:$8 sps:$4 sm:$0xff]  }
  0x14   : > { %v2985_v25 = vld [vmem:[%s4365_s1 + $0x114] ss:$8 sps:$4 sm:$0xff]   ;;  %v2988_v27 = vld [vmem:[%s4365_s1 + $0x110] ss:$8 sps:$4 sm:$0xff]   ;;  %v2991_v29 = vld [vmem:[%s4365_s1 + $0x104] ss:$8 sps:$4 sm:$0xff]  }
  0x15   : > { %2099 = vmatpush1.bf16.msra.mxu0 %v2963_v10  ;;  %v2993_v30 = vld [vmem:[%s4365_s1] ss:$8 sps:$4 sm:$0xff]   ;;  %v2995_v32 = vld [vmem:[%s4365_s1 + $0xf4] ss:$8 sps:$4 sm:$0xff]   ;;  %v2999_v34 = vld [vmem:[%s4365_s1 + $0xf0] ss:$8 sps:$4 sm:$0xff]  }
  0x16   : > { %2142 = vmatpush1.bf16.msra.mxu1 %v2964_v11  ;;  %2100 = vmatprep.subr.bf16.mxu0 %v2965_v12  ;;  %v2994_v31 = vld [vmem:[%s4365_s1 + $0x100] ss:$8 sps:$4 sm:$0xff]   ;;  %v2997_v33 = vld [vmem:[%s4365_s1 + $0x1f4] ss:$8 sps:$4 sm:$0xff]   ;;  %v3000_v35 = vld [vmem:[%s4365_s1 + $0x1f0] ss:$8 sps:$4 sm:$0xff]  }
  0x17   : > { %2143 = vmatprep.subr.bf16.mxu1 %v2967_v13  ;;  %v3001_v36 = vld [vmem:[%s4365_s1 + $0xe4] ss:$8 sps:$4 sm:$0xff]   ;;  %s4371_s9 = smov (!%p238_p3, %s2616_s9), 3  ;;  %v3005_v38 = vld [vmem:[%s4365_s1 + $0xe0] ss:$8 sps:$4 sm:$0xff]  }
  0x18   : > { %v3003_v37 = vld [vmem:[%s4365_s1 + $0x1e4] ss:$8 sps:$4 sm:$0xff]   ;;  %v3006_v39 = vld [vmem:[%s4365_s1 + $0x1e0] ss:$8 sps:$4 sm:$0xff]   ;;  %v3007_v40 = vld [vmem:[%s4365_s1 + $0xd4] ss:$8 sps:$4 sm:$0xff]  }
  0x19   : > { %2101 = vmatpush1.bf16.msra.mxu0 %v2969_v14  ;;  %s2938_s8 = smul.u32 72, %s4371_s9  ;;  %v3009_v41 = vld [vmem:[%s4365_s1 + $0x1d4] ss:$8 sps:$4 sm:$0xff]   ;;  %v3011_v42 = vld [vmem:[%s4365_s1 + $0xd0] ss:$8 sps:$4 sm:$0xff]  }
  0x1a   : > { %2144 = vmatpush1.bf16.msra.mxu1 %v2970_v15  ;;  %2102 = vmatprep.subr.bf16.mxu0 %v2971_v16  ;;  %v3012_v43 = vld [vmem:[%s4365_s1 + $0x1d0] ss:$8 sps:$4 sm:$0xff]   ;;  %v3013_v44 = vld [vmem:[%s4365_s1 + $0xc4] ss:$8 sps:$4 sm:$0xff]   ;;  %v3017_v46 = vld [vmem:[%s4365_s1 + $0xc0] ss:$8 sps:$4 sm:$0xff]  }
  0x1b   : > { %2145 = vmatprep.subr.bf16.mxu1 %v2973_v17  ;;  %s3595_s21 = scalar_lea.vmem %s4364_s0, %s2938_s8  ;;  %v3015_v45 = vld [vmem:[%s4365_s1 + $0x1c4] ss:$8 sps:$4 sm:$0xff]   ;;  %v3018_v47 = vld [vmem:[%s4365_s1 + $0x1c0] ss:$8 sps:$4 sm:$0xff]   ;;  %v3019_v48 = vld [vmem:[%s4365_s1 + $0xb4] ss:$8 sps:$4 sm:$0xff]  }
  0x1c   : > { %v3045_v49 = vld [vmem:[%s3595_s21 + $0x4] ss:$72 sps:$4 sm:$0xff]   ;;  %v3021_v50 = vld [vmem:[%s4365_s1 + $0x1b4] ss:$8 sps:$4 sm:$0xff]   ;;  %v3023_v52 = vld [vmem:[%s4365_s1 + $0xb0] ss:$8 sps:$4 sm:$0xff]  }
  0x1d   : > { %2103 = vmatpush1.bf16.msra.mxu0 %v2975_v18  ;;  %v3048_v51 = vld [vmem:[%s3595_s21 + $0xc] ss:$72 sps:$4 sm:$0xff]   ;;  %2126 = vmatprep.mubr.bf16.mxu0 %v3045_v49  ;;  %v3024_v53 = vld [vmem:[%s4365_s1 + $0x1b0] ss:$8 sps:$4 sm:$0xff]   ;;  %v3029_v56 = vld [vmem:[%s4365_s1 + $0xa0] ss:$8 sps:$4 sm:$0xff]  }
  0x1e   : > { %2146 = vmatpush1.bf16.msra.mxu1 %v2976_v19  ;;  %2104 = vmatprep.subr.bf16.mxu0 %v2977_v20  ;;  %v3025_v54 = vld [vmem:[%s4365_s1 + $0xa4] ss:$8 sps:$4 sm:$0xff]   ;;  %v3030_v57 = vld [vmem:[%s4365_s1 + $0x1a0] ss:$8 sps:$4 sm:$0xff]   ;;  %v3031_v58 = vld [vmem:[%s4365_s1 + $0x94] ss:$8 sps:$4 sm:$0xff]  }
  0x1f   : > { %2147 = vmatprep.subr.bf16.mxu1 %v2979_v21  ;;  %2169 = vmatprep.mubr.bf16.mxu1 %v3048_v51  ;;  %v3027_v55 = vld [vmem:[%s4365_s1 + $0x1a4] ss:$8 sps:$4 sm:$0xff]   ;;  %v3033_v59 = vld [vmem:[%s4365_s1 + $0x194] ss:$8 sps:$4 sm:$0xff]   ;;  %v3035_v60 = vld [vmem:[%s4365_s1 + $0x90] ss:$8 sps:$4 sm:$0xff]  }
  0x20   : > { %v3036_v61 = vld [vmem:[%s4365_s1 + $0x190] ss:$8 sps:$4 sm:$0xff]   ;;  %v3037_v62 = vld [vmem:[%s4365_s1 + $0x84] ss:$8 sps:$4 sm:$0xff]   ;;  %v3041_v0 = vld [vmem:[%s4365_s1 + $0x80] ss:$8 sps:$4 sm:$0xff]  }
  0x21   : > { %2105 = vmatpush1.bf16.msra.mxu0 %v2981_v22  ;;  %v3039_v63 = vld [vmem:[%s4365_s1 + $0x184] ss:$8 sps:$4 sm:$0xff]   ;;  %v3042_v1 = vld [vmem:[%s4365_s1 + $0x180] ss:$8 sps:$4 sm:$0xff]   ;;  %v3051_v2 = vld [vmem:[%s4365_s1 + $0x274] ss:$8 sps:$4 sm:$0xff]  }
  0x22   : > { %2148 = vmatpush1.bf16.msra.mxu1 %v2982_v23  ;;  %2106 = vmatprep.subr.bf16.mxu0 %v2983_v24  ;;  %v3054_v3 = vld [vmem:[%s4365_s1 + $0x374] ss:$8 sps:$4 sm:$0xff]   ;;  %v3043_v4 = vld [vmem:[%s3595_s21] ss:$72 sps:$4 sm:$0xff]   ;;  %v3049_v6 = vld [vmem:[%s4365_s1 + $0x270] ss:$8 sps:$4 sm:$0xff]  }
  0x23   : > { %2149 = vmatprep.subr.bf16.mxu1 %v2985_v25  ;;  %v3046_v5 = vld [vmem:[%s3595_s21 + $0x8] ss:$72 sps:$4 sm:$0xff]   ;;  %v3057_v8 = vld [vmem:[%s4365_s1 + $0x264] ss:$8 sps:$4 sm:$0xff]   ;;  %v3063_v12 = vld [vmem:[%s4365_s1 + $0x254] ss:$8 sps:$4 sm:$0xff]  }
  0x24   : > { %v3052_v7 = vld [vmem:[%s4365_s1 + $0x370] ss:$8 sps:$4 sm:$0xff]   ;;  %v3060_v9 = vld [vmem:[%s4365_s1 + $0x364] ss:$8 sps:$4 sm:$0xff]   ;;  %v3055_v10 = vld [vmem:[%s4365_s1 + $0x260] ss:$8 sps:$4 sm:$0xff]  }
  0x25   : > { %2107 = vmatpush1.bf16.msra.mxu0 %v2987_v26  ;;  %v3058_v11 = vld [vmem:[%s4365_s1 + $0x360] ss:$8 sps:$4 sm:$0xff]   ;;  %v3066_v13 = vld [vmem:[%s4365_s1 + $0x354] ss:$8 sps:$4 sm:$0xff]   ;;  %v3061_v14 = vld [vmem:[%s4365_s1 + $0x250] ss:$8 sps:$4 sm:$0xff]  }
  0x26   : > { %2150 = vmatpush1.bf16.msra.mxu1 %v2988_v27  ;;  %2108 = vmatprep.subr.bf16.mxu0 %v2989_v28  ;;  %v3064_v15 = vld [vmem:[%s4365_s1 + $0x350] ss:$8 sps:$4 sm:$0xff]   ;;  %v3069_v16 = vld [vmem:[%s4365_s1 + $0x244] ss:$8 sps:$4 sm:$0xff]   ;;  %v3067_v18 = vld [vmem:[%s4365_s1 + $0x240] ss:$8 sps:$4 sm:$0xff]  }
  0x27   : > { %2151 = vmatprep.subr.bf16.mxu1 %v2991_v29  ;;  %v3072_v17 = vld [vmem:[%s4365_s1 + $0x344] ss:$8 sps:$4 sm:$0xff]   ;;  %v3070_v19 = vld [vmem:[%s4365_s1 + $0x340] ss:$8 sps:$4 sm:$0xff]   ;;  %v3075_v20 = vld [vmem:[%s4365_s1 + $0x234] ss:$8 sps:$4 sm:$0xff]  }
  0x28   : > { %v3078_v21 = vld [vmem:[%s4365_s1 + $0x334] ss:$8 sps:$4 sm:$0xff]   ;;  %v3073_v22 = vld [vmem:[%s4365_s1 + $0x230] ss:$8 sps:$4 sm:$0xff]   ;;  %v3081_v24 = vld [vmem:[%s4365_s1 + $0x224] ss:$8 sps:$4 sm:$0xff]  }
  0x29   : > { %2109 = vmatpush1.bf16.msra.mxu0 %v2993_v30  ;;  %v3076_v23 = vld [vmem:[%s4365_s1 + $0x330] ss:$8 sps:$4 sm:$0xff]   ;;  %v3084_v25 = vld [vmem:[%s4365_s1 + $0x324] ss:$8 sps:$4 sm:$0xff]   ;;  %v3079_v26 = vld [vmem:[%s4365_s1 + $0x220] ss:$8 sps:$4 sm:$0xff]  }
  0x2a   : > { %2152 = vmatpush1.bf16.msra.mxu1 %v2994_v31  ;;  %2110 = vmatprep.subr.bf16.mxu0 %v2995_v32  ;;  %v3082_v27 = vld [vmem:[%s4365_s1 + $0x320] ss:$8 sps:$4 sm:$0xff]   ;;  %v3087_v28 = vld [vmem:[%s4365_s1 + $0x214] ss:$8 sps:$4 sm:$0xff]   ;;  %v3085_v30 = vld [vmem:[%s4365_s1 + $0x210] ss:$8 sps:$4 sm:$0xff]  }
  0x2b   : > { %2153 = vmatprep.subr.bf16.mxu1 %v2997_v33  ;;  %v3090_v29 = vld [vmem:[%s4365_s1 + $0x314] ss:$8 sps:$4 sm:$0xff]   ;;  %v3088_v31 = vld [vmem:[%s4365_s1 + $0x310] ss:$8 sps:$4 sm:$0xff]   ;;  %v3093_v32 = vld [vmem:[%s4365_s1 + $0x204] ss:$8 sps:$4 sm:$0xff]  }
  0x2c   : > { %v3096_v33 = vld [vmem:[%s4365_s1 + $0x304] ss:$8 sps:$4 sm:$0xff]   ;;  %v3112_v49 = vld [vmem:[%s4365_s1 + $0x3d0] ss:$8 sps:$4 sm:$0xff]  }
  0x2d   : > { %2111 = vmatpush2.bf16.msra.mxu0 %v2999_v34  ;;  %v3147_v34 = vld [vmem:[%s3595_s21 + $0x14] ss:$72 sps:$4 sm:$0xff]   ;;  %v3120_v51 = vld [vmem:[%s4365_s1 + $0x3c4] ss:$8 sps:$4 sm:$0xff]  }
  0x2e   : > { %2154 = vmatpush2.bf16.msra.mxu1 %v3000_v35  ;;  %2112 = vmatprep.subr.bf16.mxu0 %v3001_v36  ;;  %v3091_v35 = vld [vmem:[%s4365_s1 + $0x200] ss:$8 sps:$4 sm:$0xff]  }
  0x2f   : > { %2155 = vmatprep.subr.bf16.mxu1 %v3003_v37  ;;  %v3094_v36 = vld [vmem:[%s4365_s1 + $0x300] ss:$8 sps:$4 sm:$0xff]   ;;  %v3153_v37 = vld [vmem:[%s3595_s21 + $0x1c] ss:$72 sps:$4 sm:$0xff]  }
  0x31   : > { %2113 = vmatpush2.bf16.msra.mxu0 %v3005_v38  ;;  %v3099_v38 = vld [vmem:[%s4365_s1 + $0x2f4] ss:$8 sps:$4 sm:$0xff]  }
  0x32   : > { %2156 = vmatpush2.bf16.msra.mxu1 %v3006_v39  ;;  %2114 = vmatprep.subr.bf16.mxu0 %v3007_v40  ;;  %v3102_v39 = vld [vmem:[%s4365_s1 + $0x3f4] ss:$8 sps:$4 sm:$0xff]   ;;  %v3097_v40 = vld [vmem:[%s4365_s1 + $0x2f0] ss:$8 sps:$4 sm:$0xff]  }
  0x33   : > { %2157 = vmatprep.subr.bf16.mxu1 %v3009_v41  ;;  %v3100_v41 = vld [vmem:[%s4365_s1 + $0x3f0] ss:$8 sps:$4 sm:$0xff]  }
  0x35   : > { %2115 = vmatpush2.bf16.msra.mxu0 %v3011_v42  ;;  %v3105_v42 = vld [vmem:[%s4365_s1 + $0x2e4] ss:$8 sps:$4 sm:$0xff]  }
  0x36   : > { %2158 = vmatpush2.bf16.msra.mxu1 %v3012_v43  ;;  %2116 = vmatprep.subr.bf16.mxu0 %v3013_v44  ;;  %v3108_v43 = vld [vmem:[%s4365_s1 + $0x3e4] ss:$8 sps:$4 sm:$0xff]   ;;  %v3103_v44 = vld [vmem:[%s4365_s1 + $0x2e0] ss:$8 sps:$4 sm:$0xff]  }
  0x37   : > { %2159 = vmatprep.subr.bf16.mxu1 %v3015_v45  ;;  %v3106_v45 = vld [vmem:[%s4365_s1 + $0x3e0] ss:$8 sps:$4 sm:$0xff]  }
  0x39   : > { %2117 = vmatpush2.bf16.msra.mxu0 %v3017_v46  ;;  %v3111_v46 = vld [vmem:[%s4365_s1 + $0x2d4] ss:$8 sps:$4 sm:$0xff]  }
  0x3a   : > { %2160 = vmatpush2.bf16.msra.mxu1 %v3018_v47  ;;  %2118 = vmatprep.subr.bf16.mxu0 %v3019_v48  ;;  %v3114_v47 = vld [vmem:[%s4365_s1 + $0x3d4] ss:$8 sps:$4 sm:$0xff]   ;;  %v3109_v48 = vld [vmem:[%s4365_s1 + $0x2d0] ss:$8 sps:$4 sm:$0xff]  }
  0x3b   : > { %2161 = vmatprep.subr.bf16.mxu1 %v3021_v50  ;;  %v3117_v50 = vld [vmem:[%s4365_s1 + $0x2c4] ss:$8 sps:$4 sm:$0xff]  }
  0x3d   : > { %2119 = vmatpush2.bf16.msra.mxu0 %v3023_v52  ;;  %v3115_v52 = vld [vmem:[%s4365_s1 + $0x2c0] ss:$8 sps:$4 sm:$0xff]  }
  0x3e   : > { %2162 = vmatpush2.bf16.msra.mxu1 %v3024_v53  ;;  %2120 = vmatprep.subr.bf16.mxu0 %v3025_v54  ;;  %v3118_v53 = vld [vmem:[%s4365_s1 + $0x3c0] ss:$8 sps:$4 sm:$0xff]   ;;  %v3123_v54 = vld [vmem:[%s4365_s1 + $0x2b4] ss:$8 sps:$4 sm:$0xff]  }
  0x3f   : > { %2163 = vmatprep.subr.bf16.mxu1 %v3027_v55  ;;  %v3126_v55 = vld [vmem:[%s4365_s1 + $0x3b4] ss:$8 sps:$4 sm:$0xff]  }
  0x41   : > { %2121 = vmatpush2.bf16.msra.mxu0 %v3029_v56  ;;  %v3121_v56 = vld [vmem:[%s4365_s1 + $0x2b0] ss:$8 sps:$4 sm:$0xff]  }
  0x42   : > { %2164 = vmatpush2.bf16.msra.mxu1 %v3030_v57  ;;  %2122 = vmatprep.subr.bf16.mxu0 %v3031_v58  ;;  %v3124_v57 = vld [vmem:[%s4365_s1 + $0x3b0] ss:$8 sps:$4 sm:$0xff]   ;;  %v3129_v58 = vld [vmem:[%s4365_s1 + $0x2a4] ss:$8 sps:$4 sm:$0xff]  }
  0x43   : > { %2165 = vmatprep.subr.bf16.mxu1 %v3033_v59  ;;  %v3132_v59 = vld [vmem:[%s4365_s1 + $0x3a4] ss:$8 sps:$4 sm:$0xff]  }
  0x45   : > { %2123 = vmatpush2.bf16.msra.mxu0 %v3035_v60  ;;  %v3127_v60 = vld [vmem:[%s4365_s1 + $0x2a0] ss:$8 sps:$4 sm:$0xff]  }
  0x46   : > { %2166 = vmatpush2.bf16.msra.mxu1 %v3036_v61  ;;  %2124 = vmatprep.subr.bf16.mxu0 %v3037_v62  ;;  %v3130_v61 = vld [vmem:[%s4365_s1 + $0x3a0] ss:$8 sps:$4 sm:$0xff]   ;;  %v3135_v62 = vld [vmem:[%s4365_s1 + $0x294] ss:$8 sps:$4 sm:$0xff]  }
  0x47   : > { %2167 = vmatprep.subr.bf16.mxu1 %v3039_v63  ;;  %v3138_v63 = vld [vmem:[%s4365_s1 + $0x394] ss:$8 sps:$4 sm:$0xff]  }
  0x49   : > { %2125 = vmatpush2.bf16.msra.mxu0 %v3041_v0  ;;  %v3133_v0 = vld [vmem:[%s4365_s1 + $0x290] ss:$8 sps:$4 sm:$0xff]  }
  0x4a   : > { %2168 = vmatpush2.bf16.msra.mxu1 %v3042_v1  ;;  %2180 = vmatprep.subr.bf16.mxu0 %v3051_v2  ;;  %v3136_v1 = vld [vmem:[%s4365_s1 + $0x390] ss:$8 sps:$4 sm:$0xff]   ;;  %v3141_v2 = vld [vmem:[%s4365_s1 + $0x284] ss:$8 sps:$4 sm:$0xff]  }
  0x4b   : > { %2223 = vmatprep.subr.bf16.mxu1 %v3054_v3  ;;  %v3144_v3 = vld [vmem:[%s4365_s1 + $0x384] ss:$8 sps:$4 sm:$0xff]  }
  0x4c   : > { %2127 = vmatmul.mubr.bf16.vlgmr.msra.gmra.mxu0 %v3043_v4  ;;  %v3139_v4 = vld [vmem:[%s4365_s1 + $0x280] ss:$8 sps:$4 sm:$0xff]  }
  0x4d   : > { %2170 = vmatmul.mubr.bf16.vlgmr.msra.gmra.mxu1 %v3046_v5  ;;  %2181 = vmatpush1.bf16.msra.mxu0 %v3049_v6  ;;  %v3142_v5 = vld [vmem:[%s4365_s1 + $0x380] ss:$8 sps:$4 sm:$0xff]   ;;  %v3150_v6 = vld [vmem:[%s4365_s1 + $0x474] ss:$8 sps:$4 sm:$0xff]  }
  0x4e   : > { %2224 = vmatpush1.bf16.msra.mxu1 %v3052_v7  ;;  %2182 = vmatprep.subr.bf16.mxu0 %v3057_v8  ;;  %v3156_v7 = vld [vmem:[%s4365_s1 + $0x574] ss:$8 sps:$4 sm:$0xff]   ;;  %v3145_v8 = vld [vmem:[%s3595_s21 + $0x10] ss:$72 sps:$4 sm:$0xff]  }
  0x4f   : > { %2225 = vmatprep.subr.bf16.mxu1 %v3060_v9  ;;  %2212 = vmatprep.mubr.bf16.mxu0 %v3147_v34  ;;  %v3148_v9 = vld [vmem:[%s4365_s1 + $0x470] ss:$8 sps:$4 sm:$0xff]   ;;  %v3189_v34 = vld [vmem:[%s4365_s1 + $0x414] ss:$8 sps:$4 sm:$0xff]  }
  0x50   : > { %2255 = vmatprep.mubr.bf16.mxu1 %v3153_v37  ;;  %v3190_v37 = vld [vmem:[%s4365_s1 + $0x510] ss:$8 sps:$4 sm:$0xff]  }
  0x51   : > { %2183 = vmatpush1.bf16.msra.mxu0 %v3055_v10  ;;  %v3151_v10 = vld [vmem:[%s3595_s21 + $0x18] ss:$72 sps:$4 sm:$0xff]  }
  0x52   : > { %2226 = vmatpush1.bf16.msra.mxu1 %v3058_v11  ;;  %2184 = vmatprep.subr.bf16.mxu0 %v3063_v12  ;;  %v3154_v11 = vld [vmem:[%s4365_s1 + $0x570] ss:$8 sps:$4 sm:$0xff]   ;;  %v3159_v12 = vld [vmem:[%s4365_s1 + $0x464] ss:$8 sps:$4 sm:$0xff]  }
  0x53   : > { %2227 = vmatprep.subr.bf16.mxu1 %v3066_v13  ;;  %v3162_v13 = vld [vmem:[%s4365_s1 + $0x564] ss:$8 sps:$4 sm:$0xff]  }
  0x55   : > { %2185 = vmatpush1.bf16.msra.mxu0 %v3061_v14  ;;  %v3157_v14 = vld [vmem:[%s4365_s1 + $0x460] ss:$8 sps:$4 sm:$0xff]  }
  0x56   : > { %2228 = vmatpush1.bf16.msra.mxu1 %v3064_v15  ;;  %2186 = vmatprep.subr.bf16.mxu0 %v3069_v16  ;;  %v3160_v15 = vld [vmem:[%s4365_s1 + $0x560] ss:$8 sps:$4 sm:$0xff]   ;;  %v3165_v16 = vld [vmem:[%s4365_s1 + $0x454] ss:$8 sps:$4 sm:$0xff]  }
  0x57   : > { %2229 = vmatprep.subr.bf16.mxu1 %v3072_v17  ;;  %v3168_v17 = vld [vmem:[%s4365_s1 + $0x554] ss:$8 sps:$4 sm:$0xff]  }
  0x59   : > { %2187 = vmatpush1.bf16.msra.mxu0 %v3067_v18  ;;  %v3163_v18 = vld [vmem:[%s4365_s1 + $0x450] ss:$8 sps:$4 sm:$0xff]  }
  0x5a   : > { %2230 = vmatpush1.bf16.msra.mxu1 %v3070_v19  ;;  %2188 = vmatprep.subr.bf16.mxu0 %v3075_v20  ;;  %v3249_v19 = vld [vmem:[%s3595_s21 + $0x24] ss:$72 sps:$4 sm:$0xff]   ;;  %v3166_v20 = vld [vmem:[%s4365_s1 + $0x550] ss:$8 sps:$4 sm:$0xff]  }
  0x5b   : > { %2231 = vmatprep.subr.bf16.mxu1 %v3078_v21  ;;  %v3171_v21 = vld [vmem:[%s4365_s1 + $0x444] ss:$8 sps:$4 sm:$0xff]  }
  0x5d   : > { %2189 = vmatpush1.bf16.msra.mxu0 %v3073_v22  ;;  %v3174_v22 = vld [vmem:[%s4365_s1 + $0x544] ss:$8 sps:$4 sm:$0xff]  }
  0x5e   : > { %2232 = vmatpush1.bf16.msra.mxu1 %v3076_v23  ;;  %2190 = vmatprep.subr.bf16.mxu0 %v3081_v24  ;;  %v3255_v23 = vld [vmem:[%s3595_s21 + $0x2c] ss:$72 sps:$4 sm:$0xff]   ;;  %v3169_v24 = vld [vmem:[%s4365_s1 + $0x440] ss:$8 sps:$4 sm:$0xff]  }
  0x5f   : > { %2233 = vmatprep.subr.bf16.mxu1 %v3084_v25  ;;  %v3172_v25 = vld [vmem:[%s4365_s1 + $0x540] ss:$8 sps:$4 sm:$0xff]  }
  0x61   : > { %2191 = vmatpush1.bf16.msra.mxu0 %v3079_v26  ;;  %v3177_v26 = vld [vmem:[%s4365_s1 + $0x434] ss:$8 sps:$4 sm:$0xff]  }
  0x62   : > { %2234 = vmatpush1.bf16.msra.mxu1 %v3082_v27  ;;  %2192 = vmatprep.subr.bf16.mxu0 %v3087_v28  ;;  %v3180_v27 = vld [vmem:[%s4365_s1 + $0x534] ss:$8 sps:$4 sm:$0xff]   ;;  %v3175_v28 = vld [vmem:[%s4365_s1 + $0x430] ss:$8 sps:$4 sm:$0xff]  }
  0x63   : > { %2235 = vmatprep.subr.bf16.mxu1 %v3090_v29  ;;  %v3178_v29 = vld [vmem:[%s4365_s1 + $0x530] ss:$8 sps:$4 sm:$0xff]  }
  0x65   : > { %2193 = vmatpush1.bf16.msra.mxu0 %v3085_v30  ;;  %v3183_v30 = vld [vmem:[%s4365_s1 + $0x424] ss:$8 sps:$4 sm:$0xff]  }
  0x66   : > { %2236 = vmatpush1.bf16.msra.mxu1 %v3088_v31  ;;  %2194 = vmatprep.subr.bf16.mxu0 %v3093_v32  ;;  %v3186_v31 = vld [vmem:[%s4365_s1 + $0x524] ss:$8 sps:$4 sm:$0xff]   ;;  %v3181_v32 = vld [vmem:[%s4365_s1 + $0x420] ss:$8 sps:$4 sm:$0xff]  }
  0x67   : > { %2237 = vmatprep.subr.bf16.mxu1 %v3096_v33  ;;  %v3184_v33 = vld [vmem:[%s4365_s1 + $0x520] ss:$8 sps:$4 sm:$0xff]  }
  0x69   : > { %2195 = vmatpush1.bf16.msra.mxu0 %v3091_v35  ;;  %v3192_v35 = vld [vmem:[%s4365_s1 + $0x514] ss:$8 sps:$4 sm:$0xff]  }
  0x6a   : > { %2238 = vmatpush1.bf16.msra.mxu1 %v3094_v36  ;;  %2196 = vmatprep.subr.bf16.mxu0 %v3099_v38  ;;  %v3187_v36 = vld [vmem:[%s4365_s1 + $0x410] ss:$8 sps:$4 sm:$0xff]   ;;  %v3195_v38 = vld [vmem:[%s4365_s1 + $0x404] ss:$8 sps:$4 sm:$0xff]  }
  0x6b   : > { %2239 = vmatprep.subr.bf16.mxu1 %v3102_v39  ;;  %v3198_v39 = vld [vmem:[%s4365_s1 + $0x504] ss:$8 sps:$4 sm:$0xff]  }
  0x6d   : > { %2197 = vmatpush2.bf16.msra.mxu0 %v3097_v40  ;;  %v3193_v40 = vld [vmem:[%s4365_s1 + $0x400] ss:$8 sps:$4 sm:$0xff]  }
  0x6e   : > { %2240 = vmatpush2.bf16.msra.mxu1 %v3100_v41  ;;  %2198 = vmatprep.subr.bf16.mxu0 %v3105_v42  ;;  %v3196_v41 = vld [vmem:[%s4365_s1 + $0x500] ss:$8 sps:$4 sm:$0xff]   ;;  %v3201_v42 = vld [vmem:[%s4365_s1 + $0x4f4] ss:$8 sps:$4 sm:$0xff]  }
  0x6f   : > { %2241 = vmatprep.subr.bf16.mxu1 %v3108_v43  ;;  %v3204_v43 = vld [vmem:[%s4365_s1 + $0x5f4] ss:$8 sps:$4 sm:$0xff]  }
  0x71   : > { %2199 = vmatpush2.bf16.msra.mxu0 %v3103_v44  ;;  %v3199_v44 = vld [vmem:[%s4365_s1 + $0x4f0] ss:$8 sps:$4 sm:$0xff]  }
  0x72   : > { %2242 = vmatpush2.bf16.msra.mxu1 %v3106_v45  ;;  %2200 = vmatprep.subr.bf16.mxu0 %v3111_v46  ;;  %v3202_v45 = vld [vmem:[%s4365_s1 + $0x5f0] ss:$8 sps:$4 sm:$0xff]   ;;  %v3207_v46 = vld [vmem:[%s4365_s1 + $0x4e4] ss:$8 sps:$4 sm:$0xff]  }
  0x73   : > { %2243 = vmatprep.subr.bf16.mxu1 %v3114_v47  ;;  %v3210_v47 = vld [vmem:[%s4365_s1 + $0x5e4] ss:$8 sps:$4 sm:$0xff]  }
  0x75   : > { %2201 = vmatpush2.bf16.msra.mxu0 %v3109_v48  ;;  %v3205_v48 = vld [vmem:[%s4365_s1 + $0x4e0] ss:$8 sps:$4 sm:$0xff]  }
  0x76   : > { %2244 = vmatpush2.bf16.msra.mxu1 %v3112_v49  ;;  %2202 = vmatprep.subr.bf16.mxu0 %v3117_v50  ;;  %v3208_v49 = vld [vmem:[%s4365_s1 + $0x5e0] ss:$8 sps:$4 sm:$0xff]   ;;  %v3213_v50 = vld [vmem:[%s4365_s1 + $0x4d4] ss:$8 sps:$4 sm:$0xff]  }
  0x77   : > { %2245 = vmatprep.subr.bf16.mxu1 %v3120_v51  ;;  %v3216_v51 = vld [vmem:[%s4365_s1 + $0x5d4] ss:$8 sps:$4 sm:$0xff]  }
  0x79   : > { %2203 = vmatpush2.bf16.msra.mxu0 %v3115_v52  ;;  %v3211_v52 = vld [vmem:[%s4365_s1 + $0x4d0] ss:$8 sps:$4 sm:$0xff]  }
  0x7a   : > { %2246 = vmatpush2.bf16.msra.mxu1 %v3118_v53  ;;  %2204 = vmatprep.subr.bf16.mxu0 %v3123_v54  ;;  %v3214_v53 = vld [vmem:[%s4365_s1 + $0x5d0] ss:$8 sps:$4 sm:$0xff]   ;;  %v3219_v54 = vld [vmem:[%s4365_s1 + $0x4c4] ss:$8 sps:$4 sm:$0xff]  }
  0x7b   : > { %2247 = vmatprep.subr.bf16.mxu1 %v3126_v55  ;;  %v3222_v55 = vld [vmem:[%s4365_s1 + $0x5c4] ss:$8 sps:$4 sm:$0xff]  }
  0x7d   : > { %2205 = vmatpush2.bf16.msra.mxu0 %v3121_v56  ;;  %v3217_v56 = vld [vmem:[%s4365_s1 + $0x4c0] ss:$8 sps:$4 sm:$0xff]  }
  0x7e   : > { %2248 = vmatpush2.bf16.msra.mxu1 %v3124_v57  ;;  %2206 = vmatprep.subr.bf16.mxu0 %v3129_v58  ;;  %v3220_v57 = vld [vmem:[%s4365_s1 + $0x5c0] ss:$8 sps:$4 sm:$0xff]   ;;  %v3225_v58 = vld [vmem:[%s4365_s1 + $0x4b4] ss:$8 sps:$4 sm:$0xff]  }
  0x7f   : > { %2249 = vmatprep.subr.bf16.mxu1 %v3132_v59  ;;  %v3228_v59 = vld [vmem:[%s4365_s1 + $0x5b4] ss:$8 sps:$4 sm:$0xff]  }
  0x81   : > { %2207 = vmatpush2.bf16.msra.mxu0 %v3127_v60  ;;  %v3223_v60 = vld [vmem:[%s4365_s1 + $0x4b0] ss:$8 sps:$4 sm:$0xff]  }
  0x82   : > { %2250 = vmatpush2.bf16.msra.mxu1 %v3130_v61  ;;  %2208 = vmatprep.subr.bf16.mxu0 %v3135_v62  ;;  %v3226_v61 = vld [vmem:[%s4365_s1 + $0x5b0] ss:$8 sps:$4 sm:$0xff]   ;;  %v3231_v62 = vld [vmem:[%s4365_s1 + $0x4a4] ss:$8 sps:$4 sm:$0xff]  }
  0x83   : > { %2251 = vmatprep.subr.bf16.mxu1 %v3138_v63  ;;  %v3234_v63 = vld [vmem:[%s4365_s1 + $0x5a4] ss:$8 sps:$4 sm:$0xff]  }
  0x85   : > { %2209 = vmatpush2.bf16.msra.mxu0 %v3133_v0  ;;  %v3229_v0 = vld [vmem:[%s4365_s1 + $0x4a0] ss:$8 sps:$4 sm:$0xff]  }
  0x86   : > { %2252 = vmatpush2.bf16.msra.mxu1 %v3136_v1  ;;  %2210 = vmatprep.subr.bf16.mxu0 %v3141_v2  ;;  %v3232_v1 = vld [vmem:[%s4365_s1 + $0x5a0] ss:$8 sps:$4 sm:$0xff]   ;;  %v3237_v2 = vld [vmem:[%s4365_s1 + $0x494] ss:$8 sps:$4 sm:$0xff]  }
  0x87   : > { %2253 = vmatprep.subr.bf16.mxu1 %v3144_v3  ;;  %v3240_v3 = vld [vmem:[%s4365_s1 + $0x594] ss:$8 sps:$4 sm:$0xff]  }
  0x89   : > { %2211 = vmatpush2.bf16.msra.mxu0 %v3139_v4  ;;  %v3235_v4 = vld [vmem:[%s4365_s1 + $0x490] ss:$8 sps:$4 sm:$0xff]  }
  0x8a   : > { %2254 = vmatpush2.bf16.msra.mxu1 %v3142_v5  ;;  %2266 = vmatprep.subr.bf16.mxu0 %v3150_v6  ;;  %v3238_v5 = vld [vmem:[%s4365_s1 + $0x590] ss:$8 sps:$4 sm:$0xff]   ;;  %v3243_v6 = vld [vmem:[%s4365_s1 + $0x484] ss:$8 sps:$4 sm:$0xff]  }
  0x8b   : > { %2309 = vmatprep.subr.bf16.mxu1 %v3156_v7  ;;  %v3246_v7 = vld [vmem:[%s4365_s1 + $0x584] ss:$8 sps:$4 sm:$0xff]  }
  0x8c   : > { %2213 = vmatmul.mubr.bf16.vlgmr.msra.gmra.mxu0 %v3145_v8  ;;  %v3241_v8 = vld [vmem:[%s4365_s1 + $0x480] ss:$8 sps:$4 sm:$0xff]  }
  0x8d   : > { %2256 = vmatmul.mubr.bf16.vlgmr.msra.gmra.mxu1 %v3151_v10  ;;  %2267 = vmatpush1.bf16.msra.mxu0 %v3148_v9  ;;  %v3244_v9 = vld [vmem:[%s4365_s1 + $0x580] ss:$8 sps:$4 sm:$0xff]   ;;  %v3252_v10 = vld [vmem:[%s4365_s1 + $0x674] ss:$8 sps:$4 sm:$0xff]  }
  0x8e   : > { %2310 = vmatpush1.bf16.msra.mxu1 %v3154_v11  ;;  %2268 = vmatprep.subr.bf16.mxu0 %v3159_v12  ;;  %v3258_v11 = vld [vmem:[%s4365_s1 + $0x774] ss:$8 sps:$4 sm:$0xff]   ;;  %v3247_v12 = vld [vmem:[%s3595_s21 + $0x20] ss:$72 sps:$4 sm:$0xff]  }
  0x8f   : > { %2311 = vmatprep.subr.bf16.mxu1 %v3162_v13  ;;  %2298 = vmatprep.mubr.bf16.mxu0 %v3249_v19  ;;  %v3250_v13 = vld [vmem:[%s4365_s1 + $0x670] ss:$8 sps:$4 sm:$0xff]   ;;  %v3357_v19 = vld [vmem:[%s3595_s21 + $0x3c] ss:$72 sps:$4 sm:$0xff]  }
  0x90   : > { %2341 = vmatprep.mubr.bf16.mxu1 %v3255_v23  ;;  %v3270_v23 = vld [vmem:[%s4365_s1 + $0x754] ss:$8 sps:$4 sm:$0xff]  }
  0x91   : > { %2269 = vmatpush1.bf16.msra.mxu0 %v3157_v14  ;;  %v3253_v14 = vld [vmem:[%s3595_s21 + $0x28] ss:$72 sps:$4 sm:$0xff]  }
  0x92   : > { %2312 = vmatpush1.bf16.msra.mxu1 %v3160_v15  ;;  %2270 = vmatprep.subr.bf16.mxu0 %v3165_v16  ;;  %v3256_v15 = vld [vmem:[%s4365_s1 + $0x770] ss:$8 sps:$4 sm:$0xff]   ;;  %v3261_v16 = vld [vmem:[%s4365_s1 + $0x664] ss:$8 sps:$4 sm:$0xff]  }
  0x93   : > { %2313 = vmatprep.subr.bf16.mxu1 %v3168_v17  ;;  %v3264_v17 = vld [vmem:[%s4365_s1 + $0x764] ss:$8 sps:$4 sm:$0xff]  }
  0x95   : > { %2271 = vmatpush1.bf16.msra.mxu0 %v3163_v18  ;;  %v3351_v18 = vld [vmem:[%s3595_s21 + $0x34] ss:$72 sps:$4 sm:$0xff]  }
  0x96   : > { %2314 = vmatpush1.bf16.msra.mxu1 %v3166_v20  ;;  %2272 = vmatprep.subr.bf16.mxu0 %v3171_v21  ;;  %v3259_v20 = vld [vmem:[%s4365_s1 + $0x660] ss:$8 sps:$4 sm:$0xff]  }
  0x97   : > { %2315 = vmatprep.subr.bf16.mxu1 %v3174_v22  ;;  %v3262_v21 = vld [vmem:[%s4365_s1 + $0x760] ss:$8 sps:$4 sm:$0xff]   ;;  %v3267_v22 = vld [vmem:[%s4365_s1 + $0x654] ss:$8 sps:$4 sm:$0xff]  }
  0x99   : > { %2273 = vmatpush1.bf16.msra.mxu0 %v3169_v24  ;;  %v3265_v24 = vld [vmem:[%s4365_s1 + $0x650] ss:$8 sps:$4 sm:$0xff]  }
  0x9a   : > { %2316 = vmatpush1.bf16.msra.mxu1 %v3172_v25  ;;  %2274 = vmatprep.subr.bf16.mxu0 %v3177_v26  ;;  %v3268_v25 = vld [vmem:[%s4365_s1 + $0x750] ss:$8 sps:$4 sm:$0xff]   ;;  %v3273_v26 = vld [vmem:[%s4365_s1 + $0x644] ss:$8 sps:$4 sm:$0xff]  }
  0x9b   : > { %2317 = vmatprep.subr.bf16.mxu1 %v3180_v27  ;;  %v3276_v27 = vld [vmem:[%s4365_s1 + $0x744] ss:$8 sps:$4 sm:$0xff]  }
  0x9d   : > { %2275 = vmatpush1.bf16.msra.mxu0 %v3175_v28  ;;  %v3271_v28 = vld [vmem:[%s4365_s1 + $0x640] ss:$8 sps:$4 sm:$0xff]  }
  0x9e   : > { %2318 = vmatpush1.bf16.msra.mxu1 %v3178_v29  ;;  %2276 = vmatprep.subr.bf16.mxu0 %v3183_v30  ;;  %v3274_v29 = vld [vmem:[%s4365_s1 + $0x740] ss:$8 sps:$4 sm:$0xff]   ;;  %v3279_v30 = vld [vmem:[%s4365_s1 + $0x634] ss:$8 sps:$4 sm:$0xff]  }
  0x9f   : > { %2319 = vmatprep.subr.bf16.mxu1 %v3186_v31  ;;  %v3282_v31 = vld [vmem:[%s4365_s1 + $0x734] ss:$8 sps:$4 sm:$0xff]  }
  0xa1   : > { %2277 = vmatpush1.bf16.msra.mxu0 %v3181_v32  ;;  %v3277_v32 = vld [vmem:[%s4365_s1 + $0x630] ss:$8 sps:$4 sm:$0xff]  }
  0xa2   : > { %2320 = vmatpush1.bf16.msra.mxu1 %v3184_v33  ;;  %2278 = vmatprep.subr.bf16.mxu0 %v3189_v34  ;;  %v3280_v33 = vld [vmem:[%s4365_s1 + $0x730] ss:$8 sps:$4 sm:$0xff]   ;;  %v3285_v34 = vld [vmem:[%s4365_s1 + $0x624] ss:$8 sps:$4 sm:$0xff]  }
  0xa3   : > { %2321 = vmatprep.subr.bf16.mxu1 %v3192_v35  ;;  %v3288_v35 = vld [vmem:[%s4365_s1 + $0x724] ss:$8 sps:$4 sm:$0xff]  }
  0xa5   : > { %2279 = vmatpush1.bf16.msra.mxu0 %v3187_v36  ;;  %v3283_v36 = vld [vmem:[%s4365_s1 + $0x620] ss:$8 sps:$4 sm:$0xff]  }
  0xa6   : > { %2322 = vmatpush1.bf16.msra.mxu1 %v3190_v37  ;;  %2280 = vmatprep.subr.bf16.mxu0 %v3195_v38  ;;  %v3286_v37 = vld [vmem:[%s4365_s1 + $0x720] ss:$8 sps:$4 sm:$0xff]   ;;  %v3291_v38 = vld [vmem:[%s4365_s1 + $0x614] ss:$8 sps:$4 sm:$0xff]  }
  0xa7   : > { %2323 = vmatprep.subr.bf16.mxu1 %v3198_v39  ;;  %v3294_v39 = vld [vmem:[%s4365_s1 + $0x714] ss:$8 sps:$4 sm:$0xff]  }
  0xa9   : > { %2281 = vmatpush1.bf16.msra.mxu0 %v3193_v40  ;;  %v3289_v40 = vld [vmem:[%s4365_s1 + $0x610] ss:$8 sps:$4 sm:$0xff]  }
  0xaa   : > { %2324 = vmatpush1.bf16.msra.mxu1 %v3196_v41  ;;  %2282 = vmatprep.subr.bf16.mxu0 %v3201_v42  ;;  %v3292_v41 = vld [vmem:[%s4365_s1 + $0x710] ss:$8 sps:$4 sm:$0xff]   ;;  %v3297_v42 = vld [vmem:[%s4365_s1 + $0x604] ss:$8 sps:$4 sm:$0xff]  }
  0xab   : > { %2325 = vmatprep.subr.bf16.mxu1 %v3204_v43  ;;  %v3300_v43 = vld [vmem:[%s4365_s1 + $0x704] ss:$8 sps:$4 sm:$0xff]  }
  0xad   : > { %2283 = vmatpush2.bf16.msra.mxu0 %v3199_v44  ;;  %v3295_v44 = vld [vmem:[%s4365_s1 + $0x600] ss:$8 sps:$4 sm:$0xff]  }
  0xae   : > { %2326 = vmatpush2.bf16.msra.mxu1 %v3202_v45  ;;  %2284 = vmatprep.subr.bf16.mxu0 %v3207_v46  ;;  %v3298_v45 = vld [vmem:[%s4365_s1 + $0x700] ss:$8 sps:$4 sm:$0xff]   ;;  %v3303_v46 = vld [vmem:[%s4365_s1 + $0x6f4] ss:$8 sps:$4 sm:$0xff]  }
  0xaf   : > { %2327 = vmatprep.subr.bf16.mxu1 %v3210_v47  ;;  %v3306_v47 = vld [vmem:[%s4365_s1 + $0x7f4] ss:$8 sps:$4 sm:$0xff]  }
  0xb1   : > { %2285 = vmatpush2.bf16.msra.mxu0 %v3205_v48  ;;  %v3301_v48 = vld [vmem:[%s4365_s1 + $0x6f0] ss:$8 sps:$4 sm:$0xff]  }
  0xb2   : > { %2328 = vmatpush2.bf16.msra.mxu1 %v3208_v49  ;;  %2286 = vmatprep.subr.bf16.mxu0 %v3213_v50  ;;  %v3304_v49 = vld [vmem:[%s4365_s1 + $0x7f0] ss:$8 sps:$4 sm:$0xff]   ;;  %v3309_v50 = vld [vmem:[%s4365_s1 + $0x6e4] ss:$8 sps:$4 sm:$0xff]  }
  0xb3   : > { %2329 = vmatprep.subr.bf16.mxu1 %v3216_v51  ;;  %v3312_v51 = vld [vmem:[%s4365_s1 + $0x7e4] ss:$8 sps:$4 sm:$0xff]  }
  0xb5   : > { %2287 = vmatpush2.bf16.msra.mxu0 %v3211_v52  ;;  %v3307_v52 = vld [vmem:[%s4365_s1 + $0x6e0] ss:$8 sps:$4 sm:$0xff]  }
  0xb6   : > { %2330 = vmatpush2.bf16.msra.mxu1 %v3214_v53  ;;  %2288 = vmatprep.subr.bf16.mxu0 %v3219_v54  ;;  %v3310_v53 = vld [vmem:[%s4365_s1 + $0x7e0] ss:$8 sps:$4 sm:$0xff]   ;;  %v3315_v54 = vld [vmem:[%s4365_s1 + $0x6d4] ss:$8 sps:$4 sm:$0xff]  }
  0xb7   : > { %2331 = vmatprep.subr.bf16.mxu1 %v3222_v55  ;;  %v3318_v55 = vld [vmem:[%s4365_s1 + $0x7d4] ss:$8 sps:$4 sm:$0xff]  }
  0xb9   : > { %2289 = vmatpush2.bf16.msra.mxu0 %v3217_v56  ;;  %v3313_v56 = vld [vmem:[%s4365_s1 + $0x6d0] ss:$8 sps:$4 sm:$0xff]  }
  0xba   : > { %2332 = vmatpush2.bf16.msra.mxu1 %v3220_v57  ;;  %2290 = vmatprep.subr.bf16.mxu0 %v3225_v58  ;;  %v3316_v57 = vld [vmem:[%s4365_s1 + $0x7d0] ss:$8 sps:$4 sm:$0xff]   ;;  %v3321_v58 = vld [vmem:[%s4365_s1 + $0x6c4] ss:$8 sps:$4 sm:$0xff]  }
  0xbb   : > { %2333 = vmatprep.subr.bf16.mxu1 %v3228_v59  ;;  %v3324_v59 = vld [vmem:[%s4365_s1 + $0x7c4] ss:$8 sps:$4 sm:$0xff]  }
  0xbd   : > { %2291 = vmatpush2.bf16.msra.mxu0 %v3223_v60  ;;  %v3319_v60 = vld [vmem:[%s4365_s1 + $0x6c0] ss:$8 sps:$4 sm:$0xff]  }
  0xbe   : > { %2334 = vmatpush2.bf16.msra.mxu1 %v3226_v61  ;;  %2292 = vmatprep.subr.bf16.mxu0 %v3231_v62  ;;  %v3322_v61 = vld [vmem:[%s4365_s1 + $0x7c0] ss:$8 sps:$4 sm:$0xff]   ;;  %v3327_v62 = vld [vmem:[%s4365_s1 + $0x6b4] ss:$8 sps:$4 sm:$0xff]  }
  0xbf   : > { %2335 = vmatprep.subr.bf16.mxu1 %v3234_v63  ;;  %v3330_v63 = vld [vmem:[%s4365_s1 + $0x7b4] ss:$8 sps:$4 sm:$0xff]  }
  0xc1   : > { %2293 = vmatpush2.bf16.msra.mxu0 %v3229_v0  ;;  %v3325_v0 = vld [vmem:[%s4365_s1 + $0x6b0] ss:$8 sps:$4 sm:$0xff]  }
  0xc2   : > { %2336 = vmatpush2.bf16.msra.mxu1 %v3232_v1  ;;  %2294 = vmatprep.subr.bf16.mxu0 %v3237_v2  ;;  %v3328_v1 = vld [vmem:[%s4365_s1 + $0x7b0] ss:$8 sps:$4 sm:$0xff]   ;;  %v3333_v2 = vld [vmem:[%s4365_s1 + $0x6a4] ss:$8 sps:$4 sm:$0xff]  }
  0xc3   : > { %2337 = vmatprep.subr.bf16.mxu1 %v3240_v3  ;;  %v3336_v3 = vld [vmem:[%s4365_s1 + $0x7a4] ss:$8 sps:$4 sm:$0xff]  }
  0xc5   : > { %2295 = vmatpush2.bf16.msra.mxu0 %v3235_v4  ;;  %v3331_v4 = vld [vmem:[%s4365_s1 + $0x6a0] ss:$8 sps:$4 sm:$0xff]  }
  0xc6   : > { %2338 = vmatpush2.bf16.msra.mxu1 %v3238_v5  ;;  %2296 = vmatprep.subr.bf16.mxu0 %v3243_v6  ;;  %v3334_v5 = vld [vmem:[%s4365_s1 + $0x7a0] ss:$8 sps:$4 sm:$0xff]   ;;  %v3339_v6 = vld [vmem:[%s4365_s1 + $0x694] ss:$8 sps:$4 sm:$0xff]  }
  0xc7   : > { %2339 = vmatprep.subr.bf16.mxu1 %v3246_v7  ;;  %v3342_v7 = vld [vmem:[%s4365_s1 + $0x794] ss:$8 sps:$4 sm:$0xff]  }
  0xc9   : > { %2297 = vmatpush2.bf16.msra.mxu0 %v3241_v8  ;;  %v3337_v8 = vld [vmem:[%s4365_s1 + $0x690] ss:$8 sps:$4 sm:$0xff]  }
  0xca   : > { %2340 = vmatpush2.bf16.msra.mxu1 %v3244_v9  ;;  %2352 = vmatprep.subr.bf16.mxu0 %v3252_v10  ;;  %v3340_v9 = vld [vmem:[%s4365_s1 + $0x790] ss:$8 sps:$4 sm:$0xff]   ;;  %v3345_v10 = vld [vmem:[%s4365_s1 + $0x684] ss:$8 sps:$4 sm:$0xff]  }
  0xcb   : > { %2395 = vmatprep.subr.bf16.mxu1 %v3258_v11  ;;  %v3348_v11 = vld [vmem:[%s4365_s1 + $0x784] ss:$8 sps:$4 sm:$0xff]  }
  0xcc   : > { %2299 = vmatmul.mubr.bf16.vlgmr.msra.gmra.mxu0 %v3247_v12  ;;  %v3343_v12 = vld [vmem:[%s4365_s1 + $0x680] ss:$8 sps:$4 sm:$0xff]  }
  0xcd   : > { %2342 = vmatmul.mubr.bf16.vlgmr.msra.gmra.mxu1 %v3253_v14  ;;  %2353 = vmatpush1.bf16.msra.mxu0 %v3250_v13  ;;  %v3346_v13 = vld [vmem:[%s4365_s1 + $0x780] ss:$8 sps:$4 sm:$0xff]   ;;  %v3354_v14 = vld [vmem:[%s4365_s1 + $0x874] ss:$8 sps:$4 sm:$0xff]  }
  0xce   : > { %2396 = vmatpush1.bf16.msra.mxu1 %v3256_v15  ;;  %2354 = vmatprep.subr.bf16.mxu0 %v3261_v16  ;;  %v3349_v15 = vld [vmem:[%s3595_s21 + $0x30] ss:$72 sps:$4 sm:$0xff]  }
  0xcf   : > { %2397 = vmatprep.subr.bf16.mxu1 %v3264_v17  ;;  %2384 = vmatprep.mubr.bf16.mxu0 %v3351_v18  ;;  %v3355_v16 = vld [vmem:[%s3595_s21 + $0x38] ss:$72 sps:$4 sm:$0xff]   ;;  %v3405_v18 = vld [vmem:[%s3595_s21 + $0x44] ss:$72 sps:$4 sm:$0xff]  }
  0xd0   : > { %2427 = vmatprep.mubr.bf16.mxu1 %v3357_v19  ;;  %v3352_v17 = vld [vmem:[%s4365_s1 + $0x870] ss:$8 sps:$4 sm:$0xff]   ;;  %v3360_v19 = vld [vmem:[%s4365_s1 + $0x864] ss:$8 sps:$4 sm:$0xff]  }
  0xd1   : > { %2355 = vmatpush1.bf16.msra.mxu0 %v3259_v20  ;;  %v3358_v20 = vld [vmem:[%s4365_s1 + $0x860] ss:$8 sps:$4 sm:$0xff]  }
  0xd2   : > { %2398 = vmatpush1.bf16.msra.mxu1 %v3262_v21  ;;  %2356 = vmatprep.subr.bf16.mxu0 %v3267_v22  ;;  %v3363_v21 = vld [vmem:[%s4365_s1 + $0x854] ss:$8 sps:$4 sm:$0xff]   ;;  %v3361_v22 = vld [vmem:[%s4365_s1 + $0x850] ss:$8 sps:$4 sm:$0xff]  }
  0xd3   : > { %2399 = vmatprep.subr.bf16.mxu1 %v3270_v23  ;;  %v3366_v23 = vld [vmem:[%s4365_s1 + $0x844] ss:$8 sps:$4 sm:$0xff]  }
  0xd5   : > { %2357 = vmatpush1.bf16.msra.mxu0 %v3265_v24  ;;  %v3364_v24 = vld [vmem:[%s4365_s1 + $0x840] ss:$8 sps:$4 sm:$0xff]  }
  0xd6   : > { %2400 = vmatpush1.bf16.msra.mxu1 %v3268_v25  ;;  %2358 = vmatprep.subr.bf16.mxu0 %v3273_v26  ;;  %v3369_v25 = vld [vmem:[%s4365_s1 + $0x834] ss:$8 sps:$4 sm:$0xff]   ;;  %v3367_v26 = vld [vmem:[%s4365_s1 + $0x830] ss:$8 sps:$4 sm:$0xff]  }
  0xd7   : > { %2401 = vmatprep.subr.bf16.mxu1 %v3276_v27  ;;  %v3372_v27 = vld [vmem:[%s4365_s1 + $0x824] ss:$8 sps:$4 sm:$0xff]  }
  0xd9   : > { %2359 = vmatpush1.bf16.msra.mxu0 %v3271_v28  ;;  %v3370_v28 = vld [vmem:[%s4365_s1 + $0x820] ss:$8 sps:$4 sm:$0xff]  }
  0xda   : > { %2402 = vmatpush1.bf16.msra.mxu1 %v3274_v29  ;;  %2360 = vmatprep.subr.bf16.mxu0 %v3279_v30  ;;  %v3375_v29 = vld [vmem:[%s4365_s1 + $0x814] ss:$8 sps:$4 sm:$0xff]   ;;  %v3373_v30 = vld [vmem:[%s4365_s1 + $0x810] ss:$8 sps:$4 sm:$0xff]  }
  0xdb   : > { %2403 = vmatprep.subr.bf16.mxu1 %v3282_v31  ;;  %v3378_v31 = vld [vmem:[%s4365_s1 + $0x804] ss:$8 sps:$4 sm:$0xff]  }
  0xdd   : > { %2361 = vmatpush1.bf16.msra.mxu0 %v3277_v32  ;;  %v3376_v32 = vld [vmem:[%s4365_s1 + $0x800] ss:$8 sps:$4 sm:$0xff]  }
  0xde   : > { %2404 = vmatpush1.bf16.msra.mxu1 %v3280_v33  ;;  %2362 = vmatprep.subr.bf16.mxu0 %v3285_v34  ;;  %v3381_v33 = vld [vmem:[%s4365_s1 + $0x8f4] ss:$8 sps:$4 sm:$0xff]   ;;  %v3379_v34 = vld [vmem:[%s4365_s1 + $0x8f0] ss:$8 sps:$4 sm:$0xff]  }
  0xdf   : > { %2405 = vmatprep.subr.bf16.mxu1 %v3288_v35  ;;  %v3384_v35 = vld [vmem:[%s4365_s1 + $0x8e4] ss:$8 sps:$4 sm:$0xff]  }
  0xe1   : > { %2363 = vmatpush1.bf16.msra.mxu0 %v3283_v36  ;;  %v3382_v36 = vld [vmem:[%s4365_s1 + $0x8e0] ss:$8 sps:$4 sm:$0xff]  }
  0xe2   : > { %2406 = vmatpush1.bf16.msra.mxu1 %v3286_v37  ;;  %2364 = vmatprep.subr.bf16.mxu0 %v3291_v38  ;;  %v3387_v37 = vld [vmem:[%s4365_s1 + $0x8d4] ss:$8 sps:$4 sm:$0xff]   ;;  %v3385_v38 = vld [vmem:[%s4365_s1 + $0x8d0] ss:$8 sps:$4 sm:$0xff]  }
  0xe3   : > { %2407 = vmatprep.subr.bf16.mxu1 %v3294_v39  ;;  %v3390_v39 = vld [vmem:[%s4365_s1 + $0x8c4] ss:$8 sps:$4 sm:$0xff]  }
  0xe5   : > { %2365 = vmatpush1.bf16.msra.mxu0 %v3289_v40  ;;  %v3388_v40 = vld [vmem:[%s4365_s1 + $0x8c0] ss:$8 sps:$4 sm:$0xff]  }
  0xe6   : > { %2408 = vmatpush1.bf16.msra.mxu1 %v3292_v41  ;;  %2366 = vmatprep.subr.bf16.mxu0 %v3297_v42  ;;  %v3393_v41 = vld [vmem:[%s4365_s1 + $0x8b4] ss:$8 sps:$4 sm:$0xff]   ;;  %v3391_v42 = vld [vmem:[%s4365_s1 + $0x8b0] ss:$8 sps:$4 sm:$0xff]  }
  0xe7   : > { %2409 = vmatprep.subr.bf16.mxu1 %v3300_v43  ;;  %v3396_v43 = vld [vmem:[%s4365_s1 + $0x8a4] ss:$8 sps:$4 sm:$0xff]  }
  0xe9   : > { %2367 = vmatpush1.bf16.msra.mxu0 %v3295_v44  ;;  %v3394_v44 = vld [vmem:[%s4365_s1 + $0x8a0] ss:$8 sps:$4 sm:$0xff]  }
  0xea   : > { %2410 = vmatpush1.bf16.msra.mxu1 %v3298_v45  ;;  %2368 = vmatprep.subr.bf16.mxu0 %v3303_v46  ;;  %v3399_v45 = vld [vmem:[%s4365_s1 + $0x894] ss:$8 sps:$4 sm:$0xff]   ;;  %v3397_v46 = vld [vmem:[%s4365_s1 + $0x890] ss:$8 sps:$4 sm:$0xff]  }
  0xeb   : > { %2411 = vmatprep.subr.bf16.mxu1 %v3306_v47  ;;  %v3402_v47 = vld [vmem:[%s4365_s1 + $0x884] ss:$8 sps:$4 sm:$0xff]  }
  0xed   : > { %2369 = vmatpush2.bf16.msra.mxu0 %v3301_v48  ;;  %v3400_v48 = vld [vmem:[%s4365_s1 + $0x880] ss:$8 sps:$4 sm:$0xff]  }
  0xee   : > { %2412 = vmatpush2.bf16.msra.mxu1 %v3304_v49  ;;  %2370 = vmatprep.subr.bf16.mxu0 %v3309_v50  ;;  %v3403_v49 = vld [vmem:[%s3595_s21 + $0x40] ss:$72 sps:$4 sm:$0xff]   ;;  %s2934_s21 = sshll.u32 %s4371_s9, 3 }
  0xef   : > { %2413 = vmatprep.subr.bf16.mxu1 %v3312_v51  ;;  %s249_s26 = scalar_lea.vmem %s4368_s4, %s2934_s21  ;;  %s256_s8 = scalar_lea.vmem %s4369_s5, %s2934_s21 }
  0xf1   : > { %2371 = vmatpush2.bf16.msra.mxu0 %v3307_v52 }
  0xf2   : > { %2414 = vmatpush2.bf16.msra.mxu1 %v3310_v53  ;;  %2372 = vmatprep.subr.bf16.mxu0 %v3315_v54 }
  0xf3   : > { %2415 = vmatprep.subr.bf16.mxu1 %v3318_v55 }
  0xf5   : > { %2373 = vmatpush2.bf16.msra.mxu0 %v3313_v56 }
  0xf6   : > { %2416 = vmatpush2.bf16.msra.mxu1 %v3316_v57  ;;  %2374 = vmatprep.subr.bf16.mxu0 %v3321_v58 }
  0xf7   : > { %2417 = vmatprep.subr.bf16.mxu1 %v3324_v59 }
  0xf9   : > { %2375 = vmatpush2.bf16.msra.mxu0 %v3319_v60 }
  0xfa   : > { %2418 = vmatpush2.bf16.msra.mxu1 %v3322_v61  ;;  %2376 = vmatprep.subr.bf16.mxu0 %v3327_v62 }
  0xfb   : > { %2419 = vmatprep.subr.bf16.mxu1 %v3330_v63 }
  0xfd   : > { %2377 = vmatpush2.bf16.msra.mxu0 %v3325_v0 }
  0xfe   : > { %2420 = vmatpush2.bf16.msra.mxu1 %v3328_v1  ;;  %2378 = vmatprep.subr.bf16.mxu0 %v3333_v2 }
  0xff   : > { %2421 = vmatprep.subr.bf16.mxu1 %v3336_v3 }
 0x101   : > { %2379 = vmatpush2.bf16.msra.mxu0 %v3331_v4 }
 0x102   : > { %2422 = vmatpush2.bf16.msra.mxu1 %v3334_v5  ;;  %2380 = vmatprep.subr.bf16.mxu0 %v3339_v6 }
 0x103   : > { %2423 = vmatprep.subr.bf16.mxu1 %v3342_v7 }
 0x105   : > { %2381 = vmatpush2.bf16.msra.mxu0 %v3337_v8 }
 0x106   : > { %2424 = vmatpush2.bf16.msra.mxu1 %v3340_v9  ;;  %2382 = vmatprep.subr.bf16.mxu0 %v3345_v10 }
 0x107   : > { %2425 = vmatprep.subr.bf16.mxu1 %v3348_v11 }
 0x109   : > { %2383 = vmatpush2.bf16.msra.mxu0 %v3343_v12 }
 0x10a   : > { %2426 = vmatpush2.bf16.msra.mxu1 %v3346_v13  ;;  %2438 = vmatprep.subr.bf16.mxu0 %v3354_v14 }
 0x10c   : > { %2385 = vmatmul.mubr.bf16.vlgmr.msra.gmra.mxu0 %v3349_v15  ;;  %v2128_v50 = vpop.f32.mrf.mxu0 }
 0x10d   : > { %2428 = vmatmul.mubr.bf16.vlgmr.msra.gmra.mxu1 %v3355_v16  ;;  %2439 = vmatpush1.bf16.msra.mxu0 %v3352_v17  ;;  %v2171_v51 = vpop.f32.mrf.mxu1 }
 0x10e   : > { %2470 = vmatprep.mubr.bf16.mxu0 %v3405_v18  ;;  %2440 = vmatprep.subr.bf16.mxu0 %v3360_v19  ;;  %v2130_v52 = vpop.f32.mrf.mxu0  ;;  %v2172_v7 = vadd.f32 %v2171_v51, %v2128_v50  ;;  %v2483_v18 = vlaneseq }
 0x10f   : > { %v2173_v53 = vpop.f32.mrf.mxu1 }
 0x110   : > { %v2132_v54 = vpop.f32.mrf.mxu0  ;;  %v2174_v8 = vadd.f32 %v2173_v53, %v2130_v52 }
 0x111   : > { %2441 = vmatpush1.bf16.msra.mxu0 %v3358_v20  ;;  %v2175_v55 = vpop.f32.mrf.mxu1 }
 0x112   : > { %2442 = vmatprep.subr.bf16.mxu0 %v3363_v21  ;;  %v2134_v56 = vpop.f32.mrf.mxu0  ;;  %v2176_v12 = vadd.f32 %v2175_v55, %v2132_v54 }
 0x113   : > { %v2177_v58 = vpop.f32.mrf.mxu1 }
 0x114   : > { %v2178_v15 = vadd.f32 %v2177_v58, %v2134_v56 }
 0x115   : > { %2443 = vmatpush1.bf16.msra.mxu0 %v3361_v22 }
 0x116   : > { %2444 = vmatprep.subr.bf16.mxu0 %v3366_v23 }
 0x119   : > { %2445 = vmatpush1.bf16.msra.mxu0 %v3364_v24 }
 0x11a   : > { %2446 = vmatprep.subr.bf16.mxu0 %v3369_v25 }
 0x11d   : > { %2447 = vmatpush1.bf16.msra.mxu0 %v3367_v26 }
 0x11e   : > { %2448 = vmatprep.subr.bf16.mxu0 %v3372_v27  ;;  %v2484_v27 = vshrl.u32 %v2483_v18, 7 }
 0x121   : > { %2449 = vmatpush1.bf16.msra.mxu0 %v3370_v28 }
 0x122   : > { %2450 = vmatprep.subr.bf16.mxu0 %v3375_v29 }
 0x125   : > { %2451 = vmatpush1.bf16.msra.mxu0 %v3373_v30 }
 0x126   : > { %2452 = vmatprep.subr.bf16.mxu0 %v3378_v31 }
 0x129   : > { %2453 = vmatpush1.bf16.msra.mxu0 %v3376_v32 }
 0x12a   : > { %2454 = vmatprep.subr.bf16.mxu0 %v3381_v33 }
 0x12d   : > { %2455 = vmatpush2.bf16.msra.mxu0 %v3379_v34 }
 0x12e   : > { %2456 = vmatprep.subr.bf16.mxu0 %v3384_v35 }
 0x131   : > { %2457 = vmatpush2.bf16.msra.mxu0 %v3382_v36  ;;  %v2485_v36 = vsub.s32 0, %v2484_v27 }
 0x132   : > { %2458 = vmatprep.subr.bf16.mxu0 %v3387_v37  ;;  %v2481_v37 = vld [vmem:[%s4366_s2] sm:$0x3] }
 0x135   : > { %2459 = vmatpush2.bf16.msra.mxu0 %v3385_v38 }
 0x136   : > { %2460 = vmatprep.subr.bf16.mxu0 %v3390_v39 }
 0x139   : > { %2461 = vmatpush2.bf16.msra.mxu0 %v3388_v40  ;;  %v2497_v40 = vld [vmem:[%s4367_s3] sm:$0x3] }
 0x13a   : > { %2462 = vmatprep.subr.bf16.mxu0 %v3393_v41  ;;  %v2489_v41 = vsub.s32 1, %v2484_v27  ;;  %v2502_v50 = vrot.slane %v2497_v40, %v2485_v36 }
 0x13c   : > { %v2490_v54 = vrot.slane %v2481_v37, %v2489_v41 }
 0x13d   : > { %2463 = vmatpush2.bf16.msra.mxu0 %v3391_v42 }
 0x13e   : > { %2464 = vmatprep.subr.bf16.mxu0 %v3396_v43 }
 0x141   : > { %2465 = vmatpush2.bf16.msra.mxu0 %v3394_v44 }
 0x142   : > { %2466 = vmatprep.subr.bf16.mxu0 %v3399_v45 }
 0x145   : > { %2467 = vmatpush2.bf16.msra.mxu0 %v3397_v46 }
 0x146   : > { %2468 = vmatprep.subr.bf16.mxu0 %v3402_v47  ;;  %v2486_v47 = vrot.slane %v2481_v37, %v2485_v36 }
 0x149   : > { %2469 = vmatpush2.bf16.msra.mxu0 %v3400_v48  ;;  %v2513_v48 = vld [vmem:[%s249_s26] sm:$0xff] }
 0x14a   : > { %v2515_v56 = vunpack.c.l.bf16 %v2513_v48 }
 0x14c   : > { %2471 = vmatmul.mubr.bf16.vlgmr.msra.gmra.mxu0 %v3403_v49  ;;  %v2214_v57 = vpop.f32.mrf.mxu0 }
 0x14d   : > { %v2257_v60 = vpop.f32.mrf.mxu1  ;;  %v2215_v9 = vadd.f32 %v2214_v57, %v2172_v7 }
 0x14e   : > { %v2216_v59 = vpop.f32.mrf.mxu0 }
 0x14f   : > { %v2259_v62 = vpop.f32.mrf.mxu1  ;;  %v2217_v13 = vadd.f32 %v2216_v59, %v2174_v8  ;;  %v2258_v16 = vadd.f32 %v2257_v60, %v2215_v9 }
 0x150   : > { %v2218_v61 = vpop.f32.mrf.mxu0 }
 0x151   : > { %v2261_v0 = vpop.f32.mrf.mxu1  ;;  %v2219_v17 = vadd.f32 %v2218_v61, %v2176_v12  ;;  %v2260_v20 = vadd.f32 %v2259_v62, %v2217_v13  ;;  %v2506_v61 = vrot.slane %v2497_v40, %v2489_v41  ;;  %v2514_v62 = vld [vmem:[%s249_s26 + $0x8] sm:$0xff] }
 0x152   : > { %v2220_v63 = vpop.f32.mrf.mxu0 }
 0x153   : > { %v2263_v2 = vpop.f32.mrf.mxu1  ;;  %v2221_v21 = vadd.f32 %v2220_v63, %v2178_v15  ;;  %v2262_v25 = vadd.f32 %v2261_v0, %v2219_v17  ;;  %v2516_v63 = vunpack.c.h.bf16 %v2513_v48 }
 0x155   : > { %v2264_v28 = vadd.f32 %v2263_v2, %v2221_v21 }
 0x18c   : > { %v2300_v1 = vpop.f32.mrf.mxu0 }
 0x18d   : > { %v2343_v4 = vpop.f32.mrf.mxu1  ;;  %v2301_v22 = vadd.f32 %v2300_v1, %v2258_v16 }
 0x18e   : > { %v2302_v3 = vpop.f32.mrf.mxu0 }
 0x18f   : > { %v2345_v6 = vpop.f32.mrf.mxu1  ;;  %v2303_v26 = vadd.f32 %v2302_v3, %v2260_v20  ;;  %v2344_v29 = vadd.f32 %v2343_v4, %v2301_v22 }
 0x190   : > { %v2304_v5 = vpop.f32.mrf.mxu0 }
 0x191   : > { %v2347_v11 = vpop.f32.mrf.mxu1  ;;  %v2305_v30 = vadd.f32 %v2304_v5, %v2262_v25  ;;  %v2346_v33 = vadd.f32 %v2345_v6, %v2303_v26  ;;  %v2517_v5 = vunpack.c.l.bf16 %v2514_v62 }
 0x192   : > { %v2306_v10 = vpop.f32.mrf.mxu0 }
 0x193   : > { %v2349_v19 = vpop.f32.mrf.mxu1  ;;  %v2307_v34 = vadd.f32 %v2306_v10, %v2264_v28  ;;  %v2348_v38 = vadd.f32 %v2347_v11, %v2305_v30 }
 0x195   : > { %v2350_v44 = vadd.f32 %v2349_v19, %v2307_v34 }
 0x1cc   : > { %v2386_v14 = vpop.f32.mrf.mxu0 }
 0x1cd   : > { %v2429_v24 = vpop.f32.mrf.mxu1  ;;  %v2387_v35 = vadd.f32 %v2386_v14, %v2344_v29  ;;  %v2518_v14 = vunpack.c.h.bf16 %v2514_v62 }
 0x1ce   : > { %v2388_v23 = vpop.f32.mrf.mxu0 }
 0x1cf   : > { %v2431_v32 = vpop.f32.mrf.mxu1  ;;  %v2389_v39 = vadd.f32 %v2388_v23, %v2346_v33  ;;  %v2430_v45 = vadd.f32 %v2429_v24, %v2387_v35 }
 0x1d0   : > { %v2390_v31 = vpop.f32.mrf.mxu0 }
 0x1d1   : > { %v2433_v43 = vpop.f32.mrf.mxu1  ;;  %v2391_v46 = vadd.f32 %v2390_v31, %v2348_v38  ;;  %v2432_v51 = vadd.f32 %v2431_v32, %v2389_v39 }
 0x1d2   : > { %v2392_v42 = vpop.f32.mrf.mxu0 }
 0x1d3   : > { %v2393_v52 = vadd.f32 %v2392_v42, %v2350_v44  ;;  %v2435_v55 = vpop.f32.mrf.mxu1  ;;  %v2434_v58 = vadd.f32 %v2433_v43, %v2391_v46 }
 0x1d5   : > { %v2436_v1 = vadd.f32 %v2435_v55, %v2393_v52 }
 0x20c   : > { %v2472_v49 = vpop.f32.mrf.mxu0 }
 0x20d   : > { %v2473_v53 = vadd.f32 %v2472_v49, %v2430_v45 }
 0x20e   : > { %v2474_v57 = vpop.f32.mrf.mxu0 }
 0x20f   : > { %v2493_v59 = vmul.f32 %v2486_v47, %v2473_v53  ;;  %v2475_v60 = vadd.f32 %v2474_v57, %v2432_v51 }
 0x210   : > { %v2476_v0 = vpop.f32.mrf.mxu0 }
 0x211   : > { %v2509_v2 = vadd.f32 %v2502_v50, %v2493_v59  ;;  %v2494_v3 = vmul.f32 %v2490_v54, %v2475_v60  ;;  %v2477_v4 = vadd.f32 %v2476_v0, %v2434_v58 }
 0x212   : > { %v2478_v6 = vpop.f32.mrf.mxu0 }
 0x213   : > { %v2519_v7 = vadd.f32 %v2515_v56, %v2509_v2  ;;  %v2510_v8 = vadd.f32 %v2506_v61, %v2494_v3  ;;  %v2495_v9 = vmul.f32 %v2486_v47, %v2477_v4  ;;  %v2479_v10 = vadd.f32 %v2478_v6, %v2436_v1 }
 0x215   : > { %v2520_v11 = vadd.f32 %v2516_v63, %v2510_v8  ;;  %v2511_v12 = vadd.f32 %v2502_v50, %v2495_v9  ;;  %v2496_v13 = vmul.f32 %v2490_v54, %v2479_v10  ;;  %v2523_v15 = vmax.f32 %v2519_v7, 0.0 }
 0x217   : > { %v2524_v16 = vmax.f32 %v2520_v11, 0.0  ;;  %v2521_v17 = vadd.f32 %v2517_v5, %v2511_v12  ;;  %v2512_v18 = vadd.f32 %v2506_v61, %v2496_v13 }
 0x219   : > { %v2936_v19 = vpack.c.bf16 %v2524_v16, %v2523_v15  ;;  %v2522_v20 = vadd.f32 %v2518_v14, %v2512_v18  ;;  %v2525_v21 = vmax.f32 %v2521_v17, 0.0 }
 0x21b   : > { %2539 = vst [vmem:[%s256_s8] sm:$0xff] %v2936_v19  ;;  %v2526_v22 = vmax.f32 %v2522_v20, 0.0 }
 0x21d   : > { %v2937_v23 = vpack.c.bf16 %v2526_v22, %v2525_v21 }
 0x21f   : > { %2540 = vst [vmem:[%s256_s8 + $0x8] sm:$0xff] %v2937_v23 }
 0x220 PF: > { %s15_s18 = sadd.s32 1, %s3412_s18  }
 0x221   : > { %p12_p4 = scmp.ge.s32.totalorder %s15_s18, 4  }
 0x223   :  { %14 = sbr.rel (!%p12_p4) target bundleno = 1 (0x1), region = 73 }

</bundles_post_ra>
